<compile_context>
chip_gen: v6e
topology: v6e:2x2x1
jax: 0.10.0
libtpu: 0.0.40
codegen_flags: <defaults>
</compile_context>

<pallas_src>
import functools

import jax
import jax.numpy as jnp
from jax import lax
from jax.experimental import pallas as pl
from jax.experimental.pallas import tpu as pltpu

_LANE = 128


def _round_up(x, m):
    return (x + m - 1) // m * m


# -----------------------------------------------------------------------------
# Kernel 1: 3x3 "same" conv (single K=9*Cin_p matmul) + fused partial BN stats
# -----------------------------------------------------------------------------
def _conv3x3_stats_kernel(x_ref, w_ref, b_ref, o_ref, sum_ref, sq_ref, *,
                          H, W, Cout_p):
    # x_ref: (1, L_tot, Cin_p)  spatially flattened, zero-margined image
    #        (Wp = W+2 columns per padded row, 3 margin rows top/bottom).
    # w_ref: (9*Cin_p, Cout_p)  tap-major (ky, kx), Cin minor.
    # b_ref: (1, Cout_p)
    # o_ref: (1, H*W, Cout_p)   sum_ref / sq_ref: (1, 1, Cout_p)
    Wp = W + 2
    Hp = H + 2
    L_img = Hp * Wp
    frame = 2 * Wp                      # flat offset of the conv frame

    # im2col: each tap is a contiguous row-window of the flattened image
    # (only a sublane-offset realignment, no per-row gather).  Pieces are
    # 128-lane wide, so the lane-concat needs no lane shuffling.
    pieces = []
    for ky in range(3):
        for kx in range(3):
            start = frame + (ky - 1) * Wp + (kx - 1)
            pieces.append(x_ref[0, start:start + L_img, :])
    lhs = jnp.concatenate(pieces, axis=1)            # (L_img, 9*Cin_p)

    # Single MXU call, f32 accumulation.
    # TODO(synk): cast lhs / w to bfloat16 here for ~3x MXU throughput on
    # v6e/v7x once tolerance vs the f32 reference allows it.
    acc = jnp.dot(lhs, w_ref[...], preferred_element_type=jnp.float32)

    # Drop the halo ring, add bias once, store lane-dense (Cout_p lanes).
    y = acc.reshape(Hp, Wp, Cout_p)[1:1 + H, 1:1 + W, :]
    y = y.reshape(H * W, Cout_p) + b_ref[...]
    o_ref[0] = y

    # Fused partial BatchNorm statistics (per-channel sum / sum of squares).
    sum_ref[0] = jnp.sum(y, axis=0, keepdims=True)
    sq_ref[0] = jnp.sum(y * y, axis=0, keepdims=True)


# -----------------------------------------------------------------------------
# Kernel 2: tiled normalize + affine + ReLU (stats already folded to scale/shift)
# -----------------------------------------------------------------------------
def _bn_relu_kernel(x_ref, scale_ref, shift_ref, o_ref):
    # x_ref: (T, Cout_p)   scale/shift: (1, Cout_p)   o_ref: (T, Cout_p)
    o_ref[...] = jnp.maximum(x_ref[...] * scale_ref[...] + shift_ref[...], 0.0)


# -----------------------------------------------------------------------------
# Wrapper
# -----------------------------------------------------------------------------
def conv_block_forward(x_nchw, w_oihw, b, gamma, beta, eps=1e-5):
    """ConvBlock forward. x_nchw: (N, Cin, H, W) f32 -> (N, Cout, H, W) f32."""
    N, Cin, H, W = x_nchw.shape
    Cout = w_oihw.shape[0]
    Cin_p = _round_up(Cin, _LANE)
    Cout_p = _round_up(Cout, _LANE)
    Wp = W + 2
    T_marg = 3                     # >= 3 keeps every tap window inside bounds
    L_tot = (H + 2 * T_marg) * Wp

    # glue: NCHW -> NHWC, one zero-pad (1-px halo + top/bottom margin + channels)
    x_nhwc = jnp.transpose(x_nchw, (0, 2, 3, 1))
    x_pad = jnp.pad(x_nhwc, ((0, 0), (T_marg, T_marg), (1, 1), (0, Cin_p - Cin)))
    x_flat = x_pad.reshape(N, L_tot, Cin_p)

    # glue: weights OIHW -> (9*Cin_p, Cout_p), taps (ky, kx) major, Cin minor
    w_t = jnp.transpose(w_oihw, (2, 3, 1, 0))
    w_t = jnp.pad(w_t, ((0, 0), (0, 0), (0, Cin_p - Cin), (0, Cout_p - Cout)))
    w_mat = w_t.reshape(9 * Cin_p, Cout_p)
    b_p = jnp.pad(b, (0, Cout_p - Cout)).reshape(1, Cout_p)

    # TODO(synk): for large H*W (and v7x's 64 MiB VMEM) add a second 'parallel'
    # grid axis over row tiles with a 1-row halo instead of one image per step.
    conv_out, part_sum, part_sq = pl.pallas_call(
        functools.partial(_conv3x3_stats_kernel, H=H, W=W, Cout_p=Cout_p),
        out_shape=(
            jax.ShapeDtypeStruct((N, H * W, Cout_p), jnp.float32),
            jax.ShapeDtypeStruct((N, 1, Cout_p), jnp.float32),
            jax.ShapeDtypeStruct((N, 1, Cout_p), jnp.float32),
        ),
        grid_spec=pltpu.PrefetchScalarGridSpec(
            num_scalar_prefetch=0,
            grid=(N,),
            in_specs=[
                pl.BlockSpec((1, L_tot, Cin_p), lambda n: (n, 0, 0)),
                pl.BlockSpec((9 * Cin_p, Cout_p), lambda n: (0, 0)),
                pl.BlockSpec((1, Cout_p), lambda n: (0, 0)),
            ],
            out_specs=[
                pl.BlockSpec((1, H * W, Cout_p), lambda n: (n, 0, 0)),
                pl.BlockSpec((1, 1, Cout_p), lambda n: (n, 0, 0)),
                pl.BlockSpec((1, 1, Cout_p), lambda n: (n, 0, 0)),
            ],
        ),
        compiler_params=pltpu.CompilerParams(
            dimension_semantics=("parallel",)),
    )(x_flat, w_mat, b_p)

    # Tiny cross-batch reduction + BN affine folding in plain JAX ((Cout_p,)).
    count = jnp.float32(N * H * W)          # true per-channel element count
    mean = part_sum[:, 0, :].sum(axis=0) / count
    var = jnp.maximum(part_sq[:, 0, :].sum(axis=0) / count - mean * mean, 0.0)
    inv = lax.rsqrt(var + eps)
    gamma_p = jnp.pad(gamma, (0, Cout_p - Cout))
    beta_p = jnp.pad(beta, (0, Cout_p - Cout))
    scale = (gamma_p * inv).reshape(1, Cout_p)
    shift = (beta_p - mean * gamma_p * inv).reshape(1, Cout_p)

    # Tiled, lane-dense normalize + affine + ReLU.
    R = N * H * W
    T = R
    for cand in (1024, 512, 256, 128, 64, 32, 16, 8):
        if R % cand == 0:
            T = cand
            break
    y = pl.pallas_call(
        _bn_relu_kernel,
        out_shape=jax.ShapeDtypeStruct((R, Cout_p), jnp.float32),
        grid_spec=pltpu.PrefetchScalarGridSpec(
            num_scalar_prefetch=0,
            grid=(R // T,),
            in_specs=[
                pl.BlockSpec((T, Cout_p), lambda i: (i, 0)),
                pl.BlockSpec((1, Cout_p), lambda i: (0, 0)),
                pl.BlockSpec((1, Cout_p), lambda i: (0, 0)),
            ],
            out_specs=pl.BlockSpec((T, Cout_p), lambda i: (i, 0)),
        ),
        compiler_params=pltpu.CompilerParams(
            dimension_semantics=("parallel",)),
    )(conv_out.reshape(R, Cout_p), scale, shift)

    # glue: drop channel padding, (N, H, W, Cout) -> NCHW
    return jnp.transpose(y.reshape(N, H, W, Cout_p)[..., :Cout], (0, 3, 1, 2))


# -----------------------------------------------------------------------------
# Pure-JAX reference for validation
# -----------------------------------------------------------------------------
def _reference(x_nchw, w_oihw, b, gamma, beta, eps=1e-5):
    conv = lax.conv_general_dilated(
        x_nchw, w_oihw, window_strides=(1, 1), padding=((1, 1), (1, 1)),
        dimension_numbers=("NCHW", "OIHW", "NCHW"))
    conv = conv + b[None, :, None, None]
    mean = jnp.mean(conv, axis=(0, 2, 3), keepdims=True)
    var = jnp.mean((conv - mean) ** 2, axis=(0, 2, 3), keepdims=True)
    out = (conv - mean) * lax.rsqrt(var + eps)
    out = out * gamma[None, :, None, None] + beta[None, :, None, None]
    return jnp.maximum(out, 0.0)


if __name__ == "__main__":
    N, Cin, H, W = 2, 4, 16, 16
    Cout = 8

    key = jax.random.PRNGKey(0)
    kx, kw, kb = jax.random.split(key, 3)
    x = jax.random.normal(kx, (N, Cin, H, W), dtype=jnp.float32)
    # Conv2d params (shapes per nn.Conv2d(in, out, 3)); deterministic init.
    w = jax.random.normal(kw, (Cout, Cin, 3, 3), dtype=jnp.float32) * 0.1
    b = jax.random.normal(kb, (Cout,), dtype=jnp.float32) * 0.1
    # BatchNorm2d default init: weight=1, bias=0.
    gamma = jnp.ones((Cout,), jnp.float32)
    beta = jnp.zeros((Cout,), jnp.float32)

    out = conv_block_forward(x, w, b, gamma, beta)
    out = jax.block_until_ready(out)

    ref = _reference(x, w, b, gamma, beta)
    assert out.shape == (N, Cout, H, W)
    assert jnp.allclose(out, ref, atol=1e-4, rtol=1e-4), \
        float(jnp.max(jnp.abs(out - ref)))

    print("KERNEL_OK")
</pallas_src>

<mosaic_0001>
module attributes {stable_mosaic.version = 11 : i64} {
  func.func @_conv3x3_stats_kernel(%arg0: i32, %arg1: memref<1x396x128xf32, #tpu.memory_space<vmem>>, %arg2: memref<1152x128xf32, #tpu.memory_space<vmem>>, %arg3: memref<1x128xf32, #tpu.memory_space<vmem>>, %arg4: memref<1x256x128xf32, #tpu.memory_space<vmem>>, %arg5: memref<1x1x128xf32, #tpu.memory_space<vmem>>, %arg6: memref<1x1x128xf32, #tpu.memory_space<vmem>>) attributes {dimension_semantics = [#tpu.dimension_semantics<parallel>], iteration_bounds = array<i64: 2>, scalar_prefetch = 0 : i64, scratch_operands = 0 : i64, tpu.core_type = #tpu.core_type<tc>, window_params = [{transform_indices = @transform_0, window_bounds = array<i64: 1, 396, 128>}, {pipeline_mode = #tpu.pipeline_mode<synchronous>, transform_indices = @transform_1, window_bounds = array<i64: 1152, 128>}, {pipeline_mode = #tpu.pipeline_mode<synchronous>, transform_indices = @transform_2, window_bounds = array<i64: 1, 128>}, {transform_indices = @transform_3, window_bounds = array<i64: 1, 256, 128>}, {transform_indices = @transform_4, window_bounds = array<i64: 1, 1, 128>}, {transform_indices = @transform_5, window_bounds = array<i64: 1, 1, 128>}]} {
    %c0 = arith.constant 0 : index
    %c17 = arith.constant 17 : index
    %c0_0 = arith.constant 0 : index
    %0 = vector.load %arg1[%c0, %c17, %c0_0] : memref<1x396x128xf32, #tpu.memory_space<vmem>>, vector<1x324x128xf32>
    %1 = vector.shape_cast %0 : vector<1x324x128xf32> to vector<324x128xf32>
    %c0_1 = arith.constant 0 : index
    %c18 = arith.constant 18 : index
    %c0_2 = arith.constant 0 : index
    %2 = vector.load %arg1[%c0_1, %c18, %c0_2] : memref<1x396x128xf32, #tpu.memory_space<vmem>>, vector<1x324x128xf32>
    %3 = vector.shape_cast %2 : vector<1x324x128xf32> to vector<324x128xf32>
    %c0_3 = arith.constant 0 : index
    %c19 = arith.constant 19 : index
    %c0_4 = arith.constant 0 : index
    %4 = vector.load %arg1[%c0_3, %c19, %c0_4] : memref<1x396x128xf32, #tpu.memory_space<vmem>>, vector<1x324x128xf32>
    %5 = vector.shape_cast %4 : vector<1x324x128xf32> to vector<324x128xf32>
    %c0_5 = arith.constant 0 : index
    %c35 = arith.constant 35 : index
    %c0_6 = arith.constant 0 : index
    %6 = vector.load %arg1[%c0_5, %c35, %c0_6] : memref<1x396x128xf32, #tpu.memory_space<vmem>>, vector<1x324x128xf32>
    %7 = vector.shape_cast %6 : vector<1x324x128xf32> to vector<324x128xf32>
    %c0_7 = arith.constant 0 : index
    %c36 = arith.constant 36 : index
    %c0_8 = arith.constant 0 : index
    %8 = vector.load %arg1[%c0_7, %c36, %c0_8] : memref<1x396x128xf32, #tpu.memory_space<vmem>>, vector<1x324x128xf32>
    %9 = vector.shape_cast %8 : vector<1x324x128xf32> to vector<324x128xf32>
    %c0_9 = arith.constant 0 : index
    %c37 = arith.constant 37 : index
    %c0_10 = arith.constant 0 : index
    %10 = vector.load %arg1[%c0_9, %c37, %c0_10] : memref<1x396x128xf32, #tpu.memory_space<vmem>>, vector<1x324x128xf32>
    %11 = vector.shape_cast %10 : vector<1x324x128xf32> to vector<324x128xf32>
    %c0_11 = arith.constant 0 : index
    %c53 = arith.constant 53 : index
    %c0_12 = arith.constant 0 : index
    %12 = vector.load %arg1[%c0_11, %c53, %c0_12] : memref<1x396x128xf32, #tpu.memory_space<vmem>>, vector<1x324x128xf32>
    %13 = vector.shape_cast %12 : vector<1x324x128xf32> to vector<324x128xf32>
    %c0_13 = arith.constant 0 : index
    %c54 = arith.constant 54 : index
    %c0_14 = arith.constant 0 : index
    %14 = vector.load %arg1[%c0_13, %c54, %c0_14] : memref<1x396x128xf32, #tpu.memory_space<vmem>>, vector<1x324x128xf32>
    %15 = vector.shape_cast %14 : vector<1x324x128xf32> to vector<324x128xf32>
    %c0_15 = arith.constant 0 : index
    %c55 = arith.constant 55 : index
    %c0_16 = arith.constant 0 : index
    %16 = vector.load %arg1[%c0_15, %c55, %c0_16] : memref<1x396x128xf32, #tpu.memory_space<vmem>>, vector<1x324x128xf32>
    %17 = vector.shape_cast %16 : vector<1x324x128xf32> to vector<324x128xf32>
    %18 = tpu.concatenate %1, %3, %5, %7, %9, %11, %13, %15, %17 in 1 : vector<324x128xf32>, vector<324x128xf32>, vector<324x128xf32>, vector<324x128xf32>, vector<324x128xf32>, vector<324x128xf32>, vector<324x128xf32>, vector<324x128xf32>, vector<324x128xf32> -> vector<324x1152xf32>
    %c0_17 = arith.constant 0 : index
    %c0_18 = arith.constant 0 : index
    %19 = vector.load %arg2[%c0_17, %c0_18] : memref<1152x128xf32, #tpu.memory_space<vmem>>, vector<1152x128xf32>
    %cst = arith.constant dense<0.000000e+00> : vector<324x128xf32>
    %20 = tpu.matmul %18, %19, %cst {dimension_numbers = #tpu.dot_dimension_numbers<[1], [0], [0], [1], [0, 0, 1, 1], [], []>} : vector<324x1152xf32>, vector<1152x128xf32>, vector<324x128xf32> -> vector<324x128xf32>
    %21 = vector.shape_cast %20 : vector<324x128xf32> to vector<18x18x128xf32>
    %22 = vector.extract_strided_slice %21 {offsets = [1, 1, 0], sizes = [16, 16, 128], strides = [1, 1, 1]} : vector<18x18x128xf32> to vector<16x16x128xf32>
    %23 = vector.shape_cast %22 : vector<16x16x128xf32> to vector<256x128xf32>
    %c0_19 = arith.constant 0 : index
    %c0_20 = arith.constant 0 : index
    %24 = vector.load %arg3[%c0_19, %c0_20] : memref<1x128xf32, #tpu.memory_space<vmem>>, vector<1x128xf32>
    %25 = vector.broadcast %24 : vector<1x128xf32> to vector<256x128xf32>
    %26 = arith.addf %23, %25 : vector<256x128xf32>
    %c0_21 = arith.constant 0 : index
    %c0_22 = arith.constant 0 : index
    %c0_23 = arith.constant 0 : index
    %27 = vector.load %arg4[%c0_21, %c0_22, %c0_23] : memref<1x256x128xf32, #tpu.memory_space<vmem>>, vector<1x256x128xf32>
    %28 = vector.shape_cast %27 : vector<1x256x128xf32> to vector<256x128xf32>
    %29 = vector.shape_cast %26 : vector<256x128xf32> to vector<1x256x128xf32>
    tpu.vector_store %arg4[%c0_21, %c0_22, %c0_23], %29 {strides = array<i32>} : memref<1x256x128xf32, #tpu.memory_space<vmem>>, vector<1x256x128xf32>,
    %cst_24 = arith.constant dense<0.000000e+00> : vector<128xf32>
    %30 = vector.multi_reduction <add>, %26, %cst_24 [0] : vector<256x128xf32> to vector<128xf32>
    %31 = vector.shape_cast %30 : vector<128xf32> to vector<1x128xf32>
    %c0_25 = arith.constant 0 : index
    %c0_26 = arith.constant 0 : index
    %c0_27 = arith.constant 0 : index
    %32 = vector.load %arg5[%c0_25, %c0_26, %c0_27] : memref<1x1x128xf32, #tpu.memory_space<vmem>>, vector<1x1x128xf32>
    %33 = vector.shape_cast %32 : vector<1x1x128xf32> to vector<1x128xf32>
    %34 = vector.shape_cast %31 : vector<1x128xf32> to vector<1x1x128xf32>
    tpu.vector_store %arg5[%c0_25, %c0_26, %c0_27], %34 {strides = array<i32>} : memref<1x1x128xf32, #tpu.memory_space<vmem>>, vector<1x1x128xf32>,
    %35 = arith.mulf %26, %26 : vector<256x128xf32>
    %cst_28 = arith.constant dense<0.000000e+00> : vector<128xf32>
    %36 = vector.multi_reduction <add>, %35, %cst_28 [0] : vector<256x128xf32> to vector<128xf32>
    %37 = vector.shape_cast %36 : vector<128xf32> to vector<1x128xf32>
    %c0_29 = arith.constant 0 : index
    %c0_30 = arith.constant 0 : index
    %c0_31 = arith.constant 0 : index
    %38 = vector.load %arg6[%c0_29, %c0_30, %c0_31] : memref<1x1x128xf32, #tpu.memory_space<vmem>>, vector<1x1x128xf32>
    %39 = vector.shape_cast %38 : vector<1x1x128xf32> to vector<1x128xf32>
    %40 = vector.shape_cast %37 : vector<1x128xf32> to vector<1x1x128xf32>
    tpu.vector_store %arg6[%c0_29, %c0_30, %c0_31], %40 {strides = array<i32>} : memref<1x1x128xf32, #tpu.memory_space<vmem>>, vector<1x1x128xf32>,
    return
  }
  func.func @transform_0(%arg0: i32) -> (i32, i32, i32) {
    %c0_i32 = arith.constant 0 : i32
    %c0_i32_0 = arith.constant 0 : i32
    %c0_i32_1 = arith.constant 0 : i32
    return %arg0, %c0_i32, %c0_i32_0 : i32, i32, i32
  }
  func.func @transform_1(%arg0: i32) -> (i32, i32) {
    %c0_i32 = arith.constant 0 : i32
    %c0_i32_0 = arith.constant 0 : i32
    %c0_i32_1 = arith.constant 0 : i32
    return %c0_i32, %c0_i32_0 : i32, i32
  }
  func.func @transform_2(%arg0: i32) -> (i32, i32) {
    %c0_i32 = arith.constant 0 : i32
    %c0_i32_0 = arith.constant 0 : i32
    %c0_i32_1 = arith.constant 0 : i32
    return %c0_i32, %c0_i32_0 : i32, i32
  }
  func.func @transform_3(%arg0: i32) -> (i32, i32, i32) {
    %c0_i32 = arith.constant 0 : i32
    %c0_i32_0 = arith.constant 0 : i32
    %c0_i32_1 = arith.constant 0 : i32
    return %arg0, %c0_i32, %c0_i32_0 : i32, i32, i32
  }
  func.func @transform_4(%arg0: i32) -> (i32, i32, i32) {
    %c0_i32 = arith.constant 0 : i32
    %c0_i32_0 = arith.constant 0 : i32
    %c0_i32_1 = arith.constant 0 : i32
    return %arg0, %c0_i32, %c0_i32_0 : i32, i32, i32
  }
  func.func @transform_5(%arg0: i32) -> (i32, i32, i32) {
    %c0_i32 = arith.constant 0 : i32
    %c0_i32_0 = arith.constant 0 : i32
    %c0_i32_1 = arith.constant 0 : i32
    return %arg0, %c0_i32, %c0_i32_0 : i32, i32, i32
  }
}

</mosaic_0001>

<bundles_post_ra>
// kernel: tpu_custom_call.1
= control target key start
LH: loop header
LB: loop body
LE: loop exit
PB: predicated region body
PF: predicated region fallthrough
CT: control target
= control target key end

     0   :  { %11 = vsyncpa [#allocation3], 0  ;;  %s8144_s0 = inlined_call_operand.vmem [shape: f32[2,396,128], index: 0, kind: input, shape index: {}]   ;;  %s8145_s1 = inlined_call_operand.vmem [shape: f32[1152,128], index: 1, kind: input, shape index: {}]   ;;  %s8146_s2 = inlined_call_operand.vmem [shape: f32[1,128], index: 2, kind: input, shape index: {}]   ;;  %s8147_s3 = inlined_call_operand.hbm [shape: f32[2,256,128], index: 3, kind: output, shape index: {0}]   ;;  %s8148_s4 = inlined_call_operand.hbm [shape: f32[2,1,128], index: 4, kind: output, shape index: {1}]   ;;  %s8149_s5 = inlined_call_operand.hbm [shape: f32[2,1,128], index: 5, kind: output, shape index: {2}]  }
   0x1   :  { %13 = vsyncpa [#allocation3 + $0x1], 0 }
   0x2   :  { %14 = vsyncpa [#allocation5], 0 }
   0x3   :  { %16 = vsyncpa [#allocation5 + $0x1], 0  ;;  %s5677_s18 = smov 0   ;;  %s5679_s19 = smov 0  }
   0x4   :  { %s5681_s20 = smov 0   ;;  %s5683_s21 = smov 0  }
   0x5 LB: > { %s5698_s22 = sadd.s32 4294967295, %s5637_s21   ;;  %s5159_s23 = sadd.s32 4294967294, %s5637_s21   ;;  %s5637_s21 = sphi %s5683_s21, %s8238_s21   ;;  %s5633_s20 = sphi %s5681_s20, %s8237_s20   ;;  %s5629_s19 = sphi %s5679_s19, %s8236_s19   ;;  %s5625_s18 = sphi %s5677_s18, %s8235_s18  }
   0x6   : > { %s5702_s24 = sadd.s32 1, %s5637_s21   ;;  %s97_s25 = sadd.s32 1, %s5633_s20 }
   0x7   : > { %s94_s26 = ssub.s32 %s5637_s21, %s5702_s24  ;;  %p107_p0 = scmp.ne.s32.totalorder %s5633_s20, %s5629_s19 }
   0x8   : > { %p95_p1 = scmp.eq.s32.totalorder %s94_s26, 0  ;;  %p108_p2 = scmp.eq.s32.totalorder %s5698_s22, 1 }
   0x9   : > { %p113_p3 = scmp.ne.s32.totalorder %s5629_s19, %s5625_s18  ;;  %p114_p4 = scmp.eq.s32.totalorder %s5159_s23, 1 }
   0xa   : > { %s5715_s27 = scalar_select %p95_p1, %s5633_s20, %s97_s25  }
   0xb   : > { %p5717_p5 = por %p108_p2, %p107_p0  ;;  %p5721_p6 = por %p114_p4, %p113_p3 }
   0xc   : > { %p5162_p7 = scmp.ge.s32.totalorder %s5637_s21, 1  ;;  %p198_p8 = scmp.lt.s32.totalorder %s5637_s21, 3 }
   0xe   : > { %p199_p9 = pnand %p5162_p7, %p198_p8 }
  0x10   : > { %202 = sbr.rel (%p199_p9) target bundleno = 947 (0x3b3), region = 32 }
  0x15   : > { %v547_v0 = vld [vmem:[%s8145_s1 + $0x78] sm:$0xff]  ;;  %v8150_v1 = vmov 0.0   ;;  %v546_v2 = vld [vmem:[%s8145_s1 + $0x70] sm:$0xff]  ;;  %v545_v3 = vld [vmem:[%s8145_s1 + $0x68] sm:$0xff]  ;;  %p234_p10 = scmp.lt.s32.totalorder %s5698_s22, 1  ;;  %vm5640_vm0 = vmmov 0  }
  0x16   : > { %676 = vmatprep.subr.mxu0 %v8150_v1  ;;  %5402 = vmatprep.subr.mxu1 %v8150_v1  ;;  %v544_v4 = vld [vmem:[%s8145_s1 + $0x60] sm:$0xff]  ;;  %v543_v5 = vld [vmem:[%s8145_s1 + $0x58] sm:$0xff]  ;;  %v542_v6 = vld [vmem:[%s8145_s1 + $0x50] sm:$0xff]  ;;  %vm2662_vm1 = vcmask 1040384   ;;  %vm2663_vm2 = vcmask 1042434   ;;  %vm2665_vm4 = vcmask 1044484  }
  0x17   : > { %677 = vmatpush1.msra.mxu0 %v547_v0  ;;  %5434 = vmatpush1.msra.mxu1 %v547_v0  ;;  %v541_v7 = vld [vmem:[%s8145_s1 + $0x48] sm:$0xff]  ;;  %v540_v8 = vld [vmem:[%s8145_s1 + $0x40] sm:$0xff]  ;;  %v539_v9 = vld [vmem:[%s8145_s1 + $0x38] sm:$0xff]  ;;  %s235_s14 = scalar_select %p234_p10, %s5698_s22, 1  ;;  %vm2667_vm6 = vcmask 1046534  }
  0x18   : > { %678 = vmatprep.subr.mxu0 %v8150_v1  ;;  %5403 = vmatprep.subr.mxu1 %v8150_v1  ;;  %v538_v10 = vld [vmem:[%s8145_s1 + $0x30] sm:$0xff]  ;;  %v537_v11 = vld [vmem:[%s8145_s1 + $0x28] sm:$0xff]  ;;  %v536_v12 = vld [vmem:[%s8145_s1 + $0x20] sm:$0xff]  ;;  %s7096_s15 = sand.u32 1, %s5629_s19   ;;  %s5189_s25 = sshll.u32 %s5698_s22, 12 }
  0x19   : > { %679 = vmatpush1.msra.mxu0 %v546_v2  ;;  %5435 = vmatpush1.msra.mxu1 %v546_v2  ;;  %v535_v13 = vld [vmem:[%s8145_s1 + $0x18] sm:$0xff]  ;;  %v534_v14 = vld [vmem:[%s8145_s1 + $0x10] sm:$0xff]  ;;  %v533_v15 = vld [vmem:[%s8145_s1 + $0x8] sm:$0xff]  ;;  %s5466_s26 = smul.u32 400, %s235_s14  ;;  %s5163_s16 = sshll.u32 %s7096_s15, 8 }
  0x1a   : > { %680 = vmatprep.subr.mxu0 %v8150_v1  ;;  %5404 = vmatprep.subr.mxu1 %v8150_v1  ;;  %v532_v16 = vld [vmem:[%s8145_s1] sm:$0xff]  ;;  %v563_v17 = vld [vmem:[%s8145_s1 + $0xf8] sm:$0xff]  ;;  %v562_v18 = vld [vmem:[%s8145_s1 + $0xf0] sm:$0xff]  ;;  %s7129_s17 = scalar_lea.vmem [#allocation2], %s5163_s16  ;;  %s8029_s7 = scalar_lea.hbm %s8147_s3, %s5189_s25 }
  0x1b   : > { %681 = vmatpush1.msra.mxu0 %v545_v3  ;;  %5436 = vmatpush1.msra.mxu1 %v545_v3  ;;  %v561_v19 = vld [vmem:[%s8145_s1 + $0xe8] sm:$0xff]  ;;  %v560_v20 = vld [vmem:[%s8145_s1 + $0xe0] sm:$0xff]  ;;  %v559_v21 = vld [vmem:[%s8145_s1 + $0xd8] sm:$0xff]  ;;  %s5885_s11 = scalar_lea.vmem %s8144_s0, %s5466_s26  ;;  %s5018_s26 = sshll.u32 %s7129_s17, 4  ;;  %s8031_s26 = int_to_ptr.vmem [resolvable:$true] %s5018_s26 }
  0x1c   : > { %682 = vmatprep.subr.mxu0 %v8150_v1  ;;  %5405 = vmatprep.subr.mxu1 %v8150_v1  ;;  %v558_v22 = vld [vmem:[%s8145_s1 + $0xd0] sm:$0xff]  ;;  %v557_v23 = vld [vmem:[%s8145_s1 + $0xc8] sm:$0xff]  ;;  %v556_v24 = vld [vmem:[%s8145_s1 + $0xc0] sm:$0xff]  ;;  %s4997_s8 = scalar_lea.sflag [#allocation3], %s7096_s15  ;;  %s5521_s9 = scalar_lea.vmem %s8031_s26, 4096 }
  0x1d   : > { %683 = vmatpush1.msra.mxu0 %v544_v4  ;;  %5437 = vmatpush1.msra.mxu1 %v544_v4  ;;  %v555_v25 = vld [vmem:[%s8145_s1 + $0xb8] sm:$0xff]  ;;  %v554_v26 = vld [vmem:[%s8145_s1 + $0xb0] sm:$0xff]  ;;  %v553_v27 = vld [vmem:[%s8145_s1 + $0xa8] sm:$0xff]  ;;  %p5522_p11 = scmp.ne.s32.totalorder %s8031_s26, %s5521_s9  ;;  %s5642_s10 = smov [#allocation2]  }
  0x1e   : > { %684 = vmatprep.subr.mxu0 %v8150_v1  ;;  %5406 = vmatprep.subr.mxu1 %v8150_v1  ;;  %v552_v28 = vld [vmem:[%s8145_s1 + $0xa0] sm:$0xff]  ;;  %v551_v29 = vld [vmem:[%s8145_s1 + $0x98] sm:$0xff]  ;;  %v550_v30 = vld [vmem:[%s8145_s1 + $0x90] sm:$0xff]  ;;  %s5525_s12 = sshll.u32 %s5642_s10, 4  ;;  %s5526_s12 = int_to_ptr.vmem [resolvable:$false] %s5525_s12 }
  0x1f   : > { %685 = vmatpush1.msra.mxu0 %v543_v5  ;;  %5438 = vmatpush1.msra.mxu1 %v543_v5  ;;  %v549_v31 = vld [vmem:[%s8145_s1 + $0x88] sm:$0xff]  ;;  %v548_v32 = vld [vmem:[%s8145_s1 + $0x80] sm:$0xff]  ;;  %v280_v33 = vld [vmem:[%s5885_s11 + $0x12] sm:$0xff]  ;;  %p5523_p12 = pnand %p5522_p11, %p5717_p5  ;;  %s5527_s13 = scalar_lea.vmem %s5526_s12, 8192 }
  0x20   : > { %686 = vmatprep.subr.mxu0 %v8150_v1  ;;  %5407 = vmatprep.subr.mxu1 %v8150_v1  ;;  %v301_v34 = vld [vmem:[%s5885_s11 + $0xba] sm:$0xff]  ;;  %v239_v35 = vld [vmem:[%s5885_s11 + $0x11] sm:$0xff]  ;;  %v302_v39 = vld [vmem:[%s5885_s11 + $0xc2] sm:$0xff]  ;;  %p5528_p0 = scmp.lt.s32.totalorder %s8031_s26, %s5526_s12  ;;  %p5529_p1 = scmp.lt.s32.totalorder %s5527_s13, %s5521_s9 }
  0x21   : > { %687 = vmatpush1.msra.mxu0 %v542_v6  ;;  %5439 = vmatpush1.msra.mxu1 %v542_v6  ;;  %v260_v36 = vld [vmem:[%s5885_s11 + $0xb9] sm:$0xff]  ;;  %v261_v42 = vld [vmem:[%s5885_s11 + $0xc1] sm:$0xff]  ;;  %v610_v43 = vld [vmem:[%s8145_s1 + $0x270] sm:$0xff]  ;;  %p5524_p13 = pneg %p5523_p12 }
  0x22   : > { %688 = vmatprep.subr.mxu0 %v8150_v1  ;;  %5408 = vmatprep.subr.mxu1 %v8150_v1  ;;  %v611_v37 = vld [vmem:[%s8145_s1 + $0x278] sm:$0xff]  ;;  %v578_v44 = vld [vmem:[%s8145_s1 + $0x170] sm:$0xff]  ;;  %v282_v45 = vld [vmem:[%s5885_s11 + $0x22] sm:$0xff]  ;;  %p5530_p2 = por %p5529_p1, %p5528_p0 }
  0x23   : > { %689 = vmatpush1.msra.mxu0 %v541_v7  ;;  %5440 = vmatpush1.msra.mxu1 %v541_v7  ;;  %v281_v38 = vld [vmem:[%s5885_s11 + $0x1a] sm:$0xff]  ;;  %v303_v46 = vld [vmem:[%s5885_s11 + $0xca] sm:$0xff]  ;;  %v304_v53 = vld [vmem:[%s5885_s11 + $0xd2] sm:$0xff] }
  0x24   : > { %690 = vmatprep.subr.mxu0 %v8150_v1  ;;  %5409 = vmatprep.subr.mxu1 %v8150_v1  ;;  %v579_v40 = vld [vmem:[%s8145_s1 + $0x178] sm:$0xff]  ;;  %v609_v47 = vld [vmem:[%s8145_s1 + $0x268] sm:$0xff]  ;;  %v608_v51 = vld [vmem:[%s8145_s1 + $0x260] sm:$0xff]  ;;  %p5531_p3 = pnand %p5530_p2, %p5524_p13 }
  0x25   : > { %691 = vmatpush1.msra.mxu0 %v540_v8  ;;  %5441 = vmatpush1.msra.mxu1 %v540_v8  ;;  %v240_v41 = vld [vmem:[%s5885_s11 + $0x19] sm:$0xff]  ;;  %v262_v48 = vld [vmem:[%s5885_s11 + $0xc9] sm:$0xff]  ;;  %v241_v49 = vld [vmem:[%s5885_s11 + $0x21] sm:$0xff] }
  0x26   : > { %692 = vmatprep.subr.mxu0 %v8150_v1  ;;  %5410 = vmatprep.subr.mxu1 %v8150_v1  ;;  %v577_v50 = vld [vmem:[%s8145_s1 + $0x168] sm:$0xff]  ;;  %v576_v54 = vld [vmem:[%s8145_s1 + $0x160] sm:$0xff]  ;;  %v263_v56 = vld [vmem:[%s5885_s11 + $0xd1] sm:$0xff] }
  0x27   : > { %693 = vmatpush1.msra.mxu0 %v539_v9  ;;  %5442 = vmatpush1.msra.mxu1 %v539_v9  ;;  %v283_v52 = vld [vmem:[%s5885_s11 + $0x2a] sm:$0xff]  ;;  %v607_v57 = vld [vmem:[%s8145_s1 + $0x258] sm:$0xff]  ;;  %v306_v5 = vld [vmem:[%s5885_s11 + $0xe2] sm:$0xff] }
  0x28   : > { %694 = vmatprep.subr.mxu0 %v8150_v1  ;;  %5411 = vmatprep.subr.mxu1 %v8150_v1  ;;  %v242_v55 = vld [vmem:[%s5885_s11 + $0x29] sm:$0xff]  ;;  %v575_v58 = vld [vmem:[%s8145_s1 + $0x158] sm:$0xff]  ;;  %v265_v7 = vld [vmem:[%s5885_s11 + $0xe1] sm:$0xff] }
  0x29   : > { %695 = vmatpush1.msra.mxu0 %v538_v10  ;;  %5443 = vmatpush1.msra.mxu1 %v538_v10  ;;  %v284_v59 = vld [vmem:[%s5885_s11 + $0x32] sm:$0xff]  ;;  %v305_v60 = vld [vmem:[%s5885_s11 + $0xda] sm:$0xff]  ;;  %v605_v2 = vld [vmem:[%s8145_s1 + $0x248] sm:$0xff] }
  0x2a   : > { %696 = vmatprep.subr.mxu0 %v8150_v1  ;;  %5412 = vmatprep.subr.mxu1 %v8150_v1  ;;  %v606_v61 = vld [vmem:[%s8145_s1 + $0x250] sm:$0xff]  ;;  %v264_v62 = vld [vmem:[%s5885_s11 + $0xd9] sm:$0xff]  ;;  %v573_v3 = vld [vmem:[%s8145_s1 + $0x148] sm:$0xff] }
  0x2b   : > { %697 = vmatpush1.msra.mxu0 %v537_v11  ;;  %5444 = vmatpush1.msra.mxu1 %v537_v11  ;;  %v243_v63 = vld [vmem:[%s5885_s11 + $0x31] sm:$0xff]  ;;  %v285_v4 = vld [vmem:[%s5885_s11 + $0x3a] sm:$0xff]  ;;  %v286_v11 = vld [vmem:[%s5885_s11 + $0x42] sm:$0xff] }
  0x2c   : > { %698 = vmatprep.subr.mxu0 %v8150_v1  ;;  %5413 = vmatprep.subr.mxu1 %v8150_v1  ;;  %v574_v0 = vld [vmem:[%s8145_s1 + $0x150] sm:$0xff]  ;;  %v244_v6 = vld [vmem:[%s5885_s11 + $0x39] sm:$0xff]  ;;  %vm2664_vm3 = vmor %vm2662_vm1, %vm2663_vm2 }
  0x2d   : > { %699 = vmatpush1.msra.mxu0 %v536_v12  ;;  %5445 = vmatpush1.msra.mxu1 %v536_v12  ;;  %v604_v8 = vld [vmem:[%s8145_s1 + $0x240] sm:$0xff]  ;;  %v603_v10 = vld [vmem:[%s8145_s1 + $0x238] sm:$0xff]  ;;  %v307_v12 = vld [vmem:[%s5885_s11 + $0xea] sm:$0xff] }
  0x2e   : > { %700 = vmatprep.subr.mxu0 %v8150_v1  ;;  %5414 = vmatprep.subr.mxu1 %v8150_v1  ;;  %v572_v9 = vld [vmem:[%s8145_s1 + $0x140] sm:$0xff]  ;;  %vm2666_vm5 = vmor %vm2664_vm3, %vm2665_vm4 }
  0x2f   : > { %701 = vmatpush1.msra.mxu0 %v535_v13  ;;  %5446 = vmatpush1.msra.mxu1 %v535_v13  ;;  %v571_v13 = vld [vmem:[%s8145_s1 + $0x138] sm:$0xff]  ;;  %vm7069_vm7 = vmor %vm2666_vm5, %vm2667_vm6 }
  0x30   : > { %702 = vmatprep.subr.mxu0 %v8150_v1  ;;  %5415 = vmatprep.subr.mxu1 %v8150_v1 }
  0x31   : > { %703 = vmatpush1.msra.mxu0 %v534_v14  ;;  %5447 = vmatpush1.msra.mxu1 %v534_v14  ;;  %v245_v14 = vld [vmem:[%s5885_s11 + $0x41] sm:$0xff] }
  0x32   : > { %704 = vmatprep.subr.mxu0 %v8150_v1  ;;  %5416 = vmatprep.subr.mxu1 %v8150_v1 }
  0x33   : > { %705 = vmatpush1.msra.mxu0 %v533_v15  ;;  %5448 = vmatpush1.msra.mxu1 %v533_v15  ;;  %v266_v15 = vld [vmem:[%s5885_s11 + $0xe9] sm:$0xff] }
  0x34   : > { %706 = vmatprep.subr.mxu0 %v8150_v1  ;;  %5417 = vmatprep.subr.mxu1 %v8150_v1 }
  0x35   : > { %707 = vmatpush1.msra.mxu0 %v532_v16  ;;  %5449 = vmatpush1.msra.mxu1 %v532_v16  ;;  %v602_v16 = vld [vmem:[%s8145_s1 + $0x230] sm:$0xff] }
  0x36   : > { %708 = vmatprep.subr.mxu0 %v8150_v1  ;;  %5418 = vmatprep.subr.mxu1 %v8150_v1 }
  0x37   : > { %709 = vmatpush2.msra.mxu0 %v563_v17  ;;  %5450 = vmatpush2.msra.mxu1 %v563_v17  ;;  %v570_v17 = vld [vmem:[%s8145_s1 + $0x130] sm:$0xff] }
  0x38   : > { %710 = vmatprep.subr.mxu0 %v8150_v1  ;;  %5419 = vmatprep.subr.mxu1 %v8150_v1 }
  0x39   : > { %711 = vmatpush2.msra.mxu0 %v562_v18  ;;  %5451 = vmatpush2.msra.mxu1 %v562_v18  ;;  %v287_v18 = vld [vmem:[%s5885_s11 + $0x4a] sm:$0xff] }
  0x3a   : > { %712 = vmatprep.subr.mxu0 %v8150_v1  ;;  %5420 = vmatprep.subr.mxu1 %v8150_v1 }
  0x3b   : > { %713 = vmatpush2.msra.mxu0 %v561_v19  ;;  %5452 = vmatpush2.msra.mxu1 %v561_v19  ;;  %v308_v19 = vld [vmem:[%s5885_s11 + $0xf2] sm:$0xff] }
  0x3c   : > { %714 = vmatprep.subr.mxu0 %v8150_v1  ;;  %5421 = vmatprep.subr.mxu1 %v8150_v1 }
  0x3d   : > { %715 = vmatpush2.msra.mxu0 %v560_v20  ;;  %5453 = vmatpush2.msra.mxu1 %v560_v20  ;;  %v246_v20 = vld [vmem:[%s5885_s11 + $0x49] sm:$0xff] }
  0x3e   : > { %716 = vmatprep.subr.mxu0 %v8150_v1  ;;  %5422 = vmatprep.subr.mxu1 %v8150_v1 }
  0x3f   : > { %717 = vmatpush2.msra.mxu0 %v559_v21  ;;  %5454 = vmatpush2.msra.mxu1 %v559_v21  ;;  %v267_v21 = vld [vmem:[%s5885_s11 + $0xf1] sm:$0xff] }
  0x40   : > { %718 = vmatprep.subr.mxu0 %v8150_v1  ;;  %5423 = vmatprep.subr.mxu1 %v8150_v1 }
  0x41   : > { %719 = vmatpush2.msra.mxu0 %v558_v22  ;;  %5455 = vmatpush2.msra.mxu1 %v558_v22  ;;  %v569_v22 = vld [vmem:[%s8145_s1 + $0x128] sm:$0xff] }
  0x42   : > { %720 = vmatprep.subr.mxu0 %v8150_v1  ;;  %5424 = vmatprep.subr.mxu1 %v8150_v1 }
  0x43   : > { %721 = vmatpush2.msra.mxu0 %v557_v23  ;;  %5456 = vmatpush2.msra.mxu1 %v557_v23  ;;  %v601_v23 = vld [vmem:[%s8145_s1 + $0x228] sm:$0xff] }
  0x44   : > { %722 = vmatprep.subr.mxu0 %v8150_v1  ;;  %5425 = vmatprep.subr.mxu1 %v8150_v1 }
  0x45   : > { %723 = vmatpush2.msra.mxu0 %v556_v24  ;;  %5457 = vmatpush2.msra.mxu1 %v556_v24  ;;  %v600_v24 = vld [vmem:[%s8145_s1 + $0x220] sm:$0xff] }
  0x46   : > { %724 = vmatprep.subr.mxu0 %v8150_v1  ;;  %5426 = vmatprep.subr.mxu1 %v8150_v1 }
  0x47   : > { %725 = vmatpush2.msra.mxu0 %v555_v25  ;;  %5458 = vmatpush2.msra.mxu1 %v555_v25  ;;  %v288_v25 = vld [vmem:[%s5885_s11 + $0x52] sm:$0xff] }
  0x48   : > { %726 = vmatprep.subr.mxu0 %v8150_v1  ;;  %5427 = vmatprep.subr.mxu1 %v8150_v1 }
  0x49   : > { %727 = vmatpush2.msra.mxu0 %v554_v26  ;;  %5459 = vmatpush2.msra.mxu1 %v554_v26  ;;  %v309_v26 = vld [vmem:[%s5885_s11 + $0xfa] sm:$0xff] }
  0x4a   : > { %728 = vmatprep.subr.mxu0 %v8150_v1  ;;  %5428 = vmatprep.subr.mxu1 %v8150_v1 }
  0x4b   : > { %729 = vmatpush2.msra.mxu0 %v553_v27  ;;  %5460 = vmatpush2.msra.mxu1 %v553_v27  ;;  %v568_v27 = vld [vmem:[%s8145_s1 + $0x120] sm:$0xff] }
  0x4c   : > { %730 = vmatprep.subr.mxu0 %v8150_v1  ;;  %5429 = vmatprep.subr.mxu1 %v8150_v1 }
  0x4d   : > { %731 = vmatpush2.msra.mxu0 %v552_v28  ;;  %5461 = vmatpush2.msra.mxu1 %v552_v28  ;;  %v247_v28 = vld [vmem:[%s5885_s11 + $0x51] sm:$0xff] }
  0x4e   : > { %732 = vmatprep.subr.mxu0 %v8150_v1  ;;  %5430 = vmatprep.subr.mxu1 %v8150_v1 }
  0x4f   : > { %733 = vmatpush2.msra.mxu0 %v551_v29  ;;  %5462 = vmatpush2.msra.mxu1 %v551_v29  ;;  %v268_v29 = vld [vmem:[%s5885_s11 + $0xf9] sm:$0xff] }
  0x50   : > { %734 = vmatprep.subr.mxu0 %v8150_v1  ;;  %5431 = vmatprep.subr.mxu1 %v8150_v1 }
  0x51   : > { %735 = vmatpush2.msra.mxu0 %v550_v30  ;;  %5463 = vmatpush2.msra.mxu1 %v550_v30  ;;  %v567_v30 = vld [vmem:[%s8145_s1 + $0x118] sm:$0xff] }
  0x52   : > { %736 = vmatprep.subr.mxu0 %v8150_v1  ;;  %5432 = vmatprep.subr.mxu1 %v8150_v1 }
  0x53   : > { %737 = vmatpush2.msra.mxu0 %v549_v31  ;;  %5464 = vmatpush2.msra.mxu1 %v549_v31  ;;  %v599_v31 = vld [vmem:[%s8145_s1 + $0x218] sm:$0xff] }
  0x54   : > { %738 = vmatprep.subr.mxu0 %v8150_v1  ;;  %5433 = vmatprep.subr.mxu1 %v8150_v1 }
  0x55   : > { %739 = vmatpush2.msra.mxu0 %v548_v32  ;;  %5465 = vmatpush2.msra.mxu1 %v548_v32  ;;  %v289_v32 = vld [vmem:[%s5885_s11 + $0x5a] sm:$0xff] }
  0x56   : > { %740 = vmatprep.mubr.f32.mxu0 %v280_v33  ;;  %843 = vmatprep.mubr.f32.mxu1 %v301_v34  ;;  %v310_v33 = vld [vmem:[%s5885_s11 + $0x102] sm:$0xff]  ;;  %v248_v34 = vld [vmem:[%s5885_s11 + $0x59] sm:$0xff] }
  0x57   : > { %741 = vmatmul.mubr.f32.vlgmr.msra.gmra.mxu0 %v239_v35  ;;  %844 = vmatmul.mubr.f32.vlgmr.msra.gmra.mxu1 %v260_v36  ;;  %v269_v35 = vld [vmem:[%s5885_s11 + $0x101] sm:$0xff]  ;;  %v566_v36 = vld [vmem:[%s8145_s1 + $0x110] sm:$0xff] }
  0x58   : > { %1208 = vmatprep.subr.mxu0 %v8150_v1  ;;  %942 = vmatprep.subr.mxu1 %v8150_v1 }
  0x59   : > { %1209 = vmatpush1.msra.mxu0 %v611_v37  ;;  %744 = vmatprep.mubr.f32.mxu0 %v281_v38  ;;  %v598_v37 = vld [vmem:[%s8145_s1 + $0x210] sm:$0xff]  ;;  %v565_v38 = vld [vmem:[%s8145_s1 + $0x108] sm:$0xff] }
  0x5a   : > { %848 = vmatprep.mubr.f32.mxu1 %v302_v39  ;;  %943 = vmatpush1.msra.mxu1 %v579_v40  ;;  %v597_v39 = vld [vmem:[%s8145_s1 + $0x208] sm:$0xff] }
  0x5b   : > { %1210 = vmatprep.subr.mxu0 %v8150_v1  ;;  %745 = vmatmul.mubr.f32.gmra.mxu0 %v240_v41  ;;  %v290_v40 = vld [vmem:[%s5885_s11 + $0x62] sm:$0xff]  ;;  %v311_v41 = vld [vmem:[%s5885_s11 + $0x10a] sm:$0xff] }
  0x5c   : > { %849 = vmatmul.mubr.f32.gmra.mxu1 %v261_v42  ;;  %1211 = vmatpush1.msra.mxu0 %v610_v43  ;;  %v249_v42 = vld [vmem:[%s5885_s11 + $0x61] sm:$0xff]  ;;  %v270_v43 = vld [vmem:[%s5885_s11 + $0x109] sm:$0xff] }
  0x5d   : > { %944 = vmatprep.subr.mxu1 %v8150_v1  ;;  %1212 = vmatprep.subr.mxu0 %v8150_v1 }
  0x5e   : > { %945 = vmatpush1.msra.mxu1 %v578_v44  ;;  %748 = vmatprep.mubr.f32.mxu0 %v282_v45  ;;  %v564_v44 = vld [vmem:[%s8145_s1 + $0x100] sm:$0xff] }
  0x5f   : > { %853 = vmatprep.mubr.f32.mxu1 %v303_v46  ;;  %946 = vmatprep.subr.mxu1 %v8150_v1  ;;  %v596_v45 = vld [vmem:[%s8145_s1 + $0x200] sm:$0xff]  ;;  %v291_v46 = vld [vmem:[%s5885_s11 + $0x6a] sm:$0xff] }
  0x60   : > { %1213 = vmatpush1.msra.mxu0 %v609_v47  ;;  %854 = vmatmul.mubr.f32.gmra.mxu1 %v262_v48  ;;  %v312_v47 = vld [vmem:[%s5885_s11 + $0x112] sm:$0xff] }
  0x61   : > { %749 = vmatmul.mubr.f32.gmra.mxu0 %v241_v49  ;;  %947 = vmatpush1.msra.mxu1 %v577_v50  ;;  %v595_v48 = vld [vmem:[%s8145_s1 + $0x1f8] sm:$0xff]  ;;  %v250_v50 = vld [vmem:[%s5885_s11 + $0x69] sm:$0xff] }
  0x62   : > { %1214 = vmatprep.subr.mxu0 %v8150_v1  ;;  %948 = vmatprep.subr.mxu1 %v8150_v1  ;;  %v627_v49 = vld [vmem:[%s8145_s1 + $0x2f8] sm:$0xff] }
  0x63   : > { %1215 = vmatpush1.msra.mxu0 %v608_v51  ;;  %753 = vmatprep.mubr.f32.mxu0 %v283_v52  ;;  %v271_v51 = vld [vmem:[%s5885_s11 + $0x111] sm:$0xff] }
  0x64   : > { %858 = vmatprep.mubr.f32.mxu1 %v304_v53  ;;  %949 = vmatpush1.msra.mxu1 %v576_v54  ;;  %v594_v52 = vld [vmem:[%s8145_s1 + $0x1f0] sm:$0xff] }
  0x65   : > { %1216 = vmatprep.subr.mxu0 %v8150_v1  ;;  %754 = vmatmul.mubr.f32.gmra.mxu0 %v242_v55  ;;  %v626_v53 = vld [vmem:[%s8145_s1 + $0x2f0] sm:$0xff]  ;;  %v313_v55 = vld [vmem:[%s5885_s11 + $0x11a] sm:$0xff] }
  0x66   : > { %859 = vmatmul.mubr.f32.gmra.mxu1 %v263_v56  ;;  %950 = vmatprep.subr.mxu1 %v8150_v1  ;;  %v292_v54 = vld [vmem:[%s5885_s11 + $0x72] sm:$0xff] }
  0x67   : > { %1217 = vmatpush1.msra.mxu0 %v607_v57  ;;  %951 = vmatpush1.msra.mxu1 %v575_v58  ;;  %v251_v56 = vld [vmem:[%s5885_s11 + $0x71] sm:$0xff]  ;;  %v272_v57 = vld [vmem:[%s5885_s11 + $0x119] sm:$0xff]  ;;  %v593_v58 = vld [vmem:[%s8145_s1 + $0x1e8] sm:$0xff] }
  0x68   : > { %1218 = vmatprep.subr.mxu0 %v8150_v1  ;;  %758 = vmatprep.mubr.f32.mxu0 %v284_v59  ;;  %v625_v59 = vld [vmem:[%s8145_s1 + $0x2e8] sm:$0xff] }
  0x69   : > { %863 = vmatprep.mubr.f32.mxu1 %v305_v60  ;;  %952 = vmatprep.subr.mxu1 %v8150_v1  ;;  %v293_v60 = vld [vmem:[%s5885_s11 + $0x7a] sm:$0xff] }
  0x6a   : > { %1219 = vmatpush1.msra.mxu0 %v606_v61  ;;  %864 = vmatmul.mubr.f32.gmra.mxu1 %v264_v62  ;;  %v314_v61 = vld [vmem:[%s5885_s11 + $0x122] sm:$0xff] }
  0x6b   : > { %759 = vmatmul.mubr.f32.gmra.mxu0 %v243_v63  ;;  %953 = vmatpush1.msra.mxu1 %v574_v0  ;;  %v592_v62 = vld [vmem:[%s8145_s1 + $0x1e0] sm:$0xff] }
  0x6c   : > { %1220 = vmatprep.subr.mxu0 %v8150_v1  ;;  %954 = vmatprep.subr.mxu1 %v8150_v1  ;;  %v624_v63 = vld [vmem:[%s8145_s1 + $0x2e0] sm:$0xff] }
  0x6d   : > { %1221 = vmatpush1.msra.mxu0 %v605_v2  ;;  %955 = vmatpush1.msra.mxu1 %v573_v3  ;;  %v252_v0 = vld [vmem:[%s5885_s11 + $0x79] sm:$0xff]  ;;  %v273_v2 = vld [vmem:[%s5885_s11 + $0x121] sm:$0xff] }
  0x6e   : > { %763 = vmatprep.mubr.f32.mxu0 %v285_v4  ;;  %868 = vmatprep.mubr.f32.mxu1 %v306_v5  ;;  %v591_v3 = vld [vmem:[%s8145_s1 + $0x1d8] sm:$0xff]  ;;  %v294_v5 = vld [vmem:[%s5885_s11 + $0x82] sm:$0xff] }
  0x6f   : > { %1222 = vmatprep.subr.mxu0 %v8150_v1  ;;  %764 = vmatmul.mubr.f32.gmra.mxu0 %v244_v6  ;;  %v623_v4 = vld [vmem:[%s8145_s1 + $0x2d8] sm:$0xff]  ;;  %v315_v6 = vld [vmem:[%s5885_s11 + $0x12a] sm:$0xff] }
  0x70   : > { %869 = vmatmul.mubr.f32.gmra.mxu1 %v265_v7  ;;  %956 = vmatprep.subr.mxu1 %v8150_v1  ;;  %v253_v7 = vld [vmem:[%s5885_s11 + $0x81] sm:$0xff] }
  0x71   : > { %1223 = vmatpush1.msra.mxu0 %v604_v8  ;;  %957 = vmatpush1.msra.mxu1 %v572_v9  ;;  %v274_v8 = vld [vmem:[%s5885_s11 + $0x129] sm:$0xff] }
  0x72   : > { %1224 = vmatprep.subr.mxu0 %v8150_v1  ;;  %958 = vmatprep.subr.mxu1 %v8150_v1  ;;  %v590_v9 = vld [vmem:[%s8145_s1 + $0x1d0] sm:$0xff] }
  0x73   : > { %1225 = vmatpush1.msra.mxu0 %v603_v10  ;;  %768 = vmatprep.mubr.f32.mxu0 %v286_v11  ;;  %v622_v10 = vld [vmem:[%s8145_s1 + $0x2d0] sm:$0xff]  ;;  %v589_v11 = vld [vmem:[%s8145_s1 + $0x1c8] sm:$0xff] }
  0x74   : > { %873 = vmatprep.mubr.f32.mxu1 %v307_v12  ;;  %959 = vmatpush1.msra.mxu1 %v571_v13  ;;  %v295_v12 = vld [vmem:[%s5885_s11 + $0x8a] sm:$0xff]  ;;  %v316_v13 = vld [vmem:[%s5885_s11 + $0x132] sm:$0xff] }
  0x75   : > { %769 = vmatmul.mubr.f32.gmra.mxu0 %v245_v14  ;;  %874 = vmatmul.mubr.f32.gmra.mxu1 %v266_v15  ;;  %v621_v14 = vld [vmem:[%s8145_s1 + $0x2c8] sm:$0xff] }
  0x76   : > { %1226 = vmatprep.subr.mxu0 %v8150_v1  ;;  %960 = vmatprep.subr.mxu1 %v8150_v1  ;;  %v254_v15 = vld [vmem:[%s5885_s11 + $0x89] sm:$0xff] }
  0x77   : > { %1227 = vmatpush1.msra.mxu0 %v602_v16  ;;  %961 = vmatpush1.msra.mxu1 %v570_v17  ;;  %v275_v16 = vld [vmem:[%s5885_s11 + $0x131] sm:$0xff]  ;;  %v588_v17 = vld [vmem:[%s8145_s1 + $0x1c0] sm:$0xff] }
  0x78   : > { %773 = vmatprep.mubr.f32.mxu0 %v287_v18  ;;  %878 = vmatprep.mubr.f32.mxu1 %v308_v19  ;;  %v620_v18 = vld [vmem:[%s8145_s1 + $0x2c0] sm:$0xff]  ;;  %v296_v19 = vld [vmem:[%s5885_s11 + $0x92] sm:$0xff] }
  0x79   : > { %962 = vmatprep.subr.mxu1 %v8150_v1  ;;  %1228 = vmatprep.subr.mxu0 %v8150_v1 }
  0x7a   : > { %774 = vmatmul.mubr.f32.gmra.mxu0 %v246_v20  ;;  %879 = vmatmul.mubr.f32.gmra.mxu1 %v267_v21  ;;  %v317_v20 = vld [vmem:[%s5885_s11 + $0x13a] sm:$0xff] }
  0x7b   : > { %963 = vmatpush1.msra.mxu1 %v569_v22  ;;  %1229 = vmatpush1.msra.mxu0 %v601_v23  ;;  %v587_v21 = vld [vmem:[%s8145_s1 + $0x1b8] sm:$0xff] }
  0x7c   : > { %1230 = vmatprep.subr.mxu0 %v8150_v1  ;;  %964 = vmatprep.subr.mxu1 %v8150_v1  ;;  %v255_v22 = vld [vmem:[%s5885_s11 + $0x91] sm:$0xff]  ;;  %v276_v23 = vld [vmem:[%s5885_s11 + $0x139] sm:$0xff] }
  0x7d   : > { %1231 = vmatpush1.msra.mxu0 %v600_v24  ;;  %778 = vmatprep.mubr.f32.mxu0 %v288_v25  ;;  %v619_v24 = vld [vmem:[%s8145_s1 + $0x2b8] sm:$0xff]  ;;  %v586_v25 = vld [vmem:[%s8145_s1 + $0x1b0] sm:$0xff] }
  0x7e   : > { %883 = vmatprep.mubr.f32.mxu1 %v309_v26  ;;  %965 = vmatpush1.msra.mxu1 %v568_v27  ;;  %v297_v26 = vld [vmem:[%s5885_s11 + $0x9a] sm:$0xff]  ;;  %v318_v27 = vld [vmem:[%s5885_s11 + $0x142] sm:$0xff] }
  0x7f   : > { %779 = vmatmul.mubr.f32.gmra.mxu0 %v247_v28  ;;  %884 = vmatmul.mubr.f32.gmra.mxu1 %v268_v29  ;;  %v618_v28 = vld [vmem:[%s8145_s1 + $0x2b0] sm:$0xff]  ;;  %v277_v29 = vld [vmem:[%s5885_s11 + $0x141] sm:$0xff] }
  0x80   : > { %966 = vmatprep.subr.mxu1 %v8150_v1  ;;  %1232 = vmatprep.subr.mxu0 %v8150_v1 }
  0x81   : > { %967 = vmatpush1.msra.mxu1 %v567_v30  ;;  %1233 = vmatpush1.msra.mxu0 %v599_v31  ;;  %v256_v30 = vld [vmem:[%s5885_s11 + $0x99] sm:$0xff]  ;;  %v585_v31 = vld [vmem:[%s8145_s1 + $0x1a8] sm:$0xff] }
  0x82   : > { %783 = vmatprep.mubr.f32.mxu0 %v289_v32  ;;  %888 = vmatprep.mubr.f32.mxu1 %v310_v33  ;;  %v617_v32 = vld [vmem:[%s8145_s1 + $0x2a8] sm:$0xff] }
  0x83   : > { %968 = vmatprep.subr.mxu1 %v8150_v1  ;;  %1234 = vmatprep.subr.mxu0 %v8150_v1  ;;  %v298_v33 = vld [vmem:[%s5885_s11 + $0xa2] sm:$0xff] }
  0x84   : > { %784 = vmatmul.mubr.f32.gmra.mxu0 %v248_v34  ;;  %889 = vmatmul.mubr.f32.gmra.mxu1 %v269_v35  ;;  %v319_v34 = vld [vmem:[%s5885_s11 + $0x14a] sm:$0xff]  ;;  %v584_v35 = vld [vmem:[%s8145_s1 + $0x1a0] sm:$0xff] }
  0x85   : > { %969 = vmatpush1.msra.mxu1 %v566_v36  ;;  %1235 = vmatpush1.msra.mxu0 %v598_v37  ;;  %v257_v36 = vld [vmem:[%s5885_s11 + $0xa1] sm:$0xff]  ;;  %v278_v37 = vld [vmem:[%s5885_s11 + $0x149] sm:$0xff] }
  0x86   : > { %970 = vmatprep.subr.mxu1 %v8150_v1  ;;  %1236 = vmatprep.subr.mxu0 %v8150_v1 }
  0x87   : > { %971 = vmatpush1.msra.mxu1 %v565_v38  ;;  %1237 = vmatpush1.msra.mxu0 %v597_v39  ;;  %v616_v38 = vld [vmem:[%s8145_s1 + $0x2a0] sm:$0xff]  ;;  %v583_v39 = vld [vmem:[%s8145_s1 + $0x198] sm:$0xff] }
  0x88   : > { %788 = vmatprep.mubr.f32.mxu0 %v290_v40  ;;  %893 = vmatprep.mubr.f32.mxu1 %v311_v41  ;;  %v299_v40 = vld [vmem:[%s5885_s11 + $0xaa] sm:$0xff]  ;;  %v320_v41 = vld [vmem:[%s5885_s11 + $0x152] sm:$0xf] }
  0x89   : > { %789 = vmatmul.mubr.f32.gmra.mxu0 %v249_v42  ;;  %894 = vmatmul.mubr.f32.gmra.mxu1 %v270_v43  ;;  %v582_v42 = vld [vmem:[%s8145_s1 + $0x190] sm:$0xff]  ;;  %v615_v43 = vld [vmem:[%s8145_s1 + $0x298] sm:$0xff] }
  0x8a   : > { %972 = vmatprep.subr.mxu1 %v8150_v1  ;;  %1238 = vmatprep.subr.mxu0 %v8150_v1 }
  0x8b   : > { %973 = vmatpush1.msra.mxu1 %v564_v44  ;;  %1239 = vmatpush1.msra.mxu0 %v596_v45  ;;  %v258_v44 = vld [vmem:[%s5885_s11 + $0xa9] sm:$0xff]  ;;  %v279_v45 = vld [vmem:[%s5885_s11 + $0x151] sm:$0xf] }
  0x8c   : > { %974 = vmatprep.subr.mxu1 %v8150_v1  ;;  %1240 = vmatprep.subr.mxu0 %v8150_v1 }
  0x8d   : > { %793 = vmatprep.mubr.f32.mxu0 %v291_v46  ;;  %898 = vmatprep.mubr.f32.mxu1 %v312_v47  ;;  %v581_v46 = vld [vmem:[%s8145_s1 + $0x188] sm:$0xff]  ;;  %v614_v47 = vld [vmem:[%s8145_s1 + $0x290] sm:$0xff] }
  0x8e   : > { %975 = vmatpush2.msra.mxu1 %v595_v48  ;;  %1241 = vmatpush2.msra.mxu0 %v627_v49  ;;  %v300_v48 = vld [vmem:[%s5885_s11 + $0xb2] sm:$0xff]  ;;  %v580_v49 = vld [vmem:[%s8145_s1 + $0x180] sm:$0xff] }
  0x8f   : > { %794 = vmatmul.mubr.f32.gmra.mxu0 %v250_v50  ;;  %899 = vmatmul.mubr.f32.gmra.mxu1 %v271_v51  ;;  %v323_v50 = vld [vmem:[%s5885_s11 + $0x23] sm:$0xff]  ;;  %v259_v51 = vld [vmem:[%s5885_s11 + $0xb1] sm:$0xff] }
  0x90   : > { %976 = vmatprep.subr.mxu1 %v8150_v1  ;;  %1242 = vmatprep.subr.mxu0 %v8150_v1 }
  0x91   : > { %977 = vmatpush2.msra.mxu1 %v594_v52  ;;  %1243 = vmatpush2.msra.mxu0 %v626_v53  ;;  %v321_v52 = vld [vmem:[%s5885_s11 + $0x13] sm:$0xff]  ;;  %v613_v53 = vld [vmem:[%s8145_s1 + $0x288] sm:$0xff] }
  0x92   : > { %798 = vmatprep.mubr.f32.mxu0 %v292_v54  ;;  %903 = vmatprep.mubr.f32.mxu1 %v313_v55  ;;  %v324_v54 = vld [vmem:[%s5885_s11 + $0x2b] sm:$0xff]  ;;  %v612_v55 = vld [vmem:[%s8145_s1 + $0x280] sm:$0xff] }
  0x93   : > { %978 = vmatprep.subr.mxu1 %v8150_v1  ;;  %799 = vmatmul.mubr.f32.gmra.mxu0 %v251_v56  ;;  %v406_v56 = vld [vmem:[%s5885_s11 + $0x25] sm:$0xff] }
  0x94   : > { %904 = vmatmul.mubr.f32.gmra.mxu1 %v272_v57  ;;  %1244 = vmatprep.subr.mxu0 %v8150_v1  ;;  %v643_v57 = vld [vmem:[%s8145_s1 + $0x378] sm:$0xff] }
  0x95   : > { %979 = vmatpush2.msra.mxu1 %v593_v58  ;;  %1245 = vmatpush2.msra.mxu0 %v625_v59  ;;  %v322_v58 = vld [vmem:[%s5885_s11 + $0x1b] sm:$0xff]  ;;  %v365_v59 = vld [vmem:[%s5885_s11 + $0x24] sm:$0xff] }
  0x96   : > { %980 = vmatprep.subr.mxu1 %v8150_v1  ;;  %1246 = vmatprep.subr.mxu0 %v8150_v1 }
  0x97   : > { %803 = vmatprep.mubr.f32.mxu0 %v293_v60  ;;  %908 = vmatprep.mubr.f32.mxu1 %v314_v61  ;;  %v325_v60 = vld [vmem:[%s5885_s11 + $0x33] sm:$0xff] }
  0x98   : > { %981 = vmatpush2.msra.mxu1 %v592_v62  ;;  %1247 = vmatpush2.msra.mxu0 %v624_v63  ;;  %v675_v61 = vld [vmem:[%s8145_s1 + $0x478] sm:$0xff]  ;;  %v407_v62 = vld [vmem:[%s5885_s11 + $0x2d] sm:$0xff] }
  0x99   : > { %804 = vmatmul.mubr.f32.gmra.mxu0 %v252_v0  ;;  %909 = vmatmul.mubr.f32.gmra.mxu1 %v273_v2  ;;  %v366_v63 = vld [vmem:[%s5885_s11 + $0x2c] sm:$0xff]  ;;  %v326_v2 = vld [vmem:[%s5885_s11 + $0x3b] sm:$0xff] }
  0x9a   : > { %982 = vmatprep.subr.mxu1 %v8150_v1  ;;  %1248 = vmatprep.subr.mxu0 %v8150_v1  ;;  %v642_v0 = vld [vmem:[%s8145_s1 + $0x370] sm:$0xff] }
  0x9b   : > { %983 = vmatpush2.msra.mxu1 %v591_v3  ;;  %1249 = vmatpush2.msra.mxu0 %v623_v4  ;;  %v6255_v3 = vld [vmem:[%s5885_s11 + $0x35] sm:$0xff]  ;;  %v641_v4 = vld [vmem:[%s8145_s1 + $0x368] sm:$0xff] }
  0x9c   : > { %808 = vmatprep.mubr.f32.mxu0 %v294_v5  ;;  %913 = vmatprep.mubr.f32.mxu1 %v315_v6  ;;  %v674_v5 = vld [vmem:[%s8145_s1 + $0x470] sm:$0xff] }
  0x9d   : > { %984 = vmatprep.subr.mxu1 %v8150_v1  ;;  %809 = vmatmul.mubr.f32.gmra.mxu0 %v253_v7  ;;  %v367_v6 = vld [vmem:[%s5885_s11 + $0x34] sm:$0xff]  ;;  %v327_v7 = vld [vmem:[%s5885_s11 + $0x43] sm:$0xff] }
  0x9e   : > { %914 = vmatmul.mubr.f32.gmra.mxu1 %v274_v8  ;;  %1250 = vmatprep.subr.mxu0 %v8150_v1  ;;  %v6269_v8 = vld [vmem:[%s5885_s11 + $0x3d] sm:$0xff] }
  0x9f   : > { %985 = vmatpush2.msra.mxu1 %v590_v9  ;;  %1251 = vmatpush2.msra.mxu0 %v622_v10  ;;  %v640_v9 = vld [vmem:[%s8145_s1 + $0x360] sm:$0xff]  ;;  %v673_v10 = vld [vmem:[%s8145_s1 + $0x468] sm:$0xff] }
  0xa0   : > { %986 = vmatprep.subr.mxu1 %v8150_v1  ;;  %1252 = vmatprep.subr.mxu0 %v8150_v1 }
  0xa1   : > { %987 = vmatpush2.msra.mxu1 %v589_v11  ;;  %813 = vmatprep.mubr.f32.mxu0 %v295_v12  ;;  %v368_v11 = vld [vmem:[%s5885_s11 + $0x3c] sm:$0xff]  ;;  %v328_v12 = vld [vmem:[%s5885_s11 + $0x4b] sm:$0xff] }
  0xa2   : > { %918 = vmatprep.mubr.f32.mxu1 %v316_v13  ;;  %1253 = vmatpush2.msra.mxu0 %v621_v14  ;;  %v6282_v13 = vld [vmem:[%s5885_s11 + $0x45] sm:$0xff]  ;;  %v639_v14 = vld [vmem:[%s8145_s1 + $0x358] sm:$0xff] }
  0xa3   : > { %814 = vmatmul.mubr.f32.gmra.mxu0 %v254_v15  ;;  %919 = vmatmul.mubr.f32.gmra.mxu1 %v275_v16  ;;  %v672_v15 = vld [vmem:[%s8145_s1 + $0x460] sm:$0xff] }
  0xa4   : > { %988 = vmatprep.subr.mxu1 %v8150_v1  ;;  %1254 = vmatprep.subr.mxu0 %v8150_v1  ;;  %v369_v16 = vld [vmem:[%s5885_s11 + $0x44] sm:$0xff] }
  0xa5   : > { %989 = vmatpush2.msra.mxu1 %v588_v17  ;;  %1255 = vmatpush2.msra.mxu0 %v620_v18  ;;  %v329_v17 = vld [vmem:[%s5885_s11 + $0x53] sm:$0xff] }
  0xa6   : > { %990 = vmatprep.subr.mxu1 %v8150_v1  ;;  %818 = vmatprep.mubr.f32.mxu0 %v296_v19  ;;  %v6295_v18 = vld [vmem:[%s5885_s11 + $0x4d] sm:$0xff] }
  0xa7   : > { %923 = vmatprep.mubr.f32.mxu1 %v317_v20  ;;  %991 = vmatpush2.msra.mxu1 %v587_v21  ;;  %v638_v19 = vld [vmem:[%s8145_s1 + $0x350] sm:$0xff]  ;;  %v671_v20 = vld [vmem:[%s8145_s1 + $0x458] sm:$0xff] }
  0xa8   : > { %1256 = vmatprep.subr.mxu0 %v8150_v1  ;;  %819 = vmatmul.mubr.f32.gmra.mxu0 %v255_v22  ;;  %v370_v21 = vld [vmem:[%s5885_s11 + $0x4c] sm:$0xff]  ;;  %v330_v22 = vld [vmem:[%s5885_s11 + $0x5b] sm:$0xff] }
  0xa9   : > { %924 = vmatmul.mubr.f32.gmra.mxu1 %v276_v23  ;;  %1257 = vmatpush2.msra.mxu0 %v619_v24  ;;  %v6309_v23 = vld [vmem:[%s5885_s11 + $0x55] sm:$0xff]  ;;  %v637_v24 = vld [vmem:[%s8145_s1 + $0x348] sm:$0xff] }
  0xaa   : > { %992 = vmatprep.subr.mxu1 %v8150_v1  ;;  %1258 = vmatprep.subr.mxu0 %v8150_v1 }
  0xab   : > { %993 = vmatpush2.msra.mxu1 %v586_v25  ;;  %823 = vmatprep.mubr.f32.mxu0 %v297_v26  ;;  %v670_v25 = vld [vmem:[%s8145_s1 + $0x450] sm:$0xff] }
  0xac   : > { %928 = vmatprep.mubr.f32.mxu1 %v318_v27  ;;  %994 = vmatprep.subr.mxu1 %v8150_v1  ;;  %v371_v26 = vld [vmem:[%s5885_s11 + $0x54] sm:$0xff]  ;;  %v331_v27 = vld [vmem:[%s5885_s11 + $0x63] sm:$0xff] }
  0xad   : > { %1259 = vmatpush2.msra.mxu0 %v618_v28  ;;  %929 = vmatmul.mubr.f32.gmra.mxu1 %v277_v29  ;;  %v6323_v28 = vld [vmem:[%s5885_s11 + $0x5d] sm:$0xff] }
  0xae   : > { %824 = vmatmul.mubr.f32.gmra.mxu0 %v256_v30  ;;  %995 = vmatpush2.msra.mxu1 %v585_v31  ;;  %v636_v29 = vld [vmem:[%s8145_s1 + $0x340] sm:$0xff]  ;;  %v669_v30 = vld [vmem:[%s8145_s1 + $0x448] sm:$0xff] }
  0xaf   : > { %1260 = vmatprep.subr.mxu0 %v8150_v1  ;;  %996 = vmatprep.subr.mxu1 %v8150_v1  ;;  %v372_v31 = vld [vmem:[%s5885_s11 + $0x5c] sm:$0xff] }
  0xb0   : > { %1261 = vmatpush2.msra.mxu0 %v617_v32  ;;  %828 = vmatprep.mubr.f32.mxu0 %v298_v33  ;;  %v332_v32 = vld [vmem:[%s5885_s11 + $0x6b] sm:$0xff] }
  0xb1   : > { %933 = vmatprep.mubr.f32.mxu1 %v319_v34  ;;  %997 = vmatpush2.msra.mxu1 %v584_v35  ;;  %v6337_v33 = vld [vmem:[%s5885_s11 + $0x65] sm:$0xff]  ;;  %v635_v34 = vld [vmem:[%s8145_s1 + $0x338] sm:$0xff] }
  0xb2   : > { %1262 = vmatprep.subr.mxu0 %v8150_v1  ;;  %829 = vmatmul.mubr.f32.gmra.mxu0 %v257_v36  ;;  %v668_v35 = vld [vmem:[%s8145_s1 + $0x440] sm:$0xff] }
  0xb3   : > { %934 = vmatmul.mubr.f32.gmra.mxu1 %v278_v37  ;;  %998 = vmatprep.subr.mxu1 %v8150_v1  ;;  %v373_v36 = vld [vmem:[%s5885_s11 + $0x64] sm:$0xff]  ;;  %v333_v37 = vld [vmem:[%s5885_s11 + $0x73] sm:$0xff] }
  0xb4   : > { %1263 = vmatpush2.msra.mxu0 %v616_v38  ;;  %999 = vmatpush2.msra.mxu1 %v583_v39  ;;  %v6351_v38 = vld [vmem:[%s5885_s11 + $0x6d] sm:$0xff] }
  0xb5   : > { %1000 = vmatprep.subr.mxu1 %v8150_v1  ;;  %1264 = vmatprep.subr.mxu0 %v8150_v1  ;;  %v634_v39 = vld [vmem:[%s8145_s1 + $0x330] sm:$0xff] }
  0xb6   : > { %833 = vmatprep.mubr.f32.mxu0 %v299_v40  ;;  %937 = vmatprep.mubr.f32.mxu1 %v320_v41  ;;  %v667_v40 = vld [vmem:[%s8145_s1 + $0x438] sm:$0xff]  ;;  %v374_v41 = vld [vmem:[%s5885_s11 + $0x6c] sm:$0xff] }
  0xb7   : > { %1001 = vmatpush2.msra.mxu1 %v582_v42  ;;  %1265 = vmatpush2.msra.mxu0 %v615_v43  ;;  %v334_v42 = vld [vmem:[%s5885_s11 + $0x7b] sm:$0xff] }
  0xb8   : > { %834 = vmatmul.mubr.f32.gmra.mxu0 %v258_v44  ;;  %938 = vmatmul.mubr.f32.gmra.mxu1 %v279_v45  ;;  %v6365_v43 = vld [vmem:[%s5885_s11 + $0x75] sm:$0xff]  ;;  %v633_v44 = vld [vmem:[%s8145_s1 + $0x328] sm:$0xff] }
  0xb9   : > { %1002 = vmatprep.subr.mxu1 %v8150_v1  ;;  %1266 = vmatprep.subr.mxu0 %v8150_v1  ;;  %v666_v45 = vld [vmem:[%s8145_s1 + $0x430] sm:$0xff] }
  0xba   : > { %1003 = vmatpush2.msra.mxu1 %v581_v46  ;;  %1267 = vmatpush2.msra.mxu0 %v614_v47  ;;  %v375_v46 = vld [vmem:[%s5885_s11 + $0x74] sm:$0xff]  ;;  %v335_v47 = vld [vmem:[%s5885_s11 + $0x83] sm:$0xff] }
  0xbb   : > { %1004 = vmatprep.subr.mxu1 %v8150_v1  ;;  %838 = vmatprep.mubr.f32.mxu0 %v300_v48  ;;  %v6379_v48 = vld [vmem:[%s5885_s11 + $0x7d] sm:$0xff] }
  0xbc   : > { %1005 = vmatpush2.msra.mxu1 %v580_v49  ;;  %1006 = vmatprep.mubr.f32.mxu1 %v323_v50  ;;  %v632_v49 = vld [vmem:[%s8145_s1 + $0x320] sm:$0xff] }
  0xbd   : > { %1268 = vmatprep.subr.mxu0 %v8150_v1  ;;  %839 = vmatmul.mubr.f32.gmra.mxu0 %v259_v51  ;;  %v376_v51 = vld [vmem:[%s5885_s11 + $0x7c] sm:$0xff] }
  0xbe   : > { %1007 = vmatmul.mubr.f32.vlgmr.msra.gmra.mxu1 %v321_v52  ;;  %1269 = vmatpush2.msra.mxu0 %v613_v53  ;;  %v336_v52 = vld [vmem:[%s5885_s11 + $0x8b] sm:$0xff] }
  0xbf   : > { %1270 = vmatprep.subr.mxu0 %v8150_v1  ;;  %1474 = vmatprep.subr.mxu1 %v8150_v1  ;;  %v6393_v53 = vld [vmem:[%s5885_s11 + $0x85] sm:$0xff] }
  0xc0   : > { %1010 = vmatprep.mubr.f32.mxu1 %v324_v54  ;;  %1271 = vmatpush2.msra.mxu0 %v612_v55  ;;  %v664_v55 = vld [vmem:[%s8145_s1 + $0x420] sm:$0xff] }
  0xc1   : > { %1272 = vmatprep.mubr.f32.mxu0 %v406_v56  ;;  %1475 = vmatpush1.msra.mxu1 %v643_v57  ;;  %v377_v56 = vld [vmem:[%s5885_s11 + $0x84] sm:$0xff]  ;;  %v337_v57 = vld [vmem:[%s5885_s11 + $0x93] sm:$0xff] }
  0xc2   : > { %1011 = vmatmul.mubr.f32.gmra.mxu1 %v322_v58  ;;  %1273 = vmatmul.mubr.f32.vlgmr.msra.gmra.mxu0 %v365_v59  ;;  %v6407_v58 = vld [vmem:[%s5885_s11 + $0x8d] sm:$0xff] }
  0xc3   : > { %5247 = vmatprep.subr.mxu0 %v8150_v1  ;;  %1014 = vmatprep.mubr.f32.mxu1 %v325_v60  ;;  %v630_v59 = vld [vmem:[%s8145_s1 + $0x310] sm:$0xff] }
  0xc4   : > { %5248 = vmatpush3.msra.mxu0 %v675_v61  ;;  %1276 = vmatprep.mubr.f32.mxu0 %v407_v62  ;;  %v378_v61 = vld [vmem:[%s5885_s11 + $0x8c] sm:$0xff]  ;;  %v338_v62 = vld [vmem:[%s5885_s11 + $0x9b] sm:$0xff] }
  0xc5   : > { %1476 = vmatprep.subr.mxu1 %v8150_v1  ;;  %5249 = vmatprep.subr.mxu0 %v8150_v1 }
  0xc6   : > { %1015 = vmatmul.mubr.f32.gmra.mxu1 %v323_v50  ;;  %1277 = vmatmul.mubr.f32.gmra.mxu0 %v366_v63  ;;  %v665_v50 = vld [vmem:[%s8145_s1 + $0x428] sm:$0xff]  ;;  %v6421_v63 = vld [vmem:[%s5885_s11 + $0x95] sm:$0xff] }
  0xc7   : > { %1477 = vmatpush1.msra.mxu1 %v642_v0  ;;  %1019 = vmatprep.mubr.f32.mxu1 %v326_v2  ;;  %v629_v0 = vld [vmem:[%s8145_s1 + $0x308] sm:$0xff] }
  0xc8   : > { %1280 = vmatprep.mubr.f32.mxu0 %v6255_v3  ;;  %1478 = vmatprep.subr.mxu1 %v8150_v1 }
  0xc9   : > { %1479 = vmatpush1.msra.mxu1 %v641_v4  ;;  %5250 = vmatpush3.msra.mxu0 %v674_v5  ;;  %v379_v4 = vld [vmem:[%s5885_s11 + $0x94] sm:$0xff]  ;;  %v339_v5 = vld [vmem:[%s5885_s11 + $0xa3] sm:$0xff] }
  0xca   : > { %1020 = vmatmul.mubr.f32.gmra.mxu1 %v324_v54  ;;  %1281 = vmatmul.mubr.f32.gmra.mxu0 %v367_v6  ;;  %v631_v54 = vld [vmem:[%s8145_s1 + $0x318] sm:$0xff] }
  0xcb   : > { %1024 = vmatprep.mubr.f32.mxu1 %v327_v7  ;;  %1285 = vmatprep.mubr.f32.mxu0 %v6269_v8  ;;  %v6435_v6 = vld [vmem:[%s5885_s11 + $0x9d] sm:$0xff] }
  0xcc   : > { %1480 = vmatprep.subr.mxu1 %v8150_v1  ;;  %5251 = vmatprep.subr.mxu0 %v8150_v1 }
  0xcd   : > { %1481 = vmatpush1.msra.mxu1 %v640_v9  ;;  %5252 = vmatpush3.msra.mxu0 %v673_v10  ;;  %v661_v9 = vld [vmem:[%s8145_s1 + $0x408] sm:$0xff]  ;;  %v380_v10 = vld [vmem:[%s5885_s11 + $0x9c] sm:$0xff] }
  0xce   : > { %1025 = vmatmul.mubr.f32.gmra.mxu1 %v325_v60  ;;  %1286 = vmatmul.mubr.f32.gmra.mxu0 %v368_v11  ;;  %v663_v60 = vld [vmem:[%s8145_s1 + $0x418] sm:$0xff]  ;;  %v340_v11 = vld [vmem:[%s5885_s11 + $0xab] sm:$0xff] }
  0xcf   : > { %1029 = vmatprep.mubr.f32.mxu1 %v328_v12  ;;  %1290 = vmatprep.mubr.f32.mxu0 %v6282_v13 }
  0xd0   : > { %1482 = vmatprep.subr.mxu1 %v8150_v1  ;;  %5253 = vmatprep.subr.mxu0 %v8150_v1 }
  0xd1   : > { %1483 = vmatpush1.msra.mxu1 %v639_v14  ;;  %5254 = vmatpush3.msra.mxu0 %v672_v15  ;;  %v659_v14 = vld [vmem:[%s8145_s1 + $0x3f8] sm:$0xff]  ;;  %v660_v15 = vld [vmem:[%s8145_s1 + $0x400] sm:$0xff] }
  0xd2   : > { %1030 = vmatmul.mubr.f32.gmra.mxu1 %v326_v2  ;;  %1291 = vmatmul.mubr.f32.gmra.mxu0 %v369_v16  ;;  %v662_v2 = vld [vmem:[%s8145_s1 + $0x410] sm:$0xff]  ;;  %v381_v16 = vld [vmem:[%s5885_s11 + $0xa4] sm:$0xff] }
  0xd3   : > { %1034 = vmatprep.mubr.f32.mxu1 %v329_v17  ;;  %1295 = vmatprep.mubr.f32.mxu0 %v6295_v18 }
  0xd4   : > { %1484 = vmatprep.subr.mxu1 %v8150_v1  ;;  %5255 = vmatprep.subr.mxu0 %v8150_v1 }
  0xd5   : > { %1485 = vmatpush1.msra.mxu1 %v638_v19  ;;  %5256 = vmatpush3.msra.mxu0 %v671_v20  ;;  %v6463_v19 = vld [vmem:[%s5885_s11 + $0xad] sm:$0xff] }
  0xd6   : > { %1035 = vmatmul.mubr.f32.gmra.mxu1 %v327_v7  ;;  %1296 = vmatmul.mubr.f32.gmra.mxu0 %v370_v21  ;;  %v628_v7 = vld [vmem:[%s8145_s1 + $0x300] sm:$0xff]  ;;  %v658_v20 = vld [vmem:[%s8145_s1 + $0x3f0] sm:$0xff] }
  0xd7   : > { %1039 = vmatprep.mubr.f32.mxu1 %v330_v22  ;;  %1300 = vmatprep.mubr.f32.mxu0 %v6309_v23  ;;  %v382_v21 = vld [vmem:[%s5885_s11 + $0xac] sm:$0xff] }
  0xd8   : > { %1486 = vmatprep.subr.mxu1 %v8150_v1  ;;  %5257 = vmatprep.subr.mxu0 %v8150_v1 }
  0xd9   : > { %1487 = vmatpush1.msra.mxu1 %v637_v24  ;;  %5258 = vmatpush3.msra.mxu0 %v670_v25  ;;  %v6474_v24 = vld [vmem:[%s5885_s11 + $0xb5] sm:$0xff]  ;;  %v657_v25 = vld [vmem:[%s8145_s1 + $0x3e8] sm:$0xff] }
  0xda   : > { %1040 = vmatmul.mubr.f32.gmra.mxu1 %v328_v12  ;;  %1301 = vmatmul.mubr.f32.gmra.mxu0 %v371_v26  ;;  %v6449_v12 = vld [vmem:[%s5885_s11 + $0xa5] sm:$0xff]  ;;  %v383_v26 = vld [vmem:[%s5885_s11 + $0xb4] sm:$0xff] }
  0xdb   : > { %1044 = vmatprep.mubr.f32.mxu1 %v331_v27  ;;  %1305 = vmatprep.mubr.f32.mxu0 %v6323_v28 }
  0xdc   : > { %1488 = vmatprep.subr.mxu1 %v8150_v1  ;;  %5259 = vmatprep.subr.mxu0 %v8150_v1 }
  0xdd   : > { %1489 = vmatpush1.msra.mxu1 %v636_v29  ;;  %5260 = vmatpush3.msra.mxu0 %v669_v30  ;;  %v6484_v29 = vld [vmem:[%s5885_s11 + $0xbd] sm:$0xff] }
  0xde   : > { %1045 = vmatmul.mubr.f32.gmra.mxu1 %v329_v17  ;;  %1306 = vmatmul.mubr.f32.gmra.mxu0 %v372_v31  ;;  %v341_v17 = vld [vmem:[%s5885_s11 + $0xb3] sm:$0xff]  ;;  %v656_v30 = vld [vmem:[%s8145_s1 + $0x3e0] sm:$0xff] }
  0xdf   : > { %1049 = vmatprep.mubr.f32.mxu1 %v332_v32  ;;  %1310 = vmatprep.mubr.f32.mxu0 %v6337_v33  ;;  %v384_v31 = vld [vmem:[%s5885_s11 + $0xbc] sm:$0xff] }
  0xe0   : > { %1490 = vmatprep.subr.mxu1 %v8150_v1  ;;  %5261 = vmatprep.subr.mxu0 %v8150_v1 }
  0xe1   : > { %1491 = vmatpush1.msra.mxu1 %v635_v34  ;;  %5262 = vmatpush3.msra.mxu0 %v668_v35  ;;  %v6494_v34 = vld [vmem:[%s5885_s11 + $0xc5] sm:$0xff]  ;;  %v655_v35 = vld [vmem:[%s8145_s1 + $0x3d8] sm:$0xff] }
  0xe2   : > { %1050 = vmatmul.mubr.f32.gmra.mxu1 %v330_v22  ;;  %1311 = vmatmul.mubr.f32.gmra.mxu0 %v373_v36  ;;  %v342_v22 = vld [vmem:[%s5885_s11 + $0xbb] sm:$0xff]  ;;  %v385_v36 = vld [vmem:[%s5885_s11 + $0xc4] sm:$0xff] }
  0xe3   : > { %1054 = vmatprep.mubr.f32.mxu1 %v333_v37  ;;  %1315 = vmatprep.mubr.f32.mxu0 %v6351_v38 }
  0xe4   : > { %1492 = vmatprep.subr.mxu1 %v8150_v1  ;;  %5263 = vmatprep.subr.mxu0 %v8150_v1 }
  0xe5   : > { %1493 = vmatpush1.msra.mxu1 %v634_v39  ;;  %5264 = vmatpush3.msra.mxu0 %v667_v40  ;;  %v6504_v39 = vld [vmem:[%s5885_s11 + $0xcd] sm:$0xff] }
  0xe6   : > { %1055 = vmatmul.mubr.f32.gmra.mxu1 %v331_v27  ;;  %1316 = vmatmul.mubr.f32.gmra.mxu0 %v374_v41  ;;  %v343_v27 = vld [vmem:[%s5885_s11 + $0xc3] sm:$0xff]  ;;  %v654_v40 = vld [vmem:[%s8145_s1 + $0x3d0] sm:$0xff] }
  0xe7   : > { %1059 = vmatprep.mubr.f32.mxu1 %v334_v42  ;;  %1320 = vmatprep.mubr.f32.mxu0 %v6365_v43  ;;  %v386_v41 = vld [vmem:[%s5885_s11 + $0xcc] sm:$0xff] }
  0xe8   : > { %1494 = vmatprep.subr.mxu1 %v8150_v1  ;;  %5265 = vmatprep.subr.mxu0 %v8150_v1 }
  0xe9   : > { %1495 = vmatpush1.msra.mxu1 %v633_v44  ;;  %5266 = vmatpush3.msra.mxu0 %v666_v45  ;;  %v6514_v44 = vld [vmem:[%s5885_s11 + $0xd5] sm:$0xff]  ;;  %v653_v45 = vld [vmem:[%s8145_s1 + $0x3c8] sm:$0xff] }
  0xea   : > { %1060 = vmatmul.mubr.f32.gmra.mxu1 %v332_v32  ;;  %1321 = vmatmul.mubr.f32.gmra.mxu0 %v375_v46  ;;  %v344_v32 = vld [vmem:[%s5885_s11 + $0xcb] sm:$0xff]  ;;  %v387_v46 = vld [vmem:[%s5885_s11 + $0xd4] sm:$0xff] }
  0xeb   : > { %1064 = vmatprep.mubr.f32.mxu1 %v335_v47  ;;  %1325 = vmatprep.mubr.f32.mxu0 %v6379_v48 }
  0xec   : > { %1496 = vmatprep.subr.mxu1 %v8150_v1  ;;  %5267 = vmatprep.subr.mxu0 %v8150_v1 }
  0xed   : > { %1497 = vmatpush1.msra.mxu1 %v632_v49  ;;  %5268 = vmatpush3.msra.mxu0 %v665_v50  ;;  %v347_v50 = vld [vmem:[%s5885_s11 + $0xe3] sm:$0xff] }
  0xee   : > { %1065 = vmatmul.mubr.f32.gmra.mxu1 %v333_v37  ;;  %1326 = vmatmul.mubr.f32.gmra.mxu0 %v376_v51  ;;  %v345_v37 = vld [vmem:[%s5885_s11 + $0xd3] sm:$0xff]  ;;  %v6526_v51 = vld [vmem:[%s5885_s11 + $0xdd] sm:$0xff] }
  0xef   : > { %1069 = vmatprep.mubr.f32.mxu1 %v336_v52  ;;  %1330 = vmatprep.mubr.f32.mxu0 %v6393_v53 }
  0xf0   : > { %1498 = vmatprep.subr.mxu1 %v8150_v1  ;;  %5269 = vmatprep.subr.mxu0 %v8150_v1 }
  0xf1   : > { %1499 = vmatpush1.msra.mxu1 %v631_v54  ;;  %5270 = vmatpush3.msra.mxu0 %v664_v55  ;;  %v652_v55 = vld [vmem:[%s8145_s1 + $0x3c0] sm:$0xff] }
  0xf2   : > { %1070 = vmatmul.mubr.f32.gmra.mxu1 %v334_v42  ;;  %1331 = vmatmul.mubr.f32.gmra.mxu0 %v377_v56  ;;  %v346_v42 = vld [vmem:[%s5885_s11 + $0xdb] sm:$0xff] }
  0xf3   : > { %1074 = vmatprep.mubr.f32.mxu1 %v337_v57  ;;  %1335 = vmatprep.mubr.f32.mxu0 %v6407_v58  ;;  %v388_v56 = vld [vmem:[%s5885_s11 + $0xdc] sm:$0xff] }
  0xf4   : > { %1500 = vmatprep.subr.mxu1 %v8150_v1  ;;  %5271 = vmatprep.subr.mxu0 %v8150_v1 }
  0xf5   : > { %1501 = vmatpush1.msra.mxu1 %v630_v59  ;;  %5272 = vmatpush3.msra.mxu0 %v663_v60  ;;  %v348_v59 = vld [vmem:[%s5885_s11 + $0xeb] sm:$0xff] }
  0xf6   : > { %1075 = vmatmul.mubr.f32.gmra.mxu1 %v335_v47  ;;  %1336 = vmatmul.mubr.f32.gmra.mxu0 %v378_v61  ;;  %v6536_v60 = vld [vmem:[%s5885_s11 + $0xe5] sm:$0xff] }
  0xf7   : > { %1079 = vmatprep.mubr.f32.mxu1 %v338_v62  ;;  %1340 = vmatprep.mubr.f32.mxu0 %v6421_v63 }
  0xf8   : > { %1502 = vmatprep.subr.mxu1 %v8150_v1  ;;  %5273 = vmatprep.subr.mxu0 %v8150_v1 }
  0xf9   : > { %1503 = vmatpush1.msra.mxu1 %v629_v0  ;;  %5274 = vmatpush3.msra.mxu0 %v662_v2  ;;  %v651_v2 = vld [vmem:[%s8145_s1 + $0x3b8] sm:$0xff] }
  0xfa   : > { %1080 = vmatmul.mubr.f32.gmra.mxu1 %v336_v52  ;;  %1341 = vmatmul.mubr.f32.gmra.mxu0 %v379_v4  ;;  %v389_v4 = vld [vmem:[%s5885_s11 + $0xe4] sm:$0xff] }
  0xfb   : > { %1084 = vmatprep.mubr.f32.mxu1 %v339_v5  ;;  %1345 = vmatprep.mubr.f32.mxu0 %v6435_v6 }
  0xfc   : > { %1504 = vmatprep.subr.mxu1 %v8150_v1  ;;  %5275 = vmatprep.subr.mxu0 %v8150_v1 }
  0xfd   : > { %1505 = vmatpush1.msra.mxu1 %v628_v7  ;;  %5276 = vmatpush3.msra.mxu0 %v661_v9  ;;  %v6548_v7 = vld [vmem:[%s5885_s11 + $0xed] sm:$0xff] }
  0xfe   : > { %1085 = vmatmul.mubr.f32.gmra.mxu1 %v337_v57  ;;  %1346 = vmatmul.mubr.f32.gmra.mxu0 %v380_v10 }
  0xff   : > { %1089 = vmatprep.mubr.f32.mxu1 %v340_v11  ;;  %1350 = vmatprep.mubr.f32.mxu0 %v6449_v12 }
 0x100   : > { %1506 = vmatprep.subr.mxu1 %v8150_v1  ;;  %5277 = vmatprep.subr.mxu0 %v8150_v1 }
 0x101   : > { %1507 = vmatpush2.msra.mxu1 %v659_v14  ;;  %5278 = vmatpush3.msra.mxu0 %v660_v15  ;;  %v650_v14 = vld [vmem:[%s8145_s1 + $0x3b0] sm:$0xff] }
 0x102   : > { %1090 = vmatmul.mubr.f32.gmra.mxu1 %v338_v62  ;;  %1351 = vmatmul.mubr.f32.gmra.mxu0 %v381_v16  ;;  %v390_v15 = vld [vmem:[%s5885_s11 + $0xec] sm:$0xff] }
 0x103   : > { %1094 = vmatprep.mubr.f32.mxu1 %v341_v17  ;;  %1355 = vmatprep.mubr.f32.mxu0 %v6463_v19 }
 0x104   : > { %1508 = vmatprep.subr.mxu1 %v8150_v1 }
 0x105   : > { %1509 = vmatpush2.msra.mxu1 %v658_v20  ;;  %v6562_v20 = vld [vmem:[%s5885_s11 + $0xf5] sm:$0xff] }
 0x106   : > { %1095 = vmatmul.mubr.f32.gmra.mxu1 %v339_v5  ;;  %1356 = vmatmul.mubr.f32.gmra.mxu0 %v382_v21  ;;  %v349_v5 = vld [vmem:[%s5885_s11 + $0xf3] sm:$0xff] }
 0x107   : > { %1099 = vmatprep.mubr.f32.mxu1 %v342_v22  ;;  %1360 = vmatprep.mubr.f32.mxu0 %v6474_v24 }
 0x108   : > { %1510 = vmatprep.subr.mxu1 %v8150_v1 }
 0x109   : > { %1511 = vmatpush2.msra.mxu1 %v657_v25  ;;  %v649_v25 = vld [vmem:[%s8145_s1 + $0x3a8] sm:$0xff] }
 0x10a   : > { %1100 = vmatmul.mubr.f32.gmra.mxu1 %v340_v11  ;;  %1361 = vmatmul.mubr.f32.gmra.mxu0 %v383_v26  ;;  %v391_v26 = vld [vmem:[%s5885_s11 + $0xf4] sm:$0xff] }
 0x10b   : > { %1104 = vmatprep.mubr.f32.mxu1 %v343_v27  ;;  %1365 = vmatprep.mubr.f32.mxu0 %v6484_v29 }
 0x10c   : > { %1512 = vmatprep.subr.mxu1 %v8150_v1 }
 0x10d   : > { %1513 = vmatpush2.msra.mxu1 %v656_v30  ;;  %v351_v30 = vld [vmem:[%s5885_s11 + $0x103] sm:$0xff] }
 0x10e   : > { %1105 = vmatmul.mubr.f32.gmra.mxu1 %v341_v17  ;;  %1366 = vmatmul.mubr.f32.gmra.mxu0 %v384_v31  ;;  %v350_v17 = vld [vmem:[%s5885_s11 + $0xfb] sm:$0xff] }
 0x10f   : > { %1109 = vmatprep.mubr.f32.mxu1 %v344_v32  ;;  %1370 = vmatprep.mubr.f32.mxu0 %v6494_v34  ;;  %v6576_v31 = vld [vmem:[%s5885_s11 + $0xfd] sm:$0xff] }
 0x110   : > { %1514 = vmatprep.subr.mxu1 %v8150_v1 }
 0x111   : > { %1515 = vmatpush2.msra.mxu1 %v655_v35 }
 0x112   : > { %1110 = vmatmul.mubr.f32.gmra.mxu1 %v342_v22  ;;  %1371 = vmatmul.mubr.f32.gmra.mxu0 %v385_v36  ;;  %v648_v36 = vld [vmem:[%s8145_s1 + $0x3a0] sm:$0xff] }
 0x113   : > { %1114 = vmatprep.mubr.f32.mxu1 %v345_v37  ;;  %1375 = vmatprep.mubr.f32.mxu0 %v6504_v39 }
 0x114   : > { %1516 = vmatprep.subr.mxu1 %v8150_v1 }
 0x115   : > { %1517 = vmatpush2.msra.mxu1 %v654_v40 }
 0x116   : > { %1115 = vmatmul.mubr.f32.gmra.mxu1 %v343_v27  ;;  %1376 = vmatmul.mubr.f32.gmra.mxu0 %v386_v41  ;;  %v352_v41 = vld [vmem:[%s5885_s11 + $0x10b] sm:$0xff] }
 0x117   : > { %1119 = vmatprep.mubr.f32.mxu1 %v346_v42  ;;  %1380 = vmatprep.mubr.f32.mxu0 %v6514_v44  ;;  %v742_v47 = vpop.f32.mrf.mxu0  ;;  %v6522_v49 = vpop.f32.mrf.mxu1 }
 0x118   : > { %1518 = vmatprep.subr.mxu1 %v8150_v1  ;;  %v647_v47 = vld [vmem:[%s8145_s1 + $0x398] sm:$0xff] }
 0x119   : > { %v743_v52 = vpop.f32.mrf.mxu0  ;;  %v847_v54 = vpop.f32.mrf.mxu1  ;;  %1519 = vmatpush2.msra.mxu1 %v653_v45 }
 0x11a   : > { %1120 = vmatmul.mubr.f32.gmra.mxu1 %v344_v32  ;;  %1381 = vmatmul.mubr.f32.gmra.mxu0 %v387_v46  ;;  %v353_v54 = vld [vmem:[%s5885_s11 + $0x113] sm:$0xff] }
 0x11b   : > { %1124 = vmatprep.mubr.f32.mxu1 %v347_v50  ;;  %1385 = vmatprep.mubr.f32.mxu0 %v6526_v51  ;;  %v746_v57 = vpop.f32.mrf.mxu0 }
 0x11c   : > { %v6538_v61 = vpop.f32.mrf.mxu1  ;;  %1520 = vmatprep.subr.mxu1 %v8150_v1 }
 0x11d   : > { %v747_v62 = vpop.f32.mrf.mxu0  ;;  %1521 = vmatpush2.msra.mxu1 %v652_v55  ;;  %v6602_v55 = vld [vmem:[%s5885_s11 + $0x10d] sm:$0xff] }
 0x11e   : > { %1125 = vmatmul.mubr.f32.gmra.mxu1 %v345_v37  ;;  %1386 = vmatmul.mubr.f32.gmra.mxu0 %v388_v56  ;;  %v852_v0 = vpop.f32.mrf.mxu1  ;;  %v392_v37 = vld [vmem:[%s5885_s11 + $0xfc] sm:$0xff]  ;;  %v646_v62 = vld [vmem:[%s8145_s1 + $0x390] sm:$0xff] }
 0x11f   : > { %1129 = vmatprep.mubr.f32.mxu1 %v348_v59  ;;  %1390 = vmatprep.mubr.f32.mxu0 %v6536_v60  ;;  %v394_v0 = vld [vmem:[%s5885_s11 + $0x10c] sm:$0xff] }
 0x120   : > { %v6550_v9 = vpop.f32.mrf.mxu1  ;;  %1522 = vmatprep.subr.mxu1 %v8150_v1 }
 0x121   : > { %v6553_v10 = vpop.f32.mrf.mxu0  ;;  %1523 = vmatpush2.msra.mxu1 %v651_v2  ;;  %v354_v2 = vld [vmem:[%s5885_s11 + $0x11b] sm:$0xff] }
 0x122   : > { %1130 = vmatmul.mubr.f32.gmra.mxu1 %v346_v42  ;;  %1391 = vmatmul.mubr.f32.gmra.mxu0 %v389_v4  ;;  %v857_v11 = vpop.f32.mrf.mxu1  ;;  %v6590_v42 = vld [vmem:[%s5885_s11 + $0x105] sm:$0xff]  ;;  %v6614_v4 = vld [vmem:[%s5885_s11 + $0x115] sm:$0xff] }
 0x123   : > { %1134 = vmatprep.mubr.f32.mxu1 %v349_v5  ;;  %1395 = vmatprep.mubr.f32.mxu0 %v6548_v7  ;;  %v752_v16 = vpop.f32.mrf.mxu0 }
 0x124   : > { %1524 = vmatprep.subr.mxu1 %v8150_v1 }
 0x125   : > { %v6565_v21 = vpop.f32.mrf.mxu0  ;;  %1525 = vmatpush2.msra.mxu1 %v650_v14  ;;  %v645_v14 = vld [vmem:[%s8145_s1 + $0x388] sm:$0xff] }
 0x126   : > { %1135 = vmatmul.mubr.f32.gmra.mxu1 %v347_v50  ;;  %1396 = vmatmul.mubr.f32.gmra.mxu0 %v390_v15  ;;  %v6567_v22 = vpop.f32.mrf.mxu1  ;;  %v393_v50 = vld [vmem:[%s5885_s11 + $0x104] sm:$0xff]  ;;  %v395_v15 = vld [vmem:[%s5885_s11 + $0x114] sm:$0xff] }
 0x127   : > { %1139 = vmatprep.mubr.f32.mxu1 %v350_v17  ;;  %1400 = vmatprep.mubr.f32.mxu0 %v6562_v20  ;;  %v757_v27 = vpop.f32.mrf.mxu0 }
 0x128   : > { %v862_v32 = vpop.f32.mrf.mxu1  ;;  %1526 = vmatprep.subr.mxu1 %v8150_v1 }
 0x129   : > { %1527 = vmatpush2.msra.mxu1 %v649_v25  ;;  %v355_v25 = vld [vmem:[%s5885_s11 + $0x123] sm:$0xff] }
 0x12a   : > { %1140 = vmatmul.mubr.f32.gmra.mxu1 %v348_v59  ;;  %1401 = vmatmul.mubr.f32.gmra.mxu0 %v391_v26  ;;  %v6579_v35 = vpop.f32.mrf.mxu1  ;;  %v6628_v26 = vld [vmem:[%s5885_s11 + $0x11d] sm:$0xff] }
 0x12b   : > { %1144 = vmatprep.mubr.f32.mxu1 %v351_v30  ;;  %1405 = vmatprep.mubr.f32.mxu0 %v6576_v31  ;;  %v6586_v40 = vpop.f32.mrf.mxu0  ;;  %v644_v32 = vld [vmem:[%s8145_s1 + $0x380] sm:$0xff] }
 0x12c   : > { %v867_v45 = vpop.f32.mrf.mxu1  ;;  %1528 = vmatprep.subr.mxu1 %v8150_v1 }
 0x12d   : > { %v762_v46 = vpop.f32.mrf.mxu0  ;;  %1529 = vmatpush2.msra.mxu1 %v648_v36  ;;  %v396_v36 = vld [vmem:[%s5885_s11 + $0x11c] sm:$0xff]  ;;  %v6642_v45 = vld [vmem:[%s5885_s11 + $0x125] sm:$0xff] }
 0x12e   : > { %1145 = vmatmul.mubr.f32.gmra.mxu1 %v349_v5  ;;  %1406 = vmatmul.mubr.f32.gmra.mxu0 %v392_v37  ;;  %v356_v37 = vld [vmem:[%s5885_s11 + $0x12b] sm:$0xff] }
 0x12f   : > { %1149 = vmatprep.mubr.f32.mxu1 %v352_v41  ;;  %1410 = vmatprep.mubr.f32.mxu0 %v6590_v42  ;;  %v6598_v52 = vpop.f32.mrf.mxu0 }
 0x130   : > { %v6604_v56 = vpop.f32.mrf.mxu1  ;;  %1530 = vmatprep.subr.mxu1 %v8150_v1 }
 0x131   : > { %v767_v57 = vpop.f32.mrf.mxu0  ;;  %1531 = vmatpush2.msra.mxu1 %v647_v47  ;;  %v397_v47 = vld [vmem:[%s5885_s11 + $0x124] sm:$0xff] }
 0x132   : > { %1150 = vmatmul.mubr.f32.gmra.mxu1 %v350_v17  ;;  %1411 = vmatmul.mubr.f32.gmra.mxu0 %v393_v50  ;;  %v872_v59 = vpop.f32.mrf.mxu1 }
 0x133   : > { %1154 = vmatprep.mubr.f32.mxu1 %v353_v54  ;;  %1415 = vmatprep.mubr.f32.mxu0 %v6602_v55  ;;  %v357_v59 = vld [vmem:[%s5885_s11 + $0x133] sm:$0xff] }
 0x134   : > { %1532 = vmatprep.subr.mxu1 %v8150_v1 }
 0x135   : > { %v6617_v5 = vpop.f32.mrf.mxu0  ;;  %v6619_v11 = vpop.f32.mrf.mxu1  ;;  %1533 = vmatpush2.msra.mxu1 %v646_v62  ;;  %v6653_v62 = vld [vmem:[%s5885_s11 + $0x12d] sm:$0xff] }
 0x136   : > { %8158 = vst [vmem:[#allocation9_spill] sm:$0xff] %v6619_v11  ;;  %1155 = vmatmul.mubr.f32.gmra.mxu1 %v351_v30  ;;  %1416 = vmatmul.mubr.f32.gmra.mxu0 %v394_v0  ;;  %v6697_v11 = vld [vmem:[%s5885_s11 + $0x155] sm:$0xff] }
 0x137   : > { %1159 = vmatprep.mubr.f32.mxu1 %v354_v2  ;;  %1420 = vmatprep.mubr.f32.mxu0 %v6614_v4  ;;  %v772_v16 = vpop.f32.mrf.mxu0  ;;  %v877_v17 = vpop.f32.mrf.mxu1  ;;  %8166 = vst [vmem:[#allocation17_spill] sm:$0xff] %v6697_v11 }
 0x138   : > { %1534 = vmatprep.subr.mxu1 %v8150_v1  ;;  %v6659_v16 = vld [vmem:[%s5885_s11 + $0x135] sm:$0xff] }
 0x139   : > { %1535 = vmatpush2.msra.mxu1 %v645_v14 }
 0x13a   : > { %1160 = vmatmul.mubr.f32.gmra.mxu1 %v352_v41  ;;  %1421 = vmatmul.mubr.f32.gmra.mxu0 %v395_v15  ;;  %v6631_v27 = vpop.f32.mrf.mxu0  ;;  %v6633_v30 = vpop.f32.mrf.mxu1  ;;  %v358_v15 = vld [vmem:[%s5885_s11 + $0x13b] sm:$0xff] }
 0x13b   : > { %8159 = vst [vmem:[#allocation10_spill] sm:$0xff] %v6633_v30  ;;  %1164 = vmatprep.mubr.f32.mxu1 %v355_v25  ;;  %1425 = vmatprep.mubr.f32.mxu0 %v6628_v26  ;;  %v363_v30 = vld [vmem:[%s5885_s11 + $0x15b] sm:$0xff] }
 0x13c   : > { %v777_v41 = vpop.f32.mrf.mxu0  ;;  %v882_v46 = vpop.f32.mrf.mxu1  ;;  %1536 = vmatprep.subr.mxu1 %v8150_v1  ;;  %v6679_v1 = vld [vmem:[%s5885_s11 + $0x145] sm:$0xff] }
 0x13d   : > { %1537 = vmatpush2.msra.mxu1 %v644_v32  ;;  %v399_v41 = vld [vmem:[%s5885_s11 + $0x134] sm:$0xff]  ;;  %v359_v46 = vld [vmem:[%s5885_s11 + $0x143] sm:$0xff]  ;;  %8163 = vst [vmem:[#allocation14_spill] sm:$0xff] %v6679_v1 }
 0x13e   : > { %1165 = vmatmul.mubr.f32.gmra.mxu1 %v353_v54  ;;  %1426 = vmatmul.mubr.f32.gmra.mxu0 %v396_v36  ;;  %v398_v54 = vld [vmem:[%s5885_s11 + $0x12c] sm:$0xff] }
 0x13f   : > { %1169 = vmatprep.mubr.f32.mxu1 %v356_v37  ;;  %1430 = vmatprep.mubr.f32.mxu0 %v6642_v45  ;;  %v6647_v50 = vpop.f32.mrf.mxu0  ;;  %v6649_v57 = vpop.f32.mrf.mxu1 }
 0x140   : > { %8160 = vst [vmem:[#allocation11_spill] sm:$0xff] %v6649_v57  ;;  %v6689_v57 = vld [vmem:[%s5885_s11 + $0x14d] sm:$0xff] }
 0x141   : > { %v782_v0 = vpop.f32.mrf.mxu0  ;;  %v887_v14 = vpop.f32.mrf.mxu1  ;;  %8165 = vst [vmem:[#allocation16_spill] sm:$0xff] %v6689_v57 }
 0x142   : > { %1170 = vmatmul.mubr.f32.gmra.mxu1 %v354_v2  ;;  %1431 = vmatmul.mubr.f32.gmra.mxu0 %v397_v47  ;;  %v6669_v47 = vld [vmem:[%s5885_s11 + $0x13d] sm:$0xff] }
 0x143   : > { %1174 = vmatprep.mubr.f32.mxu1 %v357_v59  ;;  %1435 = vmatprep.mubr.f32.mxu0 %v6653_v62 }
 0x144   : > { %v6661_v17 = vpop.f32.mrf.mxu0  ;;  %v6663_v32 = vpop.f32.mrf.mxu1 }
 0x145   : > { %8161 = vst [vmem:[#allocation12_spill] sm:$0xff] %v6663_v32  ;;  %v362_v32 = vld [vmem:[%s5885_s11 + $0x153] sm:$0xff] }
 0x146   : > { %1175 = vmatmul.mubr.f32.gmra.mxu1 %v355_v25  ;;  %1436 = vmatmul.mubr.f32.gmra.mxu0 %v398_v54  ;;  %v787_v36 = vpop.f32.mrf.mxu0  ;;  %v892_v2 = vpop.f32.mrf.mxu1  ;;  %v400_v25 = vld [vmem:[%s5885_s11 + $0x13c] sm:$0xff] }
 0x147   : > { %1179 = vmatprep.mubr.f32.mxu1 %v358_v15  ;;  %1440 = vmatprep.mubr.f32.mxu0 %v6659_v16  ;;  %v360_v2 = vld [vmem:[%s5885_s11 + $0x14b] sm:$0xff] }
 0x149   : > { %v6671_v0 = vpop.f32.mrf.mxu0  ;;  %v6673_v14 = vpop.f32.mrf.mxu1 }
 0x14a   : > { %8162 = vst [vmem:[#allocation13_spill] sm:$0xff] %v6673_v14  ;;  %1180 = vmatmul.mubr.f32.gmra.mxu1 %v356_v37  ;;  %1441 = vmatmul.mubr.f32.gmra.mxu0 %v399_v41  ;;  %v401_v37 = vld [vmem:[%s5885_s11 + $0x144] sm:$0xff] }
 0x14b   : > { %1184 = vmatprep.mubr.f32.mxu1 %v359_v46  ;;  %1445 = vmatprep.mubr.f32.mxu0 %v6669_v47  ;;  %v792_v54 = vpop.f32.mrf.mxu0  ;;  %v897_v36 = vpop.f32.mrf.mxu1 }
 0x14e   : > { %1185 = vmatmul.mubr.f32.gmra.mxu1 %v357_v59  ;;  %1446 = vmatmul.mubr.f32.gmra.mxu0 %v400_v25  ;;  %v402_v59 = vld [vmem:[%s5885_s11 + $0x14c] sm:$0xff] }
 0x14f   : > { %1189 = vmatprep.mubr.f32.mxu1 %v360_v2  ;;  %1450 = vmatprep.mubr.f32.mxu0 %v6679_v1  ;;  %v6683_v41 = vpop.f32.mrf.mxu0  ;;  %v6685_v14 = vpop.f32.mrf.mxu1 }
 0x150   : > { %8164 = vst [vmem:[#allocation15_spill] sm:$0xff] %v6685_v14 }
 0x151   : > { %v797_v54 = vpop.f32.mrf.mxu0  ;;  %v902_v36 = vpop.f32.mrf.mxu1 }
 0x152   : > { %1190 = vmatmul.mubr.f32.gmra.mxu1 %v358_v15  ;;  %1451 = vmatmul.mubr.f32.gmra.mxu0 %v401_v37  ;;  %v364_v37 = vld [vmem:[%s5885_s11 + $0x163] sm:$0xf] }
 0x153   : > { %1194 = vmatprep.mubr.f32.mxu1 %v362_v32  ;;  %1455 = vmatprep.mubr.f32.mxu0 %v6689_v57  ;;  %v6693_v25 = vpop.f32.mrf.mxu0  ;;  %v403_v32 = vld [vmem:[%s5885_s11 + $0x154] sm:$0xff]  ;;  %v6705_v54 = vld [vmem:[%s5885_s11 + $0x15d] sm:$0xff] }
 0x154   : > { %v6699_v14 = vpop.f32.mrf.mxu1  ;;  %8168 = vst [vmem:[#allocation19_spill] sm:$0xff] %v6705_v54 }
 0x155   : > { %8167 = vst [vmem:[#allocation18_spill] sm:$0xff] %v6699_v14  ;;  %v802_v1 = vpop.f32.mrf.mxu0  ;;  %v450_v14 = vld [vmem:[%s5885_s11 + $0x36] sm:$0xff] }
 0x156   : > { %1195 = vmatmul.mubr.f32.gmra.mxu1 %v359_v46  ;;  %1456 = vmatmul.mubr.f32.gmra.mxu0 %v402_v59  ;;  %v907_v15 = vpop.f32.mrf.mxu1  ;;  %v361_v1 = vld [vmem:[%s5885_s11 + $0x153] sm:$0xf] }
 0x157   : > { %1199 = vmatprep.mubr.f32.mxu1 %v363_v30  ;;  %1460 = vmatprep.mubr.f32.mxu0 %v6697_v11  ;;  %v404_v30 = vld [vmem:[%s5885_s11 + $0x15c] sm:$0xff]  ;;  %v446_v15 = vld [vmem:[%s5885_s11 + $0x165] sm:$0xf] }
 0x159   : > { %v6707_v36 = vpop.f32.mrf.mxu0  ;;  %v6709_v57 = vpop.f32.mrf.mxu1 }
 0x15a   : > { %8169 = vst [vmem:[#allocation20_spill] sm:$0xff] %v6709_v57  ;;  %1200 = vmatmul.mubr.f32.gmra.mxu1 %v360_v2  ;;  %1461 = vmatmul.mubr.f32.gmra.mxu0 %v403_v32  ;;  %v405_v2 = vld [vmem:[%s5885_s11 + $0x164] sm:$0xf] }
 0x15b   : > { %1203 = vmatprep.mubr.f32.mxu1 %v364_v37  ;;  %1465 = vmatprep.mubr.f32.mxu0 %v6705_v54  ;;  %v807_v46 = vpop.f32.mrf.mxu0  ;;  %v912_v59 = vpop.f32.mrf.mxu1  ;;  %v451_v37 = vld [vmem:[%s5885_s11 + $0x3e] sm:$0xff] }
 0x15c   : > { %v8170_v46 = vmov 0.0  }
 0x15d   : > { %v6716_v11 = vpop.f32.mrf.mxu0 }
 0x15e   : > { %1204 = vmatmul.mubr.f32.gmra.mxu1 %v361_v1  ;;  %1466 = vmatmul.mubr.f32.gmra.mxu0 %v404_v30  ;;  %v6718_v57 = vpop.f32.mrf.mxu1  ;;  %v491_v1 = vld [vmem:[%s5885_s11 + $0x37] sm:$0xff] }
 0x15f   : > { %1469 = vmatprep.mubr.f32.mxu0 %v446_v15  ;;  %1538 = vmatprep.mubr.f32.mxu1 %v450_v14  ;;  %v812_v32 = vpop.f32.mrf.mxu0  ;;  %v452_v14 = vld [vmem:[%s5885_s11 + $0x46] sm:$0xff] }
 0x160   : > { %v917_v54 = vpop.f32.mrf.mxu1 }
 0x161   : > { %v453_v54 = vld [vmem:[%s5885_s11 + $0x4e] sm:$0xff] }
 0x162   : > { %1470 = vmatmul.mubr.f32.gmra.mxu0 %v405_v2  ;;  %1539 = vmatmul.mubr.f32.vlgmr.msra.gmra.mxu1 %v6255_v3  ;;  %v492_v3 = vld [vmem:[%s5885_s11 + $0x3f] sm:$0xff] }
 0x163   : > { %1542 = vmatprep.mubr.f32.mxu1 %v451_v37  ;;  %5279 = vmatprep.mubr.msk.f32.mxu0 %vm5640_vm0, %v8170_v46  ;;  %v6726_v30 = vpop.f32.mrf.mxu0  ;;  %v6728_v59 = vpop.f32.mrf.mxu1 }
 0x164   : > { %8171 = vst [vmem:[#allocation21_spill] sm:$0xff] %v6728_v59 }
 0x165   : > { %v817_v15 = vpop.f32.mrf.mxu0  ;;  %v922_v32 = vpop.f32.mrf.mxu1 }
 0x166   : > { %1543 = vmatmul.mubr.f32.gmra.mxu1 %v6269_v8  ;;  %5280 = vmatmul.mubr.f32.vlgmr.msra.gmra.mxu0 %v491_v1  ;;  %v493_v8 = vld [vmem:[%s5885_s11 + $0x47] sm:$0xff] }
 0x167   : > { %1546 = vmatprep.mubr.f32.mxu1 %v452_v14  ;;  %5282 = vmatprep.mubr.msk.f32.mxu0 %vm5640_vm0, %v8170_v46  ;;  %v454_v14 = vld [vmem:[%s5885_s11 + $0x56] sm:$0xff] }
 0x168   : > { %v6736_v2 = vpop.f32.mrf.mxu0 }
 0x169   : > { %v6738_v37 = vpop.f32.mrf.mxu1 }
 0x16a   : > { %8172 = vst [vmem:[#allocation22_spill] sm:$0xff] %v6738_v37  ;;  %1547 = vmatmul.mubr.f32.gmra.mxu1 %v6282_v13  ;;  %5283 = vmatmul.mubr.f32.gmra.mxu0 %v492_v3  ;;  %v822_v15 = vpop.f32.mrf.mxu0  ;;  %v494_v13 = vld [vmem:[%s5885_s11 + $0x4f] sm:$0xff] }
 0x16b   : > { %1551 = vmatprep.mubr.f32.mxu1 %v453_v54  ;;  %5285 = vmatprep.mubr.msk.f32.mxu0 %vm5640_vm0, %v8170_v46  ;;  %v927_v1 = vpop.f32.mrf.mxu1  ;;  %v455_v15 = vld [vmem:[%s5885_s11 + $0x5e] sm:$0xff] }
 0x16d   : > { %v6745_v32 = vpop.f32.mrf.mxu1 }
 0x16e   : > { %8173 = vst [vmem:[#allocation23_spill] sm:$0xff] %v6745_v32  ;;  %1552 = vmatmul.mubr.f32.gmra.mxu1 %v6295_v18  ;;  %5286 = vmatmul.mubr.f32.gmra.mxu0 %v493_v8  ;;  %v6748_v37 = vpop.f32.mrf.mxu0  ;;  %v495_v8 = vld [vmem:[%s5885_s11 + $0x57] sm:$0xff]  ;;  %v456_v32 = vld [vmem:[%s5885_s11 + $0x66] sm:$0xff] }
 0x16f   : > { %1556 = vmatprep.mubr.f32.mxu1 %v454_v14  ;;  %5288 = vmatprep.mubr.msk.f32.mxu0 %vm5640_vm0, %v8170_v46  ;;  %v932_v3 = vpop.f32.mrf.mxu1 }
 0x170   : > { %v827_v54 = vpop.f32.mrf.mxu0 }
 0x171   : > { %v457_v54 = vld [vmem:[%s5885_s11 + $0x6e] sm:$0xff] }
 0x172   : > { %1557 = vmatmul.mubr.f32.gmra.mxu1 %v6309_v23  ;;  %5289 = vmatmul.mubr.f32.gmra.mxu0 %v494_v13  ;;  %v6755_v1 = vpop.f32.mrf.mxu0  ;;  %v496_v23 = vld [vmem:[%s5885_s11 + $0x5f] sm:$0xff] }
 0x173   : > { %1561 = vmatprep.mubr.f32.mxu1 %v455_v15  ;;  %5291 = vmatprep.mubr.msk.f32.mxu0 %vm5640_vm0, %v8170_v46  ;;  %v935_v18 = vpop.f32.mrf.mxu1 }
 0x174   : > { %v832_v14 = vpop.f32.mrf.mxu0 }
 0x175   : > { %v936_v59 = vpop.f32.mrf.mxu1 }
 0x176   : > { %1562 = vmatmul.mubr.f32.gmra.mxu1 %v6323_v28  ;;  %5292 = vmatmul.mubr.f32.gmra.mxu0 %v495_v8  ;;  %v497_v28 = vld [vmem:[%s5885_s11 + $0x67] sm:$0xff] }
 0x177   : > { %1566 = vmatprep.mubr.f32.mxu1 %v456_v32  ;;  %5294 = vmatprep.mubr.msk.f32.mxu0 %vm5640_vm0, %v8170_v46  ;;  %v458_v32 = vld [vmem:[%s5885_s11 + $0x76] sm:$0xff] }
 0x178   : > { %v6765_v13 = vpop.f32.mrf.mxu0  ;;  %v939_v3 = vpop.f32.mrf.mxu1 }
 0x179   : > { %v459_v3 = vld [vmem:[%s5885_s11 + $0x7e] sm:$0xff] }
 0x17a   : > { %1567 = vmatmul.mubr.f32.gmra.mxu1 %v6337_v33  ;;  %5295 = vmatmul.mubr.f32.gmra.mxu0 %v496_v23  ;;  %v837_v15 = vpop.f32.mrf.mxu0  ;;  %v940_v59 = vpop.f32.mrf.mxu1  ;;  %v498_v33 = vld [vmem:[%s5885_s11 + $0x6f] sm:$0xff] }
 0x17b   : > { %1571 = vmatprep.mubr.f32.mxu1 %v457_v54  ;;  %5297 = vmatprep.mubr.msk.f32.mxu0 %vm5640_vm0, %v8170_v46 }
 0x17d   : > { %v6773_v18 = vpop.f32.mrf.mxu0 }
 0x17e   : > { %v1008_v8 = vpop.f32.mrf.mxu1  ;;  %1572 = vmatmul.mubr.f32.gmra.mxu1 %v6351_v38  ;;  %5298 = vmatmul.mubr.f32.gmra.mxu0 %v497_v28  ;;  %v499_v38 = vld [vmem:[%s5885_s11 + $0x77] sm:$0xff] }
 0x17f   : > { %v842_v14 = vpop.f32.mrf.mxu0  ;;  %1576 = vmatprep.mubr.f32.mxu1 %v458_v32  ;;  %5300 = vmatprep.mubr.msk.f32.mxu0 %vm5640_vm0, %v8170_v46  ;;  %v460_v32 = vld [vmem:[%s5885_s11 + $0x86] sm:$0xff] }
 0x180   : > { %v1009_v23 = vpop.f32.mrf.mxu1 }
 0x182   : > { %v1012_v54 = vpop.f32.mrf.mxu1  ;;  %v1274_v15 = vpop.f32.mrf.mxu0  ;;  %1577 = vmatmul.mubr.f32.gmra.mxu1 %v6365_v43  ;;  %5301 = vmatmul.mubr.f32.gmra.mxu0 %v498_v33  ;;  %v500_v43 = vld [vmem:[%s5885_s11 + $0x7f] sm:$0xff] }
 0x183   : > { %1581 = vmatprep.mubr.f32.mxu1 %v459_v3  ;;  %5303 = vmatprep.mubr.msk.f32.mxu0 %vm5640_vm0, %v8170_v46  ;;  %v461_v3 = vld [vmem:[%s5885_s11 + $0x8e] sm:$0xff] }
 0x184   : > { %v1013_v59 = vpop.f32.mrf.mxu1  ;;  %v1275_v28 = vpop.f32.mrf.mxu0 }
 0x186   : > { %v1016_v8 = vpop.f32.mrf.mxu1  ;;  %v1278_v14 = vpop.f32.mrf.mxu0  ;;  %1582 = vmatmul.mubr.f32.gmra.mxu1 %v6379_v48  ;;  %5304 = vmatmul.mubr.f32.gmra.mxu0 %v499_v38  ;;  %v501_v38 = vld [vmem:[%s5885_s11 + $0x87] sm:$0xff] }
 0x187   : > { %1586 = vmatprep.mubr.f32.mxu1 %v460_v32  ;;  %5306 = vmatprep.mubr.msk.f32.mxu0 %vm5640_vm0, %v8170_v46  ;;  %v1017_v54 = vadd.f32 %v1016_v8, %v6553_v10  ;;  %v462_v14 = vld [vmem:[%s5885_s11 + $0x96] sm:$0xff] }
 0x188   : > { %v1018_v33 = vpop.f32.mrf.mxu1  ;;  %v1279_v23 = vpop.f32.mrf.mxu0 }
 0x18a   : > { %v1021_v15 = vpop.f32.mrf.mxu1  ;;  %v1282_v59 = vpop.f32.mrf.mxu0  ;;  %1587 = vmatmul.mubr.f32.gmra.mxu1 %v6393_v53  ;;  %5307 = vmatmul.mubr.f32.gmra.mxu0 %v500_v43  ;;  %v502_v43 = vld [vmem:[%s5885_s11 + $0x8f] sm:$0xff] }
 0x18b   : > { %v6792_v48 = vadd.f32 %v1282_v59, %v1017_v54  ;;  %1591 = vmatprep.mubr.f32.mxu1 %v461_v3  ;;  %5309 = vmatprep.mubr.msk.f32.mxu0 %vm5640_vm0, %v8170_v46  ;;  %v1022_v33 = vadd.f32 %v1021_v15, %v6565_v21  ;;  %v463_v54 = vld [vmem:[%s5885_s11 + $0x9e] sm:$0xff] }
 0x18c   : > { %v1023_v28 = vpop.f32.mrf.mxu1  ;;  %v1284_v32 = vpop.f32.mrf.mxu0 }
 0x18e   : > { %v1026_v10 = vpop.f32.mrf.mxu1  ;;  %v1287_v8 = vpop.f32.mrf.mxu0  ;;  %1592 = vmatmul.mubr.f32.gmra.mxu1 %v6407_v58  ;;  %5310 = vmatmul.mubr.f32.gmra.mxu0 %v501_v38  ;;  %v503_v38 = vld [vmem:[%s5885_s11 + $0x97] sm:$0xff] }
 0x18f   : > { %v6800_v53 = vadd.f32 %v1287_v8, %v1022_v33  ;;  %1596 = vmatprep.mubr.f32.mxu1 %v462_v14  ;;  %5312 = vmatprep.mubr.msk.f32.mxu0 %vm5640_vm0, %v8170_v46  ;;  %v1027_v59 = vadd.f32 %v1026_v10, %v6586_v40  ;;  %v464_v14 = vld [vmem:[%s5885_s11 + $0xa6] sm:$0xff] }
 0x190   : > { %v1028_v23 = vpop.f32.mrf.mxu1  ;;  %v1289_v3 = vpop.f32.mrf.mxu0  ;;  %v504_v8 = vld [vmem:[%s5885_s11 + $0x9f] sm:$0xff] }
 0x191   : > { %v465_v3 = vld [vmem:[%s5885_s11 + $0xae] sm:$0xff] }
 0x192   : > { %v1031_v21 = vpop.f32.mrf.mxu1  ;;  %v1292_v15 = vpop.f32.mrf.mxu0  ;;  %1597 = vmatmul.mubr.f32.gmra.mxu1 %v6421_v63  ;;  %5313 = vmatmul.mubr.f32.gmra.mxu0 %v502_v43 }
 0x193   : > { %v6808_v58 = vadd.f32 %v1292_v15, %v1027_v59  ;;  %1601 = vmatprep.mubr.f32.mxu1 %v463_v54  ;;  %5315 = vmatprep.mubr.msk.f32.mxu0 %vm5640_vm0, %v8170_v46  ;;  %v1032_v33 = vadd.f32 %v1031_v21, %v6598_v52  ;;  %v505_v21 = vld [vmem:[%s5885_s11 + $0xa7] sm:$0xff] }
 0x194   : > { %v1033_v28 = vpop.f32.mrf.mxu1  ;;  %v1294_v32 = vpop.f32.mrf.mxu0 }
 0x195   : > { %v466_v28 = vld [vmem:[%s5885_s11 + $0xb6] sm:$0xff] }
 0x196   : > { %v1036_v40 = vpop.f32.mrf.mxu1  ;;  %v1297_v10 = vpop.f32.mrf.mxu0  ;;  %1602 = vmatmul.mubr.f32.gmra.mxu1 %v6435_v6  ;;  %5316 = vmatmul.mubr.f32.gmra.mxu0 %v503_v38 }
 0x197   : > { %v6816_v63 = vadd.f32 %v1297_v10, %v1032_v33  ;;  %1606 = vmatprep.mubr.f32.mxu1 %v464_v14  ;;  %5318 = vmatprep.mubr.msk.f32.mxu0 %vm5640_vm0, %v8170_v46  ;;  %v1037_v54 = vadd.f32 %v1036_v40, %v6617_v5  ;;  %v506_v33 = vld [vmem:[%s5885_s11 + $0xaf] sm:$0xff] }
 0x198   : > { %v1038_v43 = vpop.f32.mrf.mxu1  ;;  %v1299_v23 = vpop.f32.mrf.mxu0 }
 0x19a   : > { %v1041_v52 = vpop.f32.mrf.mxu1  ;;  %v1302_v59 = vpop.f32.mrf.mxu0  ;;  %1607 = vmatmul.mubr.f32.gmra.mxu1 %v6449_v12  ;;  %5319 = vmatmul.mubr.f32.gmra.mxu0 %v504_v8  ;;  %v467_v8 = vld [vmem:[%s5885_s11 + $0xbe] sm:$0xff] }
 0x19b   : > { %v6824_v6 = vadd.f32 %v1302_v59, %v1037_v54  ;;  %1611 = vmatprep.mubr.f32.mxu1 %v465_v3  ;;  %5321 = vmatprep.mubr.msk.f32.mxu0 %vm5640_vm0, %v8170_v46  ;;  %v1042_v32 = vadd.f32 %v1041_v52, %v6631_v27  ;;  %v507_v3 = vld [vmem:[%s5885_s11 + $0xb7] sm:$0xff]  ;;  %v468_v59 = vld [vmem:[%s5885_s11 + $0xc6] sm:$0xff] }
 0x19c   : > { %v1043_v15 = vpop.f32.mrf.mxu1  ;;  %v1304_v38 = vpop.f32.mrf.mxu0 }
 0x19d   : > { %v508_v38 = vld [vmem:[%s5885_s11 + $0xbf] sm:$0xff] }
 0x19e   : > { %v1046_v5 = vpop.f32.mrf.mxu1  ;;  %v1307_v14 = vpop.f32.mrf.mxu0  ;;  %1612 = vmatmul.mubr.f32.gmra.mxu1 %v6463_v19  ;;  %5322 = vmatmul.mubr.f32.gmra.mxu0 %v505_v21 }
 0x19f   : > { %v6832_v12 = vadd.f32 %v1307_v14, %v1042_v32  ;;  %1616 = vmatprep.mubr.f32.mxu1 %v466_v28  ;;  %5324 = vmatprep.mubr.msk.f32.mxu0 %vm5640_vm0, %v8170_v46  ;;  %v1047_v43 = vadd.f32 %v1046_v5, %v6647_v50  ;;  %v469_v5 = vld [vmem:[%s5885_s11 + $0xce] sm:$0xff] }
 0x1a0   : > { %v1048_v40 = vpop.f32.mrf.mxu1  ;;  %v1309_v10 = vpop.f32.mrf.mxu0 }
 0x1a1   : > { %v509_v40 = vld [vmem:[%s5885_s11 + $0xc7] sm:$0xff] }
 0x1a2   : > { %v1051_v27 = vpop.f32.mrf.mxu1  ;;  %v1312_v23 = vpop.f32.mrf.mxu0  ;;  %1617 = vmatmul.mubr.f32.gmra.mxu1 %v6474_v24  ;;  %5325 = vmatmul.mubr.f32.gmra.mxu0 %v506_v33 }
 0x1a3   : > { %v6840_v19 = vadd.f32 %v1312_v23, %v1047_v43  ;;  %1621 = vmatprep.mubr.f32.mxu1 %v467_v8  ;;  %5327 = vmatprep.mubr.msk.f32.mxu0 %vm5640_vm0, %v8170_v46  ;;  %v1052_v21 = vadd.f32 %v1051_v27, %v6661_v17  ;;  %v470_v43 = vld [vmem:[%s5885_s11 + $0xd6] sm:$0xff] }
 0x1a4   : > { %v1053_v54 = vpop.f32.mrf.mxu1  ;;  %v1314_v52 = vpop.f32.mrf.mxu0 }
 0x1a6   : > { %v1056_v50 = vpop.f32.mrf.mxu1  ;;  %v1317_v15 = vpop.f32.mrf.mxu0  ;;  %1622 = vmatmul.mubr.f32.gmra.mxu1 %v6484_v29  ;;  %5328 = vmatmul.mubr.f32.gmra.mxu0 %v507_v3  ;;  %v510_v3 = vld [vmem:[%s5885_s11 + $0xcf] sm:$0xff] }
 0x1a7   : > { %v6848_v24 = vadd.f32 %v1317_v15, %v1052_v21  ;;  %1626 = vmatprep.mubr.f32.mxu1 %v468_v59  ;;  %5330 = vmatprep.mubr.msk.f32.mxu0 %vm5640_vm0, %v8170_v46  ;;  %v1057_v14 = vadd.f32 %v1056_v50, %v6671_v0  ;;  %v471_v59 = vld [vmem:[%s5885_s11 + $0xde] sm:$0xff] }
 0x1a8   : > { %v1058_v28 = vpop.f32.mrf.mxu1  ;;  %v1319_v32 = vpop.f32.mrf.mxu0  ;;  %v511_v15 = vld [vmem:[%s5885_s11 + $0xd7] sm:$0xff] }
 0x1a9   : > { %v472_v32 = vld [vmem:[%s5885_s11 + $0xe6] sm:$0xff] }
 0x1aa   : > { %v1061_v17 = vpop.f32.mrf.mxu1  ;;  %v1322_v33 = vpop.f32.mrf.mxu0  ;;  %1627 = vmatmul.mubr.f32.gmra.mxu1 %v6494_v34  ;;  %5331 = vmatmul.mubr.f32.gmra.mxu0 %v508_v38 }
 0x1ab   : > { %v6856_v29 = vadd.f32 %v1322_v33, %v1057_v14  ;;  %1631 = vmatprep.mubr.f32.mxu1 %v469_v5  ;;  %5333 = vmatprep.mubr.msk.f32.mxu0 %vm5640_vm0, %v8170_v46  ;;  %v1062_v27 = vadd.f32 %v1061_v17, %v6683_v41  ;;  %v512_v17 = vld [vmem:[%s5885_s11 + $0xdf] sm:$0xff] }
 0x1ac   : > { %v1063_v10 = vpop.f32.mrf.mxu1  ;;  %v1324_v8 = vpop.f32.mrf.mxu0 }
 0x1ad   : > { %v473_v10 = vld [vmem:[%s5885_s11 + $0xee] sm:$0xff] }
 0x1ae   : > { %v1066_v0 = vpop.f32.mrf.mxu1  ;;  %v1327_v23 = vpop.f32.mrf.mxu0  ;;  %1632 = vmatmul.mubr.f32.gmra.mxu1 %v6504_v39  ;;  %5334 = vmatmul.mubr.f32.gmra.mxu0 %v509_v40 }
 0x1af   : > { %v6864_v34 = vadd.f32 %v1327_v23, %v1062_v27  ;;  %1636 = vmatprep.mubr.f32.mxu1 %v470_v43  ;;  %5336 = vmatprep.mubr.msk.f32.mxu0 %vm5640_vm0, %v8170_v46  ;;  %v1067_v21 = vadd.f32 %v1066_v0, %v6693_v25  ;;  %v513_v27 = vld [vmem:[%s5885_s11 + $0xe7] sm:$0xff] }
 0x1b0   : > { %v1068_v54 = vpop.f32.mrf.mxu1  ;;  %v1329_v52 = vpop.f32.mrf.mxu0 }
 0x1b2   : > { %v1071_v41 = vpop.f32.mrf.mxu1  ;;  %v1332_v50 = vpop.f32.mrf.mxu0  ;;  %1637 = vmatmul.mubr.f32.gmra.mxu1 %v6514_v44  ;;  %5337 = vmatmul.mubr.f32.gmra.mxu0 %v510_v3  ;;  %v474_v3 = vld [vmem:[%s5885_s11 + $0xf6] sm:$0xff] }
 0x1b3   : > { %v6872_v39 = vadd.f32 %v1332_v50, %v1067_v21  ;;  %1641 = vmatprep.mubr.f32.mxu1 %v471_v59  ;;  %5339 = vmatprep.mubr.msk.f32.mxu0 %vm5640_vm0, %v8170_v46  ;;  %v1072_v5 = vadd.f32 %v1071_v41, %v6707_v36  ;;  %v514_v59 = vld [vmem:[%s5885_s11 + $0xef] sm:$0xff]  ;;  %v475_v50 = vld [vmem:[%s5885_s11 + $0xfe] sm:$0xff] }
 0x1b4   : > { %v1073_v38 = vpop.f32.mrf.mxu1  ;;  %v1334_v28 = vpop.f32.mrf.mxu0 }
 0x1b5   : > { %v515_v28 = vld [vmem:[%s5885_s11 + $0xf7] sm:$0xff] }
 0x1b6   : > { %v1076_v25 = vpop.f32.mrf.mxu1  ;;  %v1337_v14 = vpop.f32.mrf.mxu0  ;;  %1642 = vmatmul.mubr.f32.gmra.mxu1 %v6526_v51  ;;  %5340 = vmatmul.mubr.f32.gmra.mxu0 %v511_v15 }
 0x1b7   : > { %v6880_v44 = vadd.f32 %v1337_v14, %v1072_v5  ;;  %1646 = vmatprep.mubr.f32.mxu1 %v472_v32  ;;  %5342 = vmatprep.mubr.msk.f32.mxu0 %vm5640_vm0, %v8170_v46  ;;  %v1077_v8 = vadd.f32 %v1076_v25, %v6716_v11  ;;  %v476_v25 = vld [vmem:[%s5885_s11 + $0x106] sm:$0xff] }
 0x1b8   : > { %v1078_v33 = vpop.f32.mrf.mxu1  ;;  %v1339_v40 = vpop.f32.mrf.mxu0 }
 0x1b9   : > { %v516_v33 = vld [vmem:[%s5885_s11 + $0xff] sm:$0xff] }
 0x1ba   : > { %v1081_v36 = vpop.f32.mrf.mxu1  ;;  %v1342_v43 = vpop.f32.mrf.mxu0  ;;  %1647 = vmatmul.mubr.f32.gmra.mxu1 %v6536_v60  ;;  %5343 = vmatmul.mubr.f32.gmra.mxu0 %v512_v17 }
 0x1bb   : > { %v6888_v51 = vadd.f32 %v1342_v43, %v1077_v8  ;;  %1651 = vmatprep.mubr.f32.mxu1 %v473_v10  ;;  %5345 = vmatprep.mubr.msk.f32.mxu0 %vm5640_vm0, %v8170_v46  ;;  %v1082_v54 = vadd.f32 %v1081_v36, %v6726_v30  ;;  %v477_v8 = vld [vmem:[%s5885_s11 + $0x10e] sm:$0xff] }
 0x1bc   : > { %v1083_v0 = vpop.f32.mrf.mxu1  ;;  %v1344_v23 = vpop.f32.mrf.mxu0 }
 0x1be   : > { %v1086_v11 = vpop.f32.mrf.mxu1  ;;  %v1347_v52 = vpop.f32.mrf.mxu0  ;;  %1652 = vmatmul.mubr.f32.gmra.mxu1 %v6548_v7  ;;  %5346 = vmatmul.mubr.f32.gmra.mxu0 %v513_v27  ;;  %v517_v27 = vld [vmem:[%s5885_s11 + $0x107] sm:$0xff] }
 0x1bf   : > { %v6896_v60 = vadd.f32 %v1347_v52, %v1082_v54  ;;  %1656 = vmatprep.mubr.f32.mxu1 %v474_v3  ;;  %5348 = vmatprep.mubr.msk.f32.mxu0 %vm5640_vm0, %v8170_v46  ;;  %v1087_v15 = vadd.f32 %v1086_v11, %v6736_v2  ;;  %v478_v3 = vld [vmem:[%s5885_s11 + $0x116] sm:$0xff] }
 0x1c0   : > { %v1088_v21 = vpop.f32.mrf.mxu1  ;;  %v1349_v41 = vpop.f32.mrf.mxu0  ;;  %v518_v52 = vld [vmem:[%s5885_s11 + $0x10f] sm:$0xff] }
 0x1c1   : > { %v479_v41 = vld [vmem:[%s5885_s11 + $0x11e] sm:$0xff] }
 0x1c2   : > { %v1091_v30 = vpop.f32.mrf.mxu1  ;;  %v1352_v38 = vpop.f32.mrf.mxu0  ;;  %1657 = vmatmul.mubr.f32.gmra.mxu1 %v6562_v20  ;;  %5349 = vmatmul.mubr.f32.gmra.mxu0 %v514_v59 }
 0x1c3   : > { %v6904_v7 = vadd.f32 %v1352_v38, %v1087_v15  ;;  %1661 = vmatprep.mubr.f32.mxu1 %v475_v50  ;;  %5351 = vmatprep.mubr.msk.f32.mxu0 %vm5640_vm0, %v8170_v46  ;;  %v1092_v14 = vadd.f32 %v1091_v30, %v6748_v37  ;;  %v519_v30 = vld [vmem:[%s5885_s11 + $0x117] sm:$0xff] }
 0x1c4   : > { %v1093_v32 = vpop.f32.mrf.mxu1  ;;  %v1354_v5 = vpop.f32.mrf.mxu0 }
 0x1c5   : > { %v480_v32 = vld [vmem:[%s5885_s11 + $0x126] sm:$0xff] }
 0x1c6   : > { %v1096_v2 = vpop.f32.mrf.mxu1  ;;  %v1357_v17 = vpop.f32.mrf.mxu0  ;;  %1662 = vmatmul.mubr.f32.gmra.mxu1 %v6576_v31  ;;  %5352 = vmatmul.mubr.f32.gmra.mxu0 %v515_v28 }
 0x1c7   : > { %v6912_v20 = vadd.f32 %v1357_v17, %v1092_v14  ;;  %1666 = vmatprep.mubr.f32.mxu1 %v476_v25  ;;  %5354 = vmatprep.mubr.msk.f32.mxu0 %vm5640_vm0, %v8170_v46  ;;  %v1097_v36 = vadd.f32 %v1096_v2, %v6755_v1  ;;  %v520_v14 = vld [vmem:[%s5885_s11 + $0x11f] sm:$0xff] }
 0x1c8   : > { %v1098_v40 = vpop.f32.mrf.mxu1  ;;  %v1359_v10 = vpop.f32.mrf.mxu0 }
 0x1ca   : > { %v1101_v37 = vpop.f32.mrf.mxu1  ;;  %v1362_v43 = vpop.f32.mrf.mxu0  ;;  %1667 = vmatmul.mubr.f32.gmra.mxu1 %v6590_v42  ;;  %5355 = vmatmul.mubr.f32.gmra.mxu0 %v516_v33  ;;  %v481_v33 = vld [vmem:[%s5885_s11 + $0x12e] sm:$0xff] }
 0x1cb   : > { %v6920_v31 = vadd.f32 %v1362_v43, %v1097_v36  ;;  %1671 = vmatprep.mubr.f32.mxu1 %v477_v8  ;;  %5357 = vmatprep.mubr.msk.f32.mxu0 %vm5640_vm0, %v8170_v46  ;;  %v1102_v54 = vadd.f32 %v1101_v37, %v6765_v13  ;;  %v521_v8 = vld [vmem:[%s5885_s11 + $0x127] sm:$0xff]  ;;  %v482_v43 = vld [vmem:[%s5885_s11 + $0x136] sm:$0xff] }
 0x1cc   : > { %v1103_v0 = vpop.f32.mrf.mxu1  ;;  %v1364_v23 = vpop.f32.mrf.mxu0 }
 0x1cd   : > { %v522_v23 = vld [vmem:[%s5885_s11 + $0x12f] sm:$0xff] }
 0x1ce   : > { %v1106_v1 = vpop.f32.mrf.mxu1  ;;  %v1367_v11 = vpop.f32.mrf.mxu0  ;;  %1672 = vmatmul.mubr.f32.gmra.mxu1 %v6602_v55  ;;  %5358 = vmatmul.mubr.f32.gmra.mxu0 %v517_v27 }
 0x1cf   : > { %v6928_v42 = vadd.f32 %v1367_v11, %v1102_v54  ;;  %1676 = vmatprep.mubr.f32.mxu1 %v478_v3  ;;  %5360 = vmatprep.mubr.msk.f32.mxu0 %vm5640_vm0, %v8170_v46  ;;  %v1107_v50 = vadd.f32 %v1106_v1, %v6773_v18  ;;  %v483_v1 = vld [vmem:[%s5885_s11 + $0x13e] sm:$0xff] }
 0x1d0   : > { %v1108_v59 = vpop.f32.mrf.mxu1  ;;  %v1369_v21 = vpop.f32.mrf.mxu0 }
 0x1d1   : > { %v523_v59 = vld [vmem:[%s5885_s11 + $0x137] sm:$0xff] }
 0x1d2   : > { %v1111_v13 = vpop.f32.mrf.mxu1  ;;  %v1372_v15 = vpop.f32.mrf.mxu0  ;;  %1677 = vmatmul.mubr.f32.gmra.mxu1 %v6614_v4  ;;  %5361 = vmatmul.mubr.f32.gmra.mxu0 %v518_v52 }
 0x1d3   : > { %v6936_v55 = vadd.f32 %v1372_v15, %v1107_v50  ;;  %1681 = vmatprep.mubr.f32.mxu1 %v479_v41  ;;  %5363 = vmatprep.mubr.msk.f32.mxu0 %vm5640_vm0, %v8170_v46  ;;  %v1112_v5 = vadd.f32 %v1111_v13, %v6522_v49  ;;  %v484_v50 = vld [vmem:[%s5885_s11 + $0x146] sm:$0xff] }
 0x1d4   : > { %v1113_v38 = vpop.f32.mrf.mxu1  ;;  %v1374_v28 = vpop.f32.mrf.mxu0 }
 0x1d6   : > { %v1116_v18 = vpop.f32.mrf.mxu1  ;;  %v1377_v25 = vpop.f32.mrf.mxu0  ;;  %1682 = vmatmul.mubr.f32.gmra.mxu1 %v6628_v26  ;;  %5364 = vmatmul.mubr.f32.gmra.mxu0 %v519_v30  ;;  %v524_v30 = vld [vmem:[%s5885_s11 + $0x13f] sm:$0xff] }
 0x1d7   : > { %v6944_v4 = vadd.f32 %v1377_v25, %v1112_v5  ;;  %1686 = vmatprep.mubr.f32.mxu1 %v480_v32  ;;  %5366 = vmatprep.mubr.msk.f32.mxu0 %vm5640_vm0, %v8170_v46  ;;  %v1117_v40 = vadd.f32 %v1116_v18, %v6538_v61  ;;  %v485_v32 = vld [vmem:[%s5885_s11 + $0x14e] sm:$0xff] }
 0x1d8   : > { %v1118_v2 = vpop.f32.mrf.mxu1  ;;  %v1379_v17 = vpop.f32.mrf.mxu0  ;;  %v8177_v25 = vld [vmem:[#allocation14_spill] sm:$0xff] }
 0x1da   : > { %v1121_v49 = vpop.f32.mrf.mxu1  ;;  %v1382_v10 = vpop.f32.mrf.mxu0  ;;  %1687 = vmatmul.mubr.f32.gmra.mxu1 %v6642_v45  ;;  %5367 = vmatmul.mubr.f32.gmra.mxu0 %v520_v14  ;;  %v525_v14 = vld [vmem:[%s5885_s11 + $0x147] sm:$0xff] }
 0x1db   : > { %v6952_v26 = vadd.f32 %v1382_v10, %v1117_v40  ;;  %1691 = vmatprep.mubr.f32.mxu1 %v481_v33  ;;  %5369 = vmatprep.mubr.msk.f32.mxu0 %vm5640_vm0, %v8170_v46  ;;  %v1122_v27 = vadd.f32 %v1121_v49, %v6550_v9  ;;  %v486_v33 = vld [vmem:[%s5885_s11 + $0x156] sm:$0xff]  ;;  %v8179_v40 = vld [vmem:[#allocation9_spill] sm:$0xff] }
 0x1dc   : > { %v1123_v36 = vpop.f32.mrf.mxu1  ;;  %v1384_v37 = vpop.f32.mrf.mxu0 }
 0x1dd   : > { %v526_v37 = vld [vmem:[%s5885_s11 + $0x14f] sm:$0xff] }
 0x1de   : > { %v1126_v61 = vpop.f32.mrf.mxu1  ;;  %v1387_v0 = vpop.f32.mrf.mxu0  ;;  %1692 = vmatmul.mubr.f32.gmra.mxu1 %v6653_v62  ;;  %5370 = vmatmul.mubr.f32.gmra.mxu0 %v521_v8  ;;  %v8180_v8 = vld [vmem:[#allocation16_spill] sm:$0xff] }
 0x1df   : > { %v6960_v45 = vadd.f32 %v1387_v0, %v1122_v27  ;;  %1696 = vmatprep.mubr.f32.mxu1 %v482_v43  ;;  %5372 = vmatprep.mubr.msk.f32.mxu0 %vm5640_vm0, %v8170_v46  ;;  %v1127_v11 = vadd.f32 %v1126_v61, %v6567_v22  ;;  %v487_v61 = vld [vmem:[%s5885_s11 + $0x15e] sm:$0xff]  ;;  %v8182_v0 = vld [vmem:[#allocation10_spill] sm:$0xff] }
 0x1e0   : > { %v1128_v3 = vpop.f32.mrf.mxu1  ;;  %v1389_v54 = vpop.f32.mrf.mxu0 }
 0x1e1   : > { %8174 = vst [vmem:[#allocation24_spill] sm:$0xff] %v6960_v45 }
 0x1e2   : > { %v1131_v9 = vpop.f32.mrf.mxu1  ;;  %v1392_v52 = vpop.f32.mrf.mxu0  ;;  %1697 = vmatmul.mubr.f32.gmra.mxu1 %v6659_v16  ;;  %5373 = vmatmul.mubr.f32.gmra.mxu0 %v522_v23 }
 0x1e3   : > { %v6968_v62 = vadd.f32 %v1392_v52, %v1127_v11  ;;  %1701 = vmatprep.mubr.f32.mxu1 %v483_v1  ;;  %5375 = vmatprep.mubr.msk.f32.mxu0 %vm5640_vm0, %v8170_v46  ;;  %v1132_v13 = vadd.f32 %v1131_v9, %v6579_v35  ;;  %v8183_v1 = vld [vmem:[#allocation17_spill] sm:$0xff]  ;;  %v527_v9 = vld [vmem:[%s5885_s11 + $0x157] sm:$0xff] }
 0x1e4   : > { %v1133_v21 = vpop.f32.mrf.mxu1  ;;  %v1394_v41 = vpop.f32.mrf.mxu0 }
 0x1e5   : > { %8175 = vst [vmem:[#allocation25_spill] sm:$0xff] %v6968_v62  ;;  %v488_v21 = vld [vmem:[%s5885_s11 + $0x166] sm:$0xff]  ;;  %v8185_v41 = vld [vmem:[#allocation11_spill] sm:$0xff] }
 0x1e6   : > { %v1136_v22 = vpop.f32.mrf.mxu1  ;;  %v1397_v15 = vpop.f32.mrf.mxu0  ;;  %1702 = vmatmul.mubr.f32.gmra.mxu1 %v6669_v47  ;;  %5376 = vmatmul.mubr.f32.gmra.mxu0 %v523_v59 }
 0x1e7   : > { %v6976_v16 = vadd.f32 %v1397_v15, %v1132_v13  ;;  %1706 = vmatprep.mubr.f32.mxu1 %v484_v50  ;;  %5378 = vmatprep.mubr.msk.f32.mxu0 %vm5640_vm0, %v8170_v46  ;;  %v1137_v5 = vadd.f32 %v1136_v22, %v6604_v56  ;;  %v8186_v15 = vld [vmem:[#allocation19_spill] sm:$0xff] }
 0x1e8   : > { %v1138_v38 = vpop.f32.mrf.mxu1  ;;  %v1399_v28 = vpop.f32.mrf.mxu0 }
 0x1e9   : > { %8176 = vst [vmem:[#allocation26_spill] sm:$0xff] %v6976_v16  ;;  %v447_v38 = vld [vmem:[%s5885_s11 + $0x165] sm:$0xff] }
 0x1ea   : > { %v1141_v35 = vpop.f32.mrf.mxu1  ;;  %v1402_v18 = vpop.f32.mrf.mxu0  ;;  %1707 = vmatmul.mubr.f32.gmra.mxu1 %v8177_v25  ;;  %5379 = vmatmul.mubr.f32.gmra.mxu0 %v524_v30  ;;  %v528_v28 = vld [vmem:[%s5885_s11 + $0x15f] sm:$0xff] }
 0x1eb   : > { %v6984_v47 = vadd.f32 %v1402_v18, %v1137_v5  ;;  %1711 = vmatprep.mubr.f32.mxu1 %v485_v32  ;;  %5381 = vmatprep.mubr.msk.f32.mxu0 %vm5640_vm0, %v8170_v46  ;;  %v1142_v49 = vadd.f32 %v1141_v35, %v8179_v40  ;;  %v489_v35 = vld [vmem:[%s5885_s11 + $0x16e] sm:$0xff]  ;;  %v8188_v18 = vld [vmem:[#allocation12_spill] sm:$0xff] }
 0x1ec   : > { %v1143_v2 = vpop.f32.mrf.mxu1  ;;  %v1404_v17 = vpop.f32.mrf.mxu0  ;;  %v448_v40 = vld [vmem:[%s5885_s11 + $0x16d] sm:$0xff] }
 0x1ed   : > { %8178 = vst [vmem:[#allocation14_spill] sm:$0xff] %v6984_v47 }
 0x1ee   : > { %v1146_v56 = vpop.f32.mrf.mxu1  ;;  %v1407_v10 = vpop.f32.mrf.mxu0  ;;  %1712 = vmatmul.mubr.f32.gmra.mxu1 %v8180_v8  ;;  %5382 = vmatmul.mubr.f32.gmra.mxu0 %v525_v14  ;;  %v8190_v8 = vld [vmem:[#allocation13_spill] sm:$0xff] }
 0x1ef   : > { %v6992_v36 = vadd.f32 %v1407_v10, %v1142_v49  ;;  %1716 = vmatprep.mubr.f32.mxu1 %v486_v33  ;;  %5384 = vmatprep.mubr.msk.f32.mxu0 %vm5640_vm0, %v8170_v46  ;;  %v1147_v23 = vadd.f32 %v1146_v56, %v8182_v0  ;;  %v529_v33 = vld [vmem:[%s5885_s11 + $0x167] sm:$0xff]  ;;  %v490_v10 = vld [vmem:[%s5885_s11 + $0x176] sm:$0xf] }
 0x1f0   : > { %v1148_v43 = vpop.f32.mrf.mxu1  ;;  %v1409_v27 = vpop.f32.mrf.mxu0  ;;  %v530_v0 = vld [vmem:[%s5885_s11 + $0x16f] sm:$0xff] }
 0x1f1   : > { %8181 = vst [vmem:[#allocation9_spill] sm:$0xff] %v6992_v36 }
 0x1f2   : > { %v1151_v3 = vpop.f32.mrf.mxu1  ;;  %v1412_v54 = vpop.f32.mrf.mxu0  ;;  %1717 = vmatmul.mubr.f32.gmra.mxu1 %v8183_v1  ;;  %5385 = vmatmul.mubr.f32.gmra.mxu0 %v526_v37  ;;  %v8192_v1 = vld [vmem:[#allocation15_spill] sm:$0xff] }
 0x1f3   : > { %v7000_v11 = vadd.f32 %v1412_v54, %v1147_v23  ;;  %1721 = vmatprep.mubr.f32.mxu1 %v487_v61  ;;  %5387 = vmatprep.mubr.msk.f32.mxu0 %vm5640_vm0, %v8170_v46  ;;  %v1152_v50 = vadd.f32 %v1151_v3, %v8185_v41  ;;  %v449_v23 = vld [vmem:[%s5885_s11 + $0x175] sm:$0xf] }
 0x1f4   : > { %v1153_v52 = vpop.f32.mrf.mxu1  ;;  %v1414_v59 = vpop.f32.mrf.mxu0  ;;  %v531_v41 = vld [vmem:[%s5885_s11 + $0x177] sm:$0xf] }
 0x1f5   : > { %8184 = vst [vmem:[#allocation16_spill] sm:$0xff] %v7000_v11 }
 0x1f6   : > { %v1156_v13 = vpop.f32.mrf.mxu1  ;;  %v1417_v22 = vpop.f32.mrf.mxu0  ;;  %1722 = vmatmul.mubr.f32.gmra.mxu1 %v8186_v15  ;;  %5388 = vmatmul.mubr.f32.gmra.mxu0 %v527_v9 }
 0x1f7   : > { %v7008_v30 = vadd.f32 %v1417_v22, %v1152_v50  ;;  %1726 = vmatprep.mubr.f32.mxu1 %v488_v21  ;;  %5390 = vmatprep.mubr.msk.f32.mxu0 %vm5640_vm0, %v8170_v46  ;;  %v1157_v25 = vadd.f32 %v1156_v13, %v8188_v18  ;;  %v8194_v22 = vld [vmem:[#allocation18_spill] sm:$0xff]  ;;  %v8196_v18 = vld [vmem:[#allocation20_spill] sm:$0xff] }
 0x1f8   : > { %v1158_v32 = vpop.f32.mrf.mxu1  ;;  %v1419_v5 = vpop.f32.mrf.mxu0 }
 0x1f9   : > { %8187 = vst [vmem:[#allocation10_spill] sm:$0xff] %v7008_v30 }
 0x1fa   : > { %v1161_v14 = vpop.f32.mrf.mxu1  ;;  %v1422_v2 = vpop.f32.mrf.mxu0  ;;  %1727 = vmatmul.mubr.f32.gmra.mxu1 %v447_v38  ;;  %5391 = vmatmul.mubr.f32.gmra.mxu0 %v528_v28 }
 0x1fb   : > { %v7016_v17 = vadd.f32 %v1422_v2, %v1157_v25  ;;  %5393 = vmatprep.mubr.msk.f32.mxu0 %vm5640_vm0, %v8170_v46  ;;  %1731 = vmatprep.mubr.f32.mxu1 %v489_v35  ;;  %v1162_v37 = vadd.f32 %v1161_v14, %v8190_v8 }
 0x1fc   : > { %v1163_v49 = vpop.f32.mrf.mxu1  ;;  %v1424_v56 = vpop.f32.mrf.mxu0 }
 0x1fd   : > { %8189 = vst [vmem:[#allocation17_spill] sm:$0xff] %v7016_v17 }
 0x1fe   : > { %v1166_v43 = vpop.f32.mrf.mxu1  ;;  %v1427_v27 = vpop.f32.mrf.mxu0  ;;  %5394 = vmatmul.mubr.f32.gmra.mxu0 %v529_v33  ;;  %1732 = vmatmul.mubr.f32.gmra.mxu1 %v448_v40 }
 0x1ff   : > { %v7024_v61 = vadd.f32 %v1427_v27, %v1162_v37  ;;  %5396 = vmatprep.mubr.msk.f32.mxu0 %vm5640_vm0, %v8170_v46  ;;  %1735 = vmatprep.mubr.f32.mxu1 %v490_v10  ;;  %v1167_v9 = vadd.f32 %v1166_v43, %v8192_v1  ;;  %v8199_v27 = vld [vmem:[#allocation21_spill] sm:$0xff] }
 0x200   : > { %v1168_v3 = vpop.f32.mrf.mxu1  ;;  %v1429_v54 = vpop.f32.mrf.mxu0 }
 0x201   : > { %8191 = vst [vmem:[#allocation11_spill] sm:$0xff] %v7024_v61 }
 0x202   : > { %v1171_v52 = vpop.f32.mrf.mxu1  ;;  %v1432_v59 = vpop.f32.mrf.mxu0  ;;  %5397 = vmatmul.mubr.f32.gmra.mxu0 %v530_v0  ;;  %1736 = vmatmul.mubr.f32.gmra.mxu1 %v449_v23 }
 0x203   : > { %v7031_v21 = vadd.f32 %v1432_v59, %v1167_v9  ;;  %5399 = vmatprep.mubr.msk.f32.mxu0 %vm5640_vm0, %v8170_v46  ;;  %v1172_v15 = vadd.f32 %v1171_v52, %v8194_v22  ;;  %v8201_v52 = vld [vmem:[#allocation22_spill] sm:$0xff] }
 0x204   : > { %v1173_v50 = vpop.f32.mrf.mxu1  ;;  %v1434_v13 = vpop.f32.mrf.mxu0 }
 0x205   : > { %8193 = vst [vmem:[#allocation19_spill] sm:$0xff] %v7031_v21 }
 0x206   : > { %v1176_v38 = vpop.f32.mrf.mxu1  ;;  %v1437_v28 = vpop.f32.mrf.mxu0  ;;  %5400 = vmatmul.mubr.f32.gmra.mxu0 %v531_v41 }
 0x207   : > { %v7037_v32 = vadd.f32 %v1437_v28, %v1172_v15  ;;  %v1177_v25 = vadd.f32 %v1176_v38, %v8196_v18  ;;  %v8203_v15 = vld [vmem:[#allocation23_spill] sm:$0xff] }
 0x208   : > { %v1178_v5 = vpop.f32.mrf.mxu1  ;;  %v1439_v35 = vpop.f32.mrf.mxu0 }
 0x209   : > { %8195 = vst [vmem:[#allocation12_spill] sm:$0xff] %v7037_v32 }
 0x20a   : > { %v1181_v14 = vpop.f32.mrf.mxu1  ;;  %v1442_v2 = vpop.f32.mrf.mxu0 }
 0x20b   : > { %v7040_v33 = vadd.f32 %v1442_v2, %v1177_v25  ;;  %v1182_v49 = vadd.f32 %v1181_v14, %v6718_v57 }
 0x20c   : > { %v1183_v40 = vpop.f32.mrf.mxu1  ;;  %v1444_v46 = vpop.f32.mrf.mxu0 }
 0x20d   : > { %8197 = vst [vmem:[#allocation13_spill] sm:$0xff] %v7040_v33 }
 0x20e   : > { %v1186_v56 = vpop.f32.mrf.mxu1  ;;  %v1447_v10 = vpop.f32.mrf.mxu0 }
 0x20f   : > { %v7043_v8 = vadd.f32 %v1447_v10, %v1182_v49  ;;  %v1187_v0 = vadd.f32 %v1186_v56, %v8199_v27 }
 0x210   : > { %v1188_v37 = vpop.f32.mrf.mxu1  ;;  %v1449_v43 = vpop.f32.mrf.mxu0 }
 0x211   : > { %8198 = vst [vmem:[#allocation15_spill] sm:$0xff] %v7043_v8  ;;  %v5641_v43 = vmov 1983009808  }
 0x212   : > { %v1191_v23 = vpop.f32.mrf.mxu1  ;;  %v1452_v3 = vpop.f32.mrf.mxu0  ;;  %v2045_v27 = vunpack.c.l.s4 %v5641_v43 }
 0x213   : > { %v7046_v54 = vadd.f32 %v1452_v3, %v1187_v0  ;;  %v1192_v59 = vadd.f32 %v1191_v23, %v8201_v52  ;;  %v2047_v0 = vlaneseq }
 0x214   : > { %v1193_v1 = vpop.f32.mrf.mxu1  ;;  %v1454_v9 = vpop.f32.mrf.mxu0  ;;  %v2046_v52 = vunpack.c.0.s8 %v2045_v27 }
 0x215   : > { %8200 = vst [vmem:[#allocation18_spill] sm:$0xff] %v7046_v54 }
 0x216   : > { %v1196_v41 = vpop.f32.mrf.mxu1  ;;  %v1457_v50 = vpop.f32.mrf.mxu0 }
 0x217   : > { %v7049_v13 = vadd.f32 %v1457_v50, %v1192_v59  ;;  %v1197_v38 = vadd.f32 %v1196_v41, %v8203_v15  ;;  %v2048_v59 = vshrl.u32 %v2047_v0, 7 }
 0x218   : > { %v1198_v57 = vpop.f32.mrf.mxu1  ;;  %v1459_v22 = vpop.f32.mrf.mxu0 }
 0x219   : > { %8202 = vst [vmem:[#allocation20_spill] sm:$0xff] %v7049_v13  ;;  %v5181_v57 = vld [vmem:[%s8146_s2] ss:$0 sm:$0xff] }
 0x21a   : > { %v1201_v28 = vpop.f32.mrf.mxu1  ;;  %v1462_v5 = vpop.f32.mrf.mxu0 }
 0x21b   : > { %v7052_v35 = vadd.f32 %v1462_v5, %v1197_v38  ;;  %v7058_v28 = vsub.s32 %v2046_v52, %v2048_v59 }
 0x21c   : > { %v1202_v18 = vpop.f32.mrf.mxu1  ;;  %v1464_v25 = vpop.f32.mrf.mxu0 }
 0x21d   : > { %8204 = vst [vmem:[#allocation21_spill] sm:$0xff] %v7052_v35  ;;  %v3203_v25 = vcombine.high %v5181_v57, %v5181_v57 }
 0x21e   : > { %v1205_v14 = vpop.f32.mrf.mxu1  ;;  %v1467_v2 = vpop.f32.mrf.mxu0 }
 0x21f   : > { %v7066_v43 = vrot.slane %v3203_v25, %v7058_v28 }
 0x220   : > { %v1206_v40 = vpop.f32.mrf.mxu1  ;;  %v1468_v46 = vpop.f32.mrf.mxu0 }
 0x222   : > { %v1471_v49 = vpop.f32.mrf.mxu0  ;;  %v1540_v56 = vpop.f32.mrf.mxu1 }
 0x224   : > { %v1472_v10 = vpop.f32.mrf.mxu0  ;;  %v1541_v37 = vpop.f32.mrf.mxu1 }
 0x225   : > { %v7063_v10 = vrot.slane %v5181_v57, %v7058_v28 }
 0x226   : > { %v1544_v23 = vpop.f32.mrf.mxu1  ;;  %v1806_v3 = vpop.f32.mrf.mxu0 }
 0x228   : > { %v1545_v1 = vpop.f32.mrf.mxu1  ;;  %v5281_v9 = vpop.f32.mrf.mxu0 }
 0x22a   : > { %v1548_v41 = vpop.f32.mrf.mxu1  ;;  %v1810_v50 = vpop.f32.mrf.mxu0 }
 0x22b   : > { %v1549_v38 = vadd.f32 %v1548_v41, %v6792_v48  ;;  %v7075_v50 = vcombine.high %v7063_v10, %v7063_v10 }
 0x22c   : > { %v1550_v22 = vpop.f32.mrf.mxu1  ;;  %v5284_v15 = vpop.f32.mrf.mxu0 }
 0x22d   : > { %v7081_v15 = vcombine.high %v7066_v43, %v7066_v43 }
 0x22e   : > { %v1553_v5 = vpop.f32.mrf.mxu1  ;;  %v1814_v18 = vpop.f32.mrf.mxu0 }
 0x22f   : > { %v1815_v14 = vadd.f32 %v1814_v18, %v1549_v38  ;;  %v1554_v46 = vadd.f32 %v1553_v5, %v6800_v53 }
 0x230   : > { %v1555_v2 = vpop.f32.mrf.mxu1  ;;  %v5287_v40 = vpop.f32.mrf.mxu0 }
 0x231   : > { %v2043_v49 = vcombine.high %v1815_v14, %v1815_v14  ;;  %v2050_v56 = vrot.slane %v1815_v14, %v7058_v28 }
 0x232   : > { %v1558_v48 = vpop.f32.mrf.mxu1  ;;  %v1819_v37 = vpop.f32.mrf.mxu0 }
 0x233   : > { %v2057_v27 = vrot.slane %v2043_v49, %v7058_v28  ;;  %v2058_v0 = vcombine.high %v2050_v56, %v2050_v56  ;;  %v1820_v23 = vadd.f32 %v1819_v37, %v1554_v46  ;;  %v1559_v57 = vadd.f32 %v1558_v48, %v6808_v58 }
 0x234   : > { %v1560_v53 = vpop.f32.mrf.mxu1  ;;  %v5290_v1 = vpop.f32.mrf.mxu0 }
 0x235   : > { %v2059_v9 = vcombine.high %v2057_v27, %v2057_v27  ;;  %v5165_v52 = vrot.slane %v2058_v0, 9  ;;  %v2671_v59 = vrot.slane %v2057_v27, 7  ;;  %v2060_v41 = vcombine.high %v1820_v23, %v1820_v23 }
 0x236   : > { %v2067_v22 = vrot.slane %v1820_v23, %v7058_v28  ;;  %v1563_v38 = vpop.f32.mrf.mxu1  ;;  %v1824_v5 = vpop.f32.mrf.mxu0 }
 0x237   : > { %v2672_v18 = vsel %vm7069_vm7, %v5165_v52, %v2671_v59  ;;  %v2673_v25 = vrot.slane %v2671_v59, 2  ;;  %v2674_v14 = vrot.slane %v2059_v9, 7  ;;  %v2074_v2 = vrot.slane %v2060_v41, %v7058_v28 }
 0x238   : > { %v3224_v40 = vadd.f32 %v7063_v10, %v2672_v18  ;;  %v2075_v46 = vcombine.high %v2067_v22, %v2067_v22  ;;  %v2677_v49 = vrot.slane %v2067_v22, 7  ;;  %v7088_v58 = vadd.f32 %v1563_v38, %v6816_v63  ;;  %v1565_v56 = vpop.f32.mrf.mxu1  ;;  %v5293_v48 = vpop.f32.mrf.mxu0 }
 0x239   : > { %v2675_v37 = vsel %vm7069_vm7, %v2673_v25, %v2674_v14  ;;  %v2676_v27 = vrot.slane %v2674_v14, 2  ;;  %v2076_v0 = vcombine.high %v2074_v2, %v2074_v2  ;;  %v2683_v23 = vrot.slane %v2074_v2, 7 }
 0x23a   : > { %v3225_v53 = vadd.f32 %v7075_v50, %v2675_v37  ;;  %v4126_v1 = vmul.f32 %v3224_v40, %v3224_v40  ;;  %v2679_v9 = vrot.slane %v2677_v49, 2  ;;  %v2680_v52 = vrot.slane %v2075_v46, 7  ;;  %v1568_v59 = vpop.f32.mrf.mxu1  ;;  %v1829_v41 = vpop.f32.mrf.mxu0 }
 0x23b   : > { %v2678_v63 = vsel %vm7069_vm7, %v2676_v27, %v2677_v49  ;;  %v2685_v22 = vrot.slane %v2683_v23, 2  ;;  %v2686_v38 = vrot.slane %v2076_v0, 7  ;;  %v1825_v18 = vadd.f32 %v1824_v5, %v1559_v57 }
 0x23c   : > { %v3480_v56 = vcombine.low %v3224_v40, %v3225_v53  ;;  %v4127_v48 = vmul.f32 %v3225_v53, %v3225_v53  ;;  %v2681_v25 = vsel %vm7069_vm7, %v2679_v9, %v2680_v52  ;;  %v2682_v14 = vrot.slane %v2680_v52, 2  ;;  %v1570_v2 = vpop.f32.mrf.mxu1  ;;  %v5296_v37 = vpop.f32.mrf.mxu0 }
 0x23d   : > { %v2687_v46 = vsel %vm7069_vm7, %v2685_v22, %v2686_v38  ;;  %v2688_v35 = vrot.slane %v2686_v38, 2  ;;  %v3226_v49 = vadd.f32 %v7066_v43, %v2678_v63  ;;  %v3227_v27 = vadd.f32 %v7081_v15, %v2681_v25 }
 0x23e   : > { %v3488_v57 = vrot.slane %v3480_v56, %v7058_v28  ;;  %v4382_v5 = vcombine.low %v4126_v1, %v4127_v48  ;;  %v2684_v40 = vsel %vm7069_vm7, %v2682_v14, %v2683_v23  ;;  %v3229_v0 = vadd.f32 %v7075_v50, %v2687_v46  ;;  %v1573_v53 = vpop.f32.mrf.mxu1  ;;  %v1834_v9 = vpop.f32.mrf.mxu0 }
 0x23f   : > { %v3228_v52 = vadd.f32 %v7063_v10, %v2684_v40  ;;  %v3481_v2 = vcombine.low %v3226_v49, %v3227_v27  ;;  %v4128_v22 = vmul.f32 %v3226_v49, %v3226_v49  ;;  %v4129_v38 = vmul.f32 %v3227_v27, %v3227_v27 }
 0x240   : > { %v7111_v63 = vrot.slane %v4382_v5, %v7058_v28  ;;  %v4131_v25 = vmul.f32 %v3229_v0, %v3229_v0  ;;  %v2077_v37 = vcombine.high %v1825_v18, %v1825_v18  ;;  %v2084_v1 = vrot.slane %v1825_v18, %v7058_v28  ;;  %v1575_v56 = vpop.f32.mrf.mxu1  ;;  %v5299_v48 = vpop.f32.mrf.mxu0 }
 0x241   : > { %v3495_v23 = vrot.slane %v3481_v2, %v7058_v28  ;;  %v3497_v14 = vcombine.low %v3228_v52, %v3229_v0  ;;  %v4130_v46 = vmul.f32 %v3228_v52, %v3228_v52  ;;  %v4383_v13 = vcombine.low %v4128_v22, %v4129_v38 }
 0x242   : > { %v2091_v54 = vrot.slane %v2077_v37, %v7058_v28  ;;  %v2092_v40 = vcombine.high %v2084_v1, %v2084_v1  ;;  %v2689_v49 = vrot.slane %v2084_v1, 7  ;;  %v1569_v27 = vadd.f32 %v1568_v59, %v6824_v6  ;;  %v1578_v5 = vpop.f32.mrf.mxu1  ;;  %v7117_v8 = vpop.f32.mrf.mxu0 }
 0x243   : > { %v7119_v33 = vcombine.low %v3488_v57, %v3495_v23  ;;  %v3505_v18 = vrot.slane %v3497_v14, %v7058_v28  ;;  %v7123_v56 = vrot.slane %v4383_v13, %v7058_v28  ;;  %v4399_v0 = vcombine.low %v4130_v46, %v4131_v25 }
 0x244   : > { %v2093_v52 = vcombine.high %v2091_v54, %v2091_v54  ;;  %v2690_v2 = vsel %vm7069_vm7, %v2688_v35, %v2689_v49  ;;  %v2691_v22 = vrot.slane %v2689_v49, 2  ;;  %v2692_v38 = vrot.slane %v2092_v40, 7  ;;  %v1580_v37 = vpop.f32.mrf.mxu1  ;;  %v5302_v1 = vpop.f32.mrf.mxu0 }
 0x245   : > { %4056 = vst [vmem:[%s7129_s17] sm:$0xff] %v7119_v33  ;;  %v4398_v6 = vcombine.low %v7111_v63, %v7123_v56  ;;  %v4407_v13 = vrot.slane %v4399_v0, %v7058_v28  ;;  %v5166_v59 = vrot.slane %v2091_v54, 9  ;;  %v3230_v57 = vadd.f32 %v7066_v43, %v2690_v2 }
 0x246   : > { %v2693_v35 = vsel %vm7069_vm7, %v2691_v22, %v2692_v38  ;;  %v2696_v25 = vrot.slane %v2093_v52, 7  ;;  %v1830_v48 = vadd.f32 %v1829_v41, %v7088_v58  ;;  %v7141_v23 = vadd.f32 %v1573_v53, %v6832_v12  ;;  %v7143_v14 = vpop.f32.mrf.mxu1  ;;  %v7145_v46 = vpop.f32.mrf.mxu0 }
 0x247   : > { %v3231_v63 = vadd.f32 %v7081_v15, %v2693_v35  ;;  %v4132_v40 = vmul.f32 %v3230_v57, %v3230_v57  ;;  %v1835_v49 = vadd.f32 %v1834_v9, %v1569_v27  ;;  %v7149_v54 = vadd.f32 %v1578_v5, %v6840_v19 }
 0x248   : > { %v2697_v56 = vsel %vm7069_vm7, %v5166_v59, %v2696_v25  ;;  %v2698_v0 = vrot.slane %v2696_v25, 2  ;;  %v2094_v52 = vcombine.high %v1830_v48, %v1830_v48  ;;  %v2101_v58 = vrot.slane %v1830_v48, %v7058_v28  ;;  %v1585_v12 = vpop.f32.mrf.mxu1  ;;  %v5305_v41 = vpop.f32.mrf.mxu0 }
 0x249   : > { %v3232_v53 = vadd.f32 %v7063_v10, %v2697_v56  ;;  %v3498_v2 = vcombine.low %v3230_v57, %v3231_v63  ;;  %v4133_v22 = vmul.f32 %v3231_v63, %v3231_v63  ;;  %v2111_v38 = vcombine.high %v1835_v49, %v1835_v49 }
 0x24a   : > { %v2108_v37 = vrot.slane %v2094_v52, %v7058_v28  ;;  %v2109_v9 = vcombine.high %v2101_v58, %v2101_v58  ;;  %v2699_v27 = vrot.slane %v2101_v58, 7  ;;  %v2118_v19 = vrot.slane %v1835_v49, %v7058_v28  ;;  %v7157_v5 = vpop.f32.mrf.mxu1  ;;  %v7159_v1 = vpop.f32.mrf.mxu0 }
 0x24b   : > { %v3512_v59 = vrot.slane %v3498_v2, %v7058_v28  ;;  %v4134_v35 = vmul.f32 %v3232_v53, %v3232_v53  ;;  %v4400_v25 = vcombine.low %v4132_v40, %v4133_v22  ;;  %v7163_v48 = vrot.slane %v2111_v38, %v7058_v28 }
 0x24c   : > { %v2110_v57 = vcombine.high %v2108_v37, %v2108_v37  ;;  %v2700_v63 = vsel %vm7069_vm7, %v2698_v0, %v2699_v27  ;;  %v2701_v56 = vrot.slane %v2699_v27, 2  ;;  %v2702_v52 = vrot.slane %v2109_v9, 7  ;;  %v1590_v58 = vpop.f32.mrf.mxu1  ;;  %v5308_v49 = vpop.f32.mrf.mxu0 }
 0x24d   : > { %v3513_v12 = vcombine.low %v3505_v18, %v3512_v59  ;;  %v4414_v41 = vrot.slane %v4400_v25, %v7058_v28  ;;  %v2705_v32 = vrot.slane %v2108_v37, 7  ;;  %v3233_v2 = vadd.f32 %v7075_v50, %v2700_v63 }
 0x24e   : > { %v2703_v40 = vsel %vm7069_vm7, %v2701_v56, %v2702_v52  ;;  %v2704_v22 = vrot.slane %v2702_v52, 2  ;;  %v2708_v38 = vrot.slane %v2110_v57, 7  ;;  %v2126_v21 = vcombine.high %v2118_v19, %v2118_v19  ;;  %v7171_v61 = vpop.f32.mrf.mxu1  ;;  %v7173_v17 = vpop.f32.mrf.mxu0 }
 0x24f   : > { %4057 = vst [vmem:[%s7129_s17 + $0x8] sm:$0xff] %v3513_v12  ;;  %v4088_v0 = vadd.f32 %v3513_v12, %v7119_v33  ;;  %v4415_v9 = vcombine.low %v4407_v13, %v4414_v41  ;;  %v2707_v18 = vrot.slane %v2705_v32, 2  ;;  %v3234_v27 = vadd.f32 %v7066_v43, %v2703_v40 }
 0x250   : > { %v2706_v37 = vsel %vm7069_vm7, %v2704_v22, %v2705_v32  ;;  %v2710_v59 = vrot.slane %v2708_v38, 2  ;;  %v3514_v25 = vcombine.low %v3232_v53, %v3233_v2  ;;  %v4135_v63 = vmul.f32 %v3233_v2, %v3233_v2  ;;  %v1595_v56 = vpop.f32.mrf.mxu1  ;;  %v5311_v57 = vpop.f32.mrf.mxu0 }
 0x251   : > { %v4958_v52 = vadd.f32 %v4415_v9, %v4398_v6  ;;  %v2709_v58 = vsel %vm7069_vm7, %v2707_v18, %v2708_v38  ;;  %v3235_v49 = vadd.f32 %v7081_v15, %v2706_v37  ;;  %v4136_v30 = vmul.f32 %v3234_v27, %v3234_v27 }
 0x252   : > { %v3236_v33 = vadd.f32 %v7063_v10, %v2709_v58  ;;  %v3522_v13 = vrot.slane %v3514_v25, %v7058_v28  ;;  %v4416_v12 = vcombine.low %v4134_v35, %v4135_v63  ;;  %v2127_v32 = vcombine.high %v7163_v48, %v7163_v48  ;;  %v7187_v41 = vpop.f32.mrf.mxu1  ;;  %v7189_v53 = vpop.f32.mrf.mxu0 }
 0x253   : > { %v3515_v2 = vcombine.low %v3234_v27, %v3235_v49  ;;  %v4137_v6 = vmul.f32 %v3235_v49, %v3235_v49  ;;  %v2711_v40 = vrot.slane %v2118_v19, 7  ;;  %v2714_v22 = vrot.slane %v2126_v21, 7 }
 0x254   : > { %v4138_v38 = vmul.f32 %v3236_v33, %v3236_v33  ;;  %v4424_v9 = vrot.slane %v4416_v12, %v7058_v28  ;;  %v2717_v18 = vrot.slane %v7163_v48, 7  ;;  %v5167_v37 = vrot.slane %v2127_v32, 9  ;;  %v1600_v56 = vpop.f32.mrf.mxu1  ;;  %v5314_v25 = vpop.f32.mrf.mxu0 }
 0x255   : > { %v3529_v35 = vrot.slane %v3515_v2, %v7058_v28  ;;  %v4417_v63 = vcombine.low %v4136_v30, %v4137_v6  ;;  %v2712_v57 = vsel %vm7069_vm7, %v2710_v59, %v2711_v40  ;;  %v2713_v58 = vrot.slane %v2711_v40, 2 }
 0x256   : > { %v2716_v11 = vrot.slane %v2714_v22, 2  ;;  %v3237_v19 = vadd.f32 %v7075_v50, %v2712_v57  ;;  %v1840_v21 = vadd.f32 %v7117_v8, %v7141_v23  ;;  %v7201_v48 = vadd.f32 %v7143_v14, %v6848_v24  ;;  %v7203_v27 = vpop.f32.mrf.mxu1  ;;  %v7205_v49 = vpop.f32.mrf.mxu0 }
 0x257   : > { %v3530_v30 = vcombine.low %v3522_v13, %v3529_v35  ;;  %v4431_v12 = vrot.slane %v4417_v63, %v7058_v28  ;;  %v2715_v59 = vsel %vm7069_vm7, %v2713_v58, %v2714_v22  ;;  %v1845_v32 = vadd.f32 %v7145_v46, %v7149_v54 }
 0x258   : > { %v2718_v8 = vsel %vm7069_vm7, %v2716_v11, %v2717_v18  ;;  %v3238_v23 = vadd.f32 %v7066_v43, %v2715_v59  ;;  %v3531_v24 = vcombine.low %v3236_v33, %v3237_v19  ;;  %v4139_v14 = vmul.f32 %v3237_v19, %v3237_v19  ;;  %v1605_v2 = vpop.f32.mrf.mxu1  ;;  %v5317_v6 = vpop.f32.mrf.mxu0 }
 0x259   : > { %4058 = vst [vmem:[%s7129_s17 + $0x10] sm:$0xff] %v3530_v30  ;;  %v4089_v40 = vadd.f32 %v4088_v0, %v3530_v30  ;;  %v4432_v13 = vcombine.low %v4424_v9, %v4431_v12  ;;  %v3239_v56 = vadd.f32 %v7081_v15, %v2718_v8  ;;  %v2128_v25 = vcombine.high %v1840_v21, %v1840_v21 }
 0x25a   : > { %v3539_v22 = vrot.slane %v3531_v24, %v7058_v28  ;;  %v4140_v35 = vmul.f32 %v3238_v23, %v3238_v23  ;;  %v4433_v63 = vcombine.low %v4138_v38, %v4139_v14  ;;  %v2135_v46 = vrot.slane %v1840_v21, %v7058_v28  ;;  %v7219_v54 = vpop.f32.mrf.mxu1  ;;  %v7221_v11 = vpop.f32.mrf.mxu0 }
 0x25b   : > { %v4959_v33 = vadd.f32 %v4958_v52, %v4432_v13  ;;  %v3532_v18 = vcombine.low %v3238_v23, %v3239_v56  ;;  %v4141_v57 = vmul.f32 %v3239_v56, %v3239_v56  ;;  %v2142_v58 = vrot.slane %v2128_v25, %v7058_v28 }
 0x25c   : > { %v4441_v0 = vrot.slane %v4433_v63, %v7058_v28  ;;  %v2143_v9 = vcombine.high %v2135_v46, %v2135_v46  ;;  %v2721_v19 = vrot.slane %v2135_v46, 7  ;;  %v2145_v30 = vcombine.high %v1845_v32, %v1845_v32  ;;  %v1610_v12 = vpop.f32.mrf.mxu1  ;;  %v5320_v59 = vpop.f32.mrf.mxu0 }
 0x25d   : > { %v3546_v38 = vrot.slane %v3532_v18, %v7058_v28  ;;  %v4434_v8 = vcombine.low %v4140_v35, %v4141_v57  ;;  %v2144_v21 = vcombine.high %v2142_v58, %v2142_v58  ;;  %v2727_v24 = vrot.slane %v2142_v58, 7 }
 0x25e   : > { %v2722_v14 = vsel %vm7069_vm7, %v5167_v37, %v2721_v19  ;;  %v2723_v52 = vrot.slane %v2721_v19, 2  ;;  %v2724_v23 = vrot.slane %v2143_v9, 7  ;;  %v2152_v2 = vrot.slane %v1845_v32, %v7058_v28  ;;  %v7229_v6 = vpop.f32.mrf.mxu1  ;;  %v7231_v13 = vpop.f32.mrf.mxu0 }
 0x25f   : > { %v3547_v56 = vcombine.low %v3539_v22, %v3546_v38  ;;  %v4448_v25 = vrot.slane %v4434_v8, %v7058_v28  ;;  %v2729_v63 = vrot.slane %v2727_v24, 2  ;;  %v2730_v46 = vrot.slane %v2144_v21, 7 }
 0x260   : > { %v2725_v35 = vsel %vm7069_vm7, %v2723_v52, %v2724_v23  ;;  %v2726_v18 = vrot.slane %v2724_v23, 2  ;;  %v3240_v37 = vadd.f32 %v7063_v10, %v2722_v14  ;;  %v2159_v57 = vrot.slane %v2145_v30, %v7058_v28  ;;  %v1615_v58 = vpop.f32.mrf.mxu1  ;;  %v5323_v9 = vpop.f32.mrf.mxu0 }
 0x261   : > { %4059 = vst [vmem:[%s7129_s17 + $0x18] sm:$0xff] %v3547_v56  ;;  %v4090_v32 = vadd.f32 %v4089_v40, %v3547_v56  ;;  %v4449_v19 = vcombine.low %v4441_v0, %v4448_v25  ;;  %v2731_v22 = vsel %vm7069_vm7, %v2729_v63, %v2730_v46  ;;  %v2732_v12 = vrot.slane %v2730_v46, 2 }
 0x262   : > { %v2728_v59 = vsel %vm7069_vm7, %v2726_v18, %v2727_v24  ;;  %v3241_v38 = vadd.f32 %v7075_v50, %v2725_v35  ;;  %v3243_v8 = vadd.f32 %v7081_v15, %v2731_v22  ;;  %v4142_v21 = vmul.f32 %v3240_v37, %v3240_v37  ;;  %v7245_v14 = vpop.f32.mrf.mxu1  ;;  %v7247_v30 = vpop.f32.mrf.mxu0 }
 0x263   : > { %v4960_v52 = vadd.f32 %v4959_v33, %v4449_v19  ;;  %v3242_v40 = vadd.f32 %v7066_v43, %v2728_v59  ;;  %v2160_v0 = vcombine.high %v2152_v2, %v2152_v2  ;;  %v2161_v23 = vcombine.high %v2159_v57, %v2159_v57 }
 0x264   : > { %v3548_v56 = vcombine.low %v3240_v37, %v3241_v38  ;;  %v4143_v25 = vmul.f32 %v3241_v38, %v3241_v38  ;;  %v4145_v63 = vmul.f32 %v3243_v8, %v3243_v8  ;;  %v2733_v46 = vrot.slane %v2152_v2, 7  ;;  %v1620_v58 = vpop.f32.mrf.mxu1  ;;  %v5326_v24 = vpop.f32.mrf.mxu0 }
 0x265   : > { %v3549_v18 = vcombine.low %v3242_v40, %v3243_v8  ;;  %v4144_v35 = vmul.f32 %v3242_v40, %v3242_v40  ;;  %v2736_v9 = vrot.slane %v2160_v0, 7  ;;  %v2739_v22 = vrot.slane %v2159_v57, 7 }
 0x266   : > { %v3556_v36 = vrot.slane %v3548_v56, %v7058_v28  ;;  %v4450_v47 = vcombine.low %v4142_v21, %v4143_v25  ;;  %v2734_v33 = vsel %vm7069_vm7, %v2732_v12, %v2733_v46  ;;  %v2735_v19 = vrot.slane %v2733_v46, 2  ;;  %v7253_v59 = vpop.f32.mrf.mxu1  ;;  %v7255_v16 = vpop.f32.mrf.mxu0 }
 0x267   : > { %v3563_v37 = vrot.slane %v3549_v18, %v7058_v28  ;;  %v4451_v2 = vcombine.low %v4144_v35, %v4145_v63  ;;  %v2738_v38 = vrot.slane %v2736_v9, 2  ;;  %v2741_v58 = vrot.slane %v2739_v22, 2 }
 0x268   : > { %v4458_v8 = vrot.slane %v4450_v47, %v7058_v28  ;;  %v2737_v57 = vsel %vm7069_vm7, %v2735_v19, %v2736_v9  ;;  %v2742_v21 = vrot.slane %v2161_v23, 7  ;;  %v3244_v40 = vadd.f32 %v7063_v10, %v2734_v33  ;;  %v1625_v12 = vpop.f32.mrf.mxu1  ;;  %v5329_v0 = vpop.f32.mrf.mxu0 }
 0x269   : > { %v3564_v56 = vcombine.low %v3556_v36, %v3563_v37  ;;  %v4465_v25 = vrot.slane %v4451_v2, %v7058_v28  ;;  %v2740_v46 = vsel %vm7069_vm7, %v2738_v38, %v2739_v22  ;;  %v3245_v63 = vadd.f32 %v7075_v50, %v2737_v57 }
 0x26a   : > { %v2743_v47 = vsel %vm7069_vm7, %v2741_v58, %v2742_v21  ;;  %v3246_v24 = vadd.f32 %v7066_v43, %v2740_v46  ;;  %v4146_v18 = vmul.f32 %v3244_v40, %v3244_v40  ;;  %v1589_v23 = vadd.f32 %v7157_v5, %v6856_v29  ;;  %v7271_v35 = vpop.f32.mrf.mxu1  ;;  %v7273_v9 = vpop.f32.mrf.mxu0 }
 0x26b   : > { %4060 = vst [vmem:[%s7129_s17 + $0x20] sm:$0xff] %v3564_v56  ;;  %v4091_v36 = vadd.f32 %v4090_v32, %v3564_v56  ;;  %v4466_v33 = vcombine.low %v4458_v8, %v4465_v25  ;;  %v3247_v22 = vadd.f32 %v7081_v15, %v2743_v47  ;;  %v3565_v19 = vcombine.low %v3244_v40, %v3245_v63 }
 0x26c   : > { %v4147_v37 = vmul.f32 %v3245_v63, %v3245_v63  ;;  %v4148_v2 = vmul.f32 %v3246_v24, %v3246_v24  ;;  %v1850_v38 = vadd.f32 %v7159_v1, %v7201_v48  ;;  %v1594_v58 = vadd.f32 %v7171_v61, %v6864_v34  ;;  %v1630_v57 = vpop.f32.mrf.mxu1  ;;  %v5332_v29 = vpop.f32.mrf.mxu0 }
 0x26d   : > { %v4961_v5 = vadd.f32 %v4960_v52, %v4466_v33  ;;  %v3566_v21 = vcombine.low %v3246_v24, %v3247_v22  ;;  %v3573_v12 = vrot.slane %v3565_v19, %v7058_v28  ;;  %v4149_v0 = vmul.f32 %v3247_v22, %v3247_v22 }
 0x26e   : > { %v4467_v32 = vcombine.low %v4146_v18, %v4147_v37  ;;  %v2162_v8 = vcombine.high %v1850_v38, %v1850_v38  ;;  %v2169_v56 = vrot.slane %v1850_v38, %v7058_v28  ;;  %v1855_v40 = vadd.f32 %v7173_v17, %v1589_v23  ;;  %v7284_v25 = vpop.f32.mrf.mxu1  ;;  %v7286_v46 = vpop.f32.mrf.mxu0 }
 0x26f   : > { %v3580_v1 = vrot.slane %v3566_v21, %v7058_v28  ;;  %v4468_v34 = vcombine.low %v4148_v2, %v4149_v0  ;;  %v7291_v61 = vadd.f32 %v7187_v41, %v6872_v39  ;;  %v7294_v48 = vadd.f32 %v7189_v53, %v1594_v58 }
 0x270   : > { %v4475_v52 = vrot.slane %v4467_v32, %v7058_v28  ;;  %v2176_v63 = vrot.slane %v2162_v8, %v7058_v28  ;;  %v2177_v17 = vcombine.high %v2169_v56, %v2169_v56  ;;  %v5168_v47 = vrot.slane %v2169_v56, 9  ;;  %v1635_v24 = vpop.f32.mrf.mxu1  ;;  %v5335_v18 = vpop.f32.mrf.mxu0 }
 0x271   : > { %v3581_v23 = vcombine.low %v3573_v12, %v3580_v1  ;;  %v4482_v33 = vrot.slane %v4468_v34, %v7058_v28  ;;  %v2179_v22 = vcombine.high %v1855_v40, %v1855_v40  ;;  %v2186_v19 = vrot.slane %v1855_v40, %v7058_v28 }
 0x272   : > { %v2178_v39 = vcombine.high %v2176_v63, %v2176_v63  ;;  %v2746_v41 = vrot.slane %v2177_v17, 7  ;;  %v2749_v37 = vrot.slane %v2176_v63, 7  ;;  %v2196_v53 = vcombine.high %v7294_v48, %v7294_v48  ;;  %v7302_v2 = vpop.f32.mrf.mxu1  ;;  %v7304_v38 = vpop.f32.mrf.mxu0 }
 0x273   : > { %4061 = vst [vmem:[%s7129_s17 + $0x28] sm:$0xff] %v3581_v23  ;;  %v7307_v58 = vadd.f32 %v4091_v36, %v3581_v23  ;;  %v4483_v57 = vcombine.low %v4475_v52, %v4482_v33  ;;  %v2193_v29 = vrot.slane %v2179_v22, %v7058_v28  ;;  %v2194_v21 = vcombine.high %v2186_v19, %v2186_v19 }
 0x274   : > { %v2747_v12 = vsel %vm7069_vm7, %v5168_v47, %v2746_v41  ;;  %v2748_v0 = vrot.slane %v2746_v41, 2  ;;  %v2751_v32 = vrot.slane %v2749_v37, 2  ;;  %v2752_v8 = vrot.slane %v2178_v39, 7  ;;  %v1640_v56 = vpop.f32.mrf.mxu1  ;;  %v5338_v40 = vpop.f32.mrf.mxu0 }
 0x275   : > { %v7312_v1 = vadd.f32 %v4961_v5, %v4483_v57  ;;  %v3248_v34 = vadd.f32 %v7063_v10, %v2747_v12  ;;  %v2195_v63 = vcombine.high %v2193_v29, %v2193_v29  ;;  %v2755_v17 = vrot.slane %v2186_v19, 7 }
 0x276   : > { %v2750_v36 = vsel %vm7069_vm7, %v2748_v0, %v2749_v37  ;;  %v2753_v52 = vsel %vm7069_vm7, %v2751_v32, %v2752_v8  ;;  %v2754_v24 = vrot.slane %v2752_v8, 2  ;;  %v2758_v18 = vrot.slane %v2194_v21, 7  ;;  %v7319_v47 = vpop.f32.mrf.mxu1  ;;  %v7321_v23 = vpop.f32.mrf.mxu0 }
 0x277   : > { %v3249_v33 = vadd.f32 %v7075_v50, %v2750_v36  ;;  %v3250_v5 = vadd.f32 %v7066_v43, %v2753_v52  ;;  %v4150_v22 = vmul.f32 %v3248_v34, %v3248_v34  ;;  %v2757_v39 = vrot.slane %v2755_v17, 2 }
 0x278   : > { %v2756_v19 = vsel %vm7069_vm7, %v2754_v24, %v2755_v17  ;;  %v2760_v41 = vrot.slane %v2758_v18, 2  ;;  %v2761_v37 = vrot.slane %v2193_v29, 7  ;;  %v2764_v57 = vrot.slane %v2195_v63, 7  ;;  %v1645_v12 = vpop.f32.mrf.mxu1  ;;  %v5341_v0 = vpop.f32.mrf.mxu0 }
 0x279   : > { %v3582_v32 = vcombine.low %v3248_v34, %v3249_v33  ;;  %v4151_v21 = vmul.f32 %v3249_v33, %v3249_v33  ;;  %v4152_v8 = vmul.f32 %v3250_v5, %v3250_v5  ;;  %v2759_v56 = vsel %vm7069_vm7, %v2757_v39, %v2758_v18 }
 0x27a   : > { %v2762_v40 = vsel %vm7069_vm7, %v2760_v41, %v2761_v37  ;;  %v2763_v36 = vrot.slane %v2761_v37, 2  ;;  %v2766_v52 = vrot.slane %v2764_v57, 2  ;;  %v3251_v62 = vadd.f32 %v7081_v15, %v2756_v19  ;;  %v7332_v45 = vpop.f32.mrf.mxu1  ;;  %v7334_v17 = vpop.f32.mrf.mxu0 }
 0x27b   : > { %8207 = vst [vmem:[#allocation22_spill] sm:$0xff] %v7334_v17  ;;  %v3590_v29 = vrot.slane %v3582_v32, %v7058_v28  ;;  %v4484_v63 = vcombine.low %v4150_v22, %v4151_v21  ;;  %v3252_v34 = vadd.f32 %v7063_v10, %v2759_v56  ;;  %v3253_v24 = vadd.f32 %v7075_v50, %v2762_v40 }
 0x27c   : > { %v2765_v18 = vsel %vm7069_vm7, %v2763_v36, %v2764_v57  ;;  %v3583_v33 = vcombine.low %v3250_v5, %v3251_v62  ;;  %v4153_v39 = vmul.f32 %v3251_v62, %v3251_v62  ;;  %v2203_v41 = vrot.slane %v7294_v48, %v7058_v28  ;;  %v1650_v19 = vpop.f32.mrf.mxu1  ;;  %v5344_v37 = vpop.f32.mrf.mxu0 }
 0x27d   : > { %v4492_v12 = vrot.slane %v4484_v63, %v7058_v28  ;;  %v3254_v0 = vadd.f32 %v7066_v43, %v2765_v18  ;;  %v3599_v32 = vcombine.low %v3252_v34, %v3253_v24  ;;  %v4154_v22 = vmul.f32 %v3252_v34, %v3252_v34 }
 0x27e   : > { %v3597_v21 = vrot.slane %v3583_v33, %v7058_v28  ;;  %v4155_v56 = vmul.f32 %v3253_v24, %v3253_v24  ;;  %v4485_v40 = vcombine.low %v4152_v8, %v4153_v39  ;;  %v2210_v17 = vrot.slane %v2196_v53, %v7058_v28  ;;  %v7347_v57 = vpop.f32.mrf.mxu1  ;;  %v7349_v62 = vpop.f32.mrf.mxu0 }
 0x27f   : > { %8208 = vst [vmem:[#allocation23_spill] sm:$0xff] %v7347_v57  ;;  %8209 = vst [vmem:[#allocation27_spill] sm:$0xff] %v7349_v62  ;;  %v3607_v48 = vrot.slane %v3599_v32, %v7058_v28  ;;  %v4156_v5 = vmul.f32 %v3254_v0, %v3254_v0  ;;  %v2211_v36 = vcombine.high %v2203_v41, %v2203_v41  ;;  %v2767_v63 = vrot.slane %v2203_v41, 7 }
 0x280   : > { %v3598_v19 = vcombine.low %v3590_v29, %v3597_v21  ;;  %v4499_v18 = vrot.slane %v4485_v40, %v7058_v28  ;;  %v4501_v34 = vcombine.low %v4154_v22, %v4155_v56  ;;  %v2212_v37 = vcombine.high %v2210_v17, %v2210_v17  ;;  %v1655_v33 = vpop.f32.mrf.mxu1  ;;  %v5347_v24 = vpop.f32.mrf.mxu0 }
 0x281   : > { %v2768_v53 = vsel %vm7069_vm7, %v2766_v52, %v2767_v63  ;;  %v5169_v8 = vrot.slane %v2211_v36, 9  ;;  %v2771_v39 = vrot.slane %v2210_v17, 7  ;;  %v1604_v62 = vadd.f32 %v7203_v27, %v6880_v44 }
 0x282   : > { %4062 = vst [vmem:[%s7129_s17 + $0x30] sm:$0xff] %v3598_v19  ;;  %v4093_v32 = vadd.f32 %v7307_v58, %v3598_v19  ;;  %v4500_v57 = vcombine.low %v4492_v12, %v4499_v18  ;;  %v4509_v29 = vrot.slane %v4501_v34, %v7058_v28  ;;  %v2774_v41 = vrot.slane %v2212_v37, 7  ;;  %v7360_v21 = vpop.f32.mrf.mxu1  ;;  %v7362_v22 = vpop.f32.mrf.mxu0 }
 0x283   : > { %v2772_v56 = vsel %vm7069_vm7, %v5169_v8, %v2771_v39  ;;  %v2773_v52 = vrot.slane %v2771_v39, 2  ;;  %v3255_v17 = vadd.f32 %v7081_v15, %v2768_v53  ;;  %v1865_v44 = vadd.f32 %v7205_v49, %v7291_v61 }
 0x284   : > { %v4963_v27 = vadd.f32 %v7312_v1, %v4500_v57  ;;  %v2776_v58 = vrot.slane %v2774_v41, 2  ;;  %v3256_v12 = vadd.f32 %v7063_v10, %v2772_v56  ;;  %v7373_v40 = vadd.f32 %v7219_v54, %v6888_v51  ;;  %v1660_v36 = vpop.f32.mrf.mxu1  ;;  %v5350_v63 = vpop.f32.mrf.mxu0 }
 0x285   : > { %v2775_v19 = vsel %vm7069_vm7, %v2773_v52, %v2774_v41  ;;  %v3600_v18 = vcombine.low %v3254_v0, %v3255_v17  ;;  %v4157_v34 = vmul.f32 %v3255_v17, %v3255_v17  ;;  %v2213_v37 = vcombine.high %v1865_v44, %v1865_v44 }
 0x286   : > { %v3257_v33 = vadd.f32 %v7075_v50, %v2775_v19  ;;  %v4158_v49 = vmul.f32 %v3256_v12, %v3256_v12  ;;  %v2220_v61 = vrot.slane %v1865_v44, %v7058_v28  ;;  %v1870_v1 = vadd.f32 %v7221_v11, %v1604_v62  ;;  %v7380_v57 = vpop.f32.mrf.mxu1  ;;  %v7382_v24 = vpop.f32.mrf.mxu0 }
 0x287   : > { %v3614_v51 = vrot.slane %v3600_v18, %v7058_v28  ;;  %v4502_v54 = vcombine.low %v4156_v5, %v4157_v34  ;;  %v2227_v53 = vrot.slane %v2213_v37, %v7058_v28  ;;  %v7388_v0 = vadd.f32 %v7229_v6, %v6896_v60 }
 0x288   : > { %v3616_v8 = vcombine.low %v3256_v12, %v3257_v33  ;;  %v4159_v39 = vmul.f32 %v3257_v33, %v3257_v33  ;;  %v2228_v41 = vcombine.high %v2220_v61, %v2220_v61  ;;  %v2777_v56 = vrot.slane %v2220_v61, 7  ;;  %v1665_v52 = vpop.f32.mrf.mxu1  ;;  %v5353_v11 = vpop.f32.mrf.mxu0 }
 0x289   : > { %v3615_v62 = vcombine.low %v3607_v48, %v3614_v51  ;;  %v4516_v17 = vrot.slane %v4502_v54, %v7058_v28  ;;  %v2229_v44 = vcombine.high %v2227_v53, %v2227_v53  ;;  %v2783_v36 = vrot.slane %v2227_v53, 7 }
 0x28a   : > { %v3624_v5 = vrot.slane %v3616_v8, %v7058_v28  ;;  %v4518_v63 = vcombine.low %v4158_v49, %v4159_v39  ;;  %v2778_v19 = vsel %vm7069_vm7, %v2776_v58, %v2777_v56  ;;  %v2779_v60 = vrot.slane %v2777_v56, 2  ;;  %v7394_v6 = vpop.f32.mrf.mxu1  ;;  %v7396_v12 = vpop.f32.mrf.mxu0 }
 0x28b   : > { %4063 = vst [vmem:[%s7129_s17 + $0x38] sm:$0xff] %v3615_v62  ;;  %v4094_v18 = vadd.f32 %v4093_v32, %v3615_v62  ;;  %v4517_v34 = vcombine.low %v4509_v29, %v4516_v17  ;;  %v2780_v37 = vrot.slane %v2228_v41, 7  ;;  %v2785_v48 = vrot.slane %v2783_v36, 2 }
 0x28c   : > { %v4526_v33 = vrot.slane %v4518_v63, %v7058_v28  ;;  %v2786_v61 = vrot.slane %v2229_v44, 7  ;;  %v3258_v51 = vadd.f32 %v7066_v43, %v2778_v19  ;;  %v2230_v54 = vcombine.high %v1870_v1, %v1870_v1  ;;  %v1670_v49 = vpop.f32.mrf.mxu1  ;;  %v5356_v53 = vpop.f32.mrf.mxu0 }
 0x28d   : > { %v4964_v8 = vadd.f32 %v4963_v27, %v4517_v34  ;;  %v2781_v58 = vsel %vm7069_vm7, %v2779_v60, %v2780_v37  ;;  %v2782_v39 = vrot.slane %v2780_v37, 2  ;;  %v2237_v56 = vrot.slane %v1870_v1, %v7058_v28 }
 0x28e   : > { %v2787_v32 = vsel %vm7069_vm7, %v2785_v48, %v2786_v61  ;;  %v2788_v29 = vrot.slane %v2786_v61, 2  ;;  %v3259_v41 = vadd.f32 %v7081_v15, %v2781_v58  ;;  %v4160_v52 = vmul.f32 %v3258_v51, %v3258_v51  ;;  %v7407_v11 = vpop.f32.mrf.mxu1  ;;  %v7409_v62 = vpop.f32.mrf.mxu0 }
 0x28f   : > { %8210 = vst [vmem:[#allocation28_spill] sm:$0xff] %v7407_v11  ;;  %8211 = vst [vmem:[#allocation29_spill] sm:$0xff] %v7409_v62  ;;  %v2784_v27 = vsel %vm7069_vm7, %v2782_v39, %v2783_v36  ;;  %v3261_v17 = vadd.f32 %v7075_v50, %v2787_v32  ;;  %v2244_v44 = vrot.slane %v2230_v54, %v7058_v28  ;;  %v2789_v34 = vrot.slane %v2237_v56, 7 }
 0x290   : > { %v2245_v63 = vcombine.high %v2237_v56, %v2237_v56  ;;  %v3260_v1 = vadd.f32 %v7063_v10, %v2784_v27  ;;  %v3617_v19 = vcombine.low %v3258_v51, %v3259_v41  ;;  %v4161_v60 = vmul.f32 %v3259_v41, %v3259_v41  ;;  %v1675_v37 = vpop.f32.mrf.mxu1  ;;  %v5359_v48 = vpop.f32.mrf.mxu0 }
 0x291   : > { %v4163_v61 = vmul.f32 %v3261_v17, %v3261_v17  ;;  %v2246_v49 = vcombine.high %v2244_v44, %v2244_v44  ;;  %v5170_v58 = vrot.slane %v2244_v44, 9  ;;  %v2790_v51 = vsel %vm7069_vm7, %v2788_v29, %v2789_v34 }
 0x292   : > { %v2792_v53 = vrot.slane %v2245_v63, 7  ;;  %v3631_v62 = vrot.slane %v3617_v19, %v7058_v28  ;;  %v3633_v11 = vcombine.low %v3260_v1, %v3261_v17  ;;  %v4162_v36 = vmul.f32 %v3260_v1, %v3260_v1  ;;  %v7417_v32 = vpop.f32.mrf.mxu1  ;;  %v7419_v54 = vpop.f32.mrf.mxu0 }
 0x293   : > { %v4519_v39 = vcombine.low %v4160_v52, %v4161_v60  ;;  %v2791_v56 = vrot.slane %v2789_v34, 2  ;;  %v2796_v41 = vrot.slane %v2246_v49, 7  ;;  %v1875_v27 = vadd.f32 %v7231_v13, %v7373_v40 }
 0x294   : > { %v3632_v63 = vcombine.low %v3624_v5, %v3631_v62  ;;  %v3641_v44 = vrot.slane %v3633_v11, %v7058_v28  ;;  %v4535_v1 = vcombine.low %v4162_v36, %v4163_v61  ;;  %v1680_v52 = vpop.f32.mrf.mxu1  ;;  %v5362_v19 = vpop.f32.mrf.mxu0  ;;  %v3262_v34 = vadd.f32 %v7066_v43, %v2790_v51 }
 0x295   : > { %v4533_v17 = vrot.slane %v4519_v39, %v7058_v28  ;;  %v2793_v60 = vsel %vm7069_vm7, %v2791_v56, %v2792_v53  ;;  %v2797_v37 = vsel %vm7069_vm7, %v5170_v58, %v2796_v41  ;;  %v2798_v29 = vrot.slane %v2796_v41, 2 }
 0x296   : > { %4064 = vst [vmem:[%s7129_s17 + $0x40] sm:$0xff] %v3632_v63  ;;  %v4095_v48 = vadd.f32 %v4094_v18, %v3632_v63  ;;  %v4543_v40 = vrot.slane %v4535_v1, %v7058_v28  ;;  %v3263_v5 = vadd.f32 %v7081_v15, %v2793_v60  ;;  %v7435_v11 = vpop.f32.mrf.mxu1  ;;  %v7437_v62 = vpop.f32.mrf.mxu0  ;;  %v3264_v61 = vadd.f32 %v7063_v10, %v2797_v37 }
 0x297   : > { %v4534_v13 = vcombine.low %v4526_v33, %v4533_v17  ;;  %v4164_v49 = vmul.f32 %v3262_v34, %v3262_v34  ;;  %v2247_v53 = vcombine.high %v1875_v27, %v1875_v27  ;;  %v2254_v58 = vrot.slane %v1875_v27, %v7058_v28 }
 0x298   : > { %v3634_v39 = vcombine.low %v3262_v34, %v3263_v5  ;;  %v4165_v51 = vmul.f32 %v3263_v5, %v3263_v5  ;;  %v1619_v18 = vadd.f32 %v7245_v14, %v6904_v7  ;;  %v1685_v33 = vpop.f32.mrf.mxu1  ;;  %v5365_v56 = vpop.f32.mrf.mxu0  ;;  %v4166_v41 = vmul.f32 %v3264_v61, %v3264_v61 }
 0x299   : > { %v4965_v36 = vadd.f32 %v4964_v8, %v4534_v13  ;;  %v2261_v63 = vrot.slane %v2247_v53, %v7058_v28  ;;  %v2262_v17 = vcombine.high %v2254_v58, %v2254_v58  ;;  %v2799_v1 = vrot.slane %v2254_v58, 7 }
 0x29a   : > { %v3648_v52 = vrot.slane %v3634_v39, %v7058_v28  ;;  %v4536_v19 = vcombine.low %v4164_v49, %v4165_v51  ;;  %v1880_v60 = vadd.f32 %v7247_v30, %v7388_v0  ;;  %v7449_v8 = vadd.f32 %v7253_v59, %v6912_v20  ;;  %v7451_v27 = vpop.f32.mrf.mxu1  ;;  %v7453_v7 = vpop.f32.mrf.mxu0 }
 0x29b   : > { %v2263_v14 = vcombine.high %v2261_v63, %v2261_v63  ;;  %v2800_v37 = vsel %vm7069_vm7, %v2798_v29, %v2799_v1  ;;  %v2801_v34 = vrot.slane %v2799_v1, 2  ;;  %v2802_v13 = vrot.slane %v2262_v17, 7 }
 0x29c   : > { %v3649_v5 = vcombine.low %v3641_v44, %v3648_v52  ;;  %v4550_v49 = vrot.slane %v4536_v19, %v7058_v28  ;;  %v2805_v53 = vrot.slane %v2261_v63, 7  ;;  %v3265_v30 = vadd.f32 %v7075_v50, %v2800_v37  ;;  %v1690_v0 = vpop.f32.mrf.mxu1  ;;  %v5368_v20 = vpop.f32.mrf.mxu0 }
 0x29d   : > { %v2803_v59 = vsel %vm7069_vm7, %v2801_v34, %v2802_v13  ;;  %v2804_v58 = vrot.slane %v2802_v13, 2  ;;  %v2808_v39 = vrot.slane %v2263_v14, 7  ;;  %v2264_v51 = vcombine.high %v1880_v60, %v1880_v60 }
 0x29e   : > { %4065 = vst [vmem:[%s7129_s17 + $0x48] sm:$0xff] %v3649_v5  ;;  %v4096_v33 = vadd.f32 %v4095_v48, %v3649_v5  ;;  %v4551_v56 = vcombine.low %v4543_v40, %v4550_v49  ;;  %v2807_v29 = vrot.slane %v2805_v53, 2  ;;  %v3266_v17 = vadd.f32 %v7066_v43, %v2803_v59  ;;  %v7468_v13 = vpop.f32.mrf.mxu1  ;;  %v7470_v48 = vpop.f32.mrf.mxu0 }
 0x29f   : > { %v2806_v44 = vsel %vm7069_vm7, %v2804_v58, %v2805_v53  ;;  %v2810_v63 = vrot.slane %v2808_v39, 2  ;;  %v3650_v1 = vcombine.low %v3264_v61, %v3265_v30  ;;  %v4167_v52 = vmul.f32 %v3265_v30, %v3265_v30 }
 0x2a0   : > { %v4966_v19 = vadd.f32 %v4965_v36, %v4551_v56  ;;  %v2809_v37 = vsel %vm7069_vm7, %v2807_v29, %v2808_v39  ;;  %v3267_v34 = vadd.f32 %v7081_v15, %v2806_v44  ;;  %v4168_v14 = vmul.f32 %v3266_v17, %v3266_v17  ;;  %v1695_v20 = vpop.f32.mrf.mxu1  ;;  %v5371_v59 = vpop.f32.mrf.mxu0 }
 0x2a1   : > { %v3268_v40 = vadd.f32 %v7063_v10, %v2809_v37  ;;  %v3658_v5 = vrot.slane %v3650_v1, %v7058_v28  ;;  %v4552_v49 = vcombine.low %v4166_v41, %v4167_v52  ;;  %v2271_v53 = vrot.slane %v1880_v60, %v7058_v28 }
 0x2a2   : > { %v3651_v61 = vcombine.low %v3266_v17, %v3267_v34  ;;  %v4169_v30 = vmul.f32 %v3267_v34, %v3267_v34  ;;  %v2278_v36 = vrot.slane %v2264_v51, %v7058_v28  ;;  %v1885_v0 = vadd.f32 %v7255_v16, %v1619_v18  ;;  %v7483_v20 = vpop.f32.mrf.mxu1 }
 0x2a3   : > { %v4170_v58 = vmul.f32 %v3268_v40, %v3268_v40  ;;  %v4560_v39 = vrot.slane %v4552_v49, %v7058_v28  ;;  %v2279_v56 = vcombine.high %v2271_v53, %v2271_v53  ;;  %v2811_v29 = vrot.slane %v2271_v53, 7  ;;  %8212 = vst [vmem:[#allocation30_spill] sm:$0xff] %v7483_v20 }
 0x2a4   : > { %v3665_v44 = vrot.slane %v3651_v61, %v7058_v28  ;;  %v4553_v37 = vcombine.low %v4168_v14, %v4169_v30  ;;  %v2280_v41 = vcombine.high %v2278_v36, %v2278_v36  ;;  %v2817_v1 = vrot.slane %v2278_v36, 7 }
 0x2a5   : > { %v2812_v60 = vsel %vm7069_vm7, %v2810_v63, %v2811_v29  ;;  %v2813_v17 = vrot.slane %v2811_v29, 2  ;;  %v2814_v51 = vrot.slane %v2279_v56, 7  ;;  %v2281_v52 = vcombine.high %v1885_v0, %v1885_v0  ;;  %v1700_v56 = vpop.f32.mrf.mxu1 }
 0x2a6   : > { %v3666_v16 = vcombine.low %v3658_v5, %v3665_v44  ;;  %v4567_v18 = vrot.slane %v4553_v37, %v7058_v28  ;;  %v5171_v34 = vrot.slane %v2280_v41, 9  ;;  %v3269_v49 = vadd.f32 %v7075_v50, %v2812_v60 }
 0x2a7   : > { %v2815_v14 = vsel %vm7069_vm7, %v2813_v17, %v2814_v51  ;;  %v2816_v53 = vrot.slane %v2814_v51, 2  ;;  %v2288_v61 = vrot.slane %v1885_v0, %v7058_v28  ;;  %v2295_v30 = vrot.slane %v2281_v52, %v7058_v28 }
 0x2a8   : > { %4066 = vst [vmem:[%s7129_s17 + $0x50] sm:$0xff] %v3666_v16  ;;  %v4097_v63 = vadd.f32 %v4096_v33, %v3666_v16  ;;  %v4568_v36 = vcombine.low %v4560_v39, %v4567_v18  ;;  %v3270_v5 = vadd.f32 %v7066_v43, %v2815_v14  ;;  %v3667_v59 = vcombine.low %v3268_v40, %v3269_v49 }
 0x2a9   : > { %v2818_v29 = vsel %vm7069_vm7, %v2816_v53, %v2817_v1  ;;  %v4171_v44 = vmul.f32 %v3269_v49, %v3269_v49  ;;  %v2296_v37 = vcombine.high %v2288_v61, %v2288_v61  ;;  %v2297_v41 = vcombine.high %v2295_v30, %v2295_v30 }
 0x2aa   : > { %v4967_v60 = vadd.f32 %v4966_v19, %v4568_v36  ;;  %v3271_v17 = vadd.f32 %v7081_v15, %v2818_v29  ;;  %v3675_v0 = vrot.slane %v3667_v59, %v7058_v28  ;;  %v4172_v51 = vmul.f32 %v3270_v5, %v3270_v5  ;;  %v7500_v36 = vpop.f32.mrf.mxu0 }
 0x2ab   : > { %v4569_v52 = vcombine.low %v4170_v58, %v4171_v44  ;;  %v2821_v20 = vrot.slane %v2288_v61, 7  ;;  %v2824_v33 = vrot.slane %v2296_v37, 7  ;;  %v2827_v39 = vrot.slane %v2295_v30, 7 }
 0x2ac   : > { %v3668_v16 = vcombine.low %v3270_v5, %v3271_v17  ;;  %v4173_v18 = vmul.f32 %v3271_v17, %v3271_v17  ;;  %v2830_v40 = vrot.slane %v2297_v41, 7  ;;  %v1629_v14 = vadd.f32 %v7271_v35, %v6920_v31 }
 0x2ad   : > { %v4577_v1 = vrot.slane %v4569_v52, %v7058_v28  ;;  %v2822_v19 = vsel %vm7069_vm7, %v5171_v34, %v2821_v20  ;;  %v2823_v49 = vrot.slane %v2821_v20, 2  ;;  %v2826_v53 = vrot.slane %v2824_v33, 2  ;;  %v5374_v20 = vpop.f32.mrf.mxu0 }
 0x2ae   : > { %v3682_v58 = vrot.slane %v3668_v16, %v7058_v28  ;;  %v4570_v61 = vcombine.low %v4172_v51, %v4173_v18  ;;  %v2829_v30 = vrot.slane %v2827_v39, 2  ;;  %v2832_v5 = vrot.slane %v2830_v40, 2 }
 0x2af   : > { %v2825_v59 = vsel %vm7069_vm7, %v2823_v49, %v2824_v33  ;;  %v2828_v31 = vsel %vm7069_vm7, %v2826_v53, %v2827_v39  ;;  %v3272_v35 = vadd.f32 %v7063_v10, %v2822_v19  ;;  %v1890_v34 = vadd.f32 %v7273_v9, %v7449_v8  ;;  %v7518_v49 = vpop.f32.mrf.mxu1 }
 0x2b0   : > { %v3683_v56 = vcombine.low %v3675_v0, %v3682_v58  ;;  %v4584_v29 = vrot.slane %v4570_v61, %v7058_v28  ;;  %v2831_v44 = vsel %vm7069_vm7, %v2829_v30, %v2830_v40  ;;  %v3273_v37 = vadd.f32 %v7075_v50, %v2825_v59  ;;  %v7520_v40 = vpop.f32.mrf.mxu0 }
 0x2b1   : > { %v3274_v41 = vadd.f32 %v7066_v43, %v2828_v31  ;;  %v3275_v17 = vadd.f32 %v7081_v15, %v2831_v44  ;;  %v4174_v51 = vmul.f32 %v3272_v35, %v3272_v35  ;;  %v2298_v52 = vcombine.high %v1890_v34, %v1890_v34 }
 0x2b2   : > { %4067 = vst [vmem:[%s7129_s17 + $0x58] sm:$0xff] %v3683_v56  ;;  %v4098_v33 = vadd.f32 %v4097_v63, %v3683_v56  ;;  %v4585_v39 = vcombine.low %v4577_v1, %v4584_v29  ;;  %v3684_v16 = vcombine.low %v3272_v35, %v3273_v37  ;;  %v4175_v9 = vmul.f32 %v3273_v37, %v3273_v37  ;;  %v1705_v35 = vpop.f32.mrf.mxu1  ;;  %v5377_v20 = vpop.f32.mrf.mxu0 }
 0x2b3   : > { %v3685_v8 = vcombine.low %v3274_v41, %v3275_v17  ;;  %v4176_v0 = vmul.f32 %v3274_v41, %v3274_v41  ;;  %v4177_v18 = vmul.f32 %v3275_v17, %v3275_v17  ;;  %v2305_v19 = vrot.slane %v1890_v34, %v7058_v28 }
 0x2b4   : > { %v4968_v53 = vadd.f32 %v4967_v60, %v4585_v39  ;;  %v3692_v58 = vrot.slane %v3684_v16, %v7058_v28  ;;  %v4586_v61 = vcombine.low %v4174_v51, %v4175_v9  ;;  %v2312_v30 = vrot.slane %v2298_v52, %v7058_v28  ;;  %v7531_v51 = vpop.f32.mrf.mxu1  ;;  %v7533_v52 = vpop.f32.mrf.mxu0 }
 0x2b5   : > { %v3699_v63 = vrot.slane %v3685_v8, %v7058_v28  ;;  %v4587_v1 = vcombine.low %v4176_v0, %v4177_v18  ;;  %v2313_v59 = vcombine.high %v2305_v19, %v2305_v19  ;;  %v2833_v31 = vrot.slane %v2305_v19, 7 }
 0x2b6   : > { %v4594_v34 = vrot.slane %v4586_v61, %v7058_v28  ;;  %v2314_v56 = vcombine.high %v2312_v30, %v2312_v30  ;;  %v2839_v29 = vrot.slane %v2312_v30, 7  ;;  %v1634_v60 = vadd.f32 %v7284_v25, %v6928_v42  ;;  %v5380_v19 = vpop.f32.mrf.mxu0 }
 0x2b7   : > { %v3700_v44 = vcombine.low %v3692_v58, %v3699_v63  ;;  %v4601_v37 = vrot.slane %v4587_v1, %v7058_v28  ;;  %v2834_v41 = vsel %vm7069_vm7, %v2832_v5, %v2833_v31  ;;  %v2835_v17 = vrot.slane %v2833_v31, 2  ;;  %v1710_v5 = vpop.f32.mrf.mxu1 }
 0x2b8   : > { %v2836_v39 = vrot.slane %v2313_v59, 7  ;;  %v2841_v16 = vrot.slane %v2839_v29, 2  ;;  %v2842_v9 = vrot.slane %v2314_v56, 7  ;;  %v3276_v8 = vadd.f32 %v7063_v10, %v2834_v41 }
 0x2b9   : > { %4068 = vst [vmem:[%s7129_s17 + $0x60] sm:$0xff] %v3700_v44  ;;  %v4099_v0 = vadd.f32 %v4098_v33, %v3700_v44  ;;  %v4602_v18 = vcombine.low %v4594_v34, %v4601_v37  ;;  %v1895_v42 = vadd.f32 %v7286_v46, %v1629_v14  ;;  %v7540_v25 = vadd.f32 %v7302_v2, %v6936_v55 }
 0x2ba   : > { %v2837_v58 = vsel %vm7069_vm7, %v2835_v17, %v2836_v39  ;;  %v2838_v61 = vrot.slane %v2836_v39, 2  ;;  %v2843_v30 = vsel %vm7069_vm7, %v2841_v16, %v2842_v9  ;;  %v4178_v63 = vmul.f32 %v3276_v8, %v3276_v8 }
 0x2bb   : > { %v4969_v1 = vadd.f32 %v4968_v53, %v4602_v18  ;;  %v3277_v33 = vadd.f32 %v7075_v50, %v2837_v58  ;;  %v3279_v59 = vadd.f32 %v7081_v15, %v2843_v30  ;;  %v2315_v46 = vcombine.high %v1895_v42, %v1895_v42  ;;  %v7565_v30 = vpop.f32.mrf.mxu1 }
 0x2bc   : > { %v2840_v55 = vsel %vm7069_vm7, %v2838_v61, %v2839_v29  ;;  %v2322_v2 = vrot.slane %v1895_v42, %v7058_v28  ;;  %v1900_v14 = vadd.f32 %v7304_v38, %v1634_v60  ;;  %v7554_v31 = vadd.f32 %v7319_v47, %v6944_v4 }
 0x2bd   : > { %v3278_v35 = vadd.f32 %v7066_v43, %v2840_v55  ;;  %v3701_v20 = vcombine.low %v3276_v8, %v3277_v33  ;;  %v4179_v53 = vmul.f32 %v3277_v33, %v3277_v33  ;;  %v4181_v34 = vmul.f32 %v3279_v59, %v3279_v59 }
 0x2be   : > { %v2329_v56 = vrot.slane %v2315_v46, %v7058_v28  ;;  %v2330_v44 = vcombine.high %v2322_v2, %v2322_v2  ;;  %v5172_v37 = vrot.slane %v2322_v2, 9  ;;  %v2332_v41 = vcombine.high %v1900_v14, %v1900_v14 }
 0x2bf   : > { %v3702_v17 = vcombine.low %v3278_v35, %v3279_v59  ;;  %v3709_v29 = vrot.slane %v3701_v20, %v7058_v28  ;;  %v4180_v39 = vmul.f32 %v3278_v35, %v3278_v35  ;;  %v4603_v16 = vcombine.low %v4178_v63, %v4179_v53  ;;  %v7573_v20 = vpop.f32.mrf.mxu0  ;;  %v1715_v53 = vpop.f32.mrf.mxu1 }
 0x2c0   : > { %v2331_v38 = vcombine.high %v2329_v56, %v2329_v56  ;;  %v2846_v60 = vrot.slane %v2330_v44, 7  ;;  %v2849_v9 = vrot.slane %v2329_v56, 7  ;;  %v2339_v4 = vrot.slane %v1900_v14, %v7058_v28 }
 0x2c1   : > { %v3716_v47 = vrot.slane %v3702_v17, %v7058_v28  ;;  %v4604_v8 = vcombine.low %v4180_v39, %v4181_v34  ;;  %v4611_v18 = vrot.slane %v4603_v16, %v7058_v28  ;;  %v2346_v42 = vrot.slane %v2332_v41, %v7058_v28  ;;  %v5383_v16 = vpop.f32.mrf.mxu0 }
 0x2c2   : > { %v2847_v5 = vsel %vm7069_vm7, %v5172_v37, %v2846_v60  ;;  %v2848_v19 = vrot.slane %v2846_v60, 2  ;;  %v2851_v58 = vrot.slane %v2849_v9, 2  ;;  %v2852_v61 = vrot.slane %v2331_v38, 7 }
 0x2c3   : > { %v3717_v63 = vcombine.low %v3709_v29, %v3716_v47  ;;  %v4618_v33 = vrot.slane %v4604_v8, %v7058_v28  ;;  %v3280_v59 = vadd.f32 %v7063_v10, %v2847_v5  ;;  %v2347_v46 = vcombine.high %v2339_v4, %v2339_v4 }
 0x2c4   : > { %v2850_v55 = vsel %vm7069_vm7, %v2848_v19, %v2849_v9  ;;  %v2853_v2 = vsel %vm7069_vm7, %v2851_v58, %v2852_v61  ;;  %v2854_v14 = vrot.slane %v2852_v61, 2  ;;  %v2348_v35 = vcombine.high %v2346_v42, %v2346_v42 }
 0x2c5   : > { %4069 = vst [vmem:[%s7129_s17 + $0x68] sm:$0xff] %v3717_v63  ;;  %v4100_v34 = vadd.f32 %v4099_v0, %v3717_v63  ;;  %v4619_v56 = vcombine.low %v4611_v18, %v4618_v33  ;;  %v3281_v44 = vadd.f32 %v7075_v50, %v2850_v55  ;;  %v3282_v37 = vadd.f32 %v7066_v43, %v2853_v2 }
 0x2c6   : > { %v4182_v41 = vmul.f32 %v3280_v59, %v3280_v59  ;;  %v2855_v17 = vrot.slane %v2339_v4, 7  ;;  %v2858_v29 = vrot.slane %v2347_v46, 7  ;;  %v2861_v39 = vrot.slane %v2346_v42, 7 }
 0x2c7   : > { %v4970_v38 = vadd.f32 %v4969_v1, %v4619_v56  ;;  %v3718_v60 = vcombine.low %v3280_v59, %v3281_v44  ;;  %v4183_v9 = vmul.f32 %v3281_v44, %v3281_v44  ;;  %v4184_v47 = vmul.f32 %v3282_v37, %v3282_v37 }
 0x2c8   : > { %v2856_v8 = vsel %vm7069_vm7, %v2854_v14, %v2855_v17  ;;  %v2857_v5 = vrot.slane %v2855_v17, 2  ;;  %v2860_v19 = vrot.slane %v2858_v29, 2  ;;  %v2863_v0 = vrot.slane %v2861_v39, 2  ;;  %v7596_v14 = vpop.f32.mrf.mxu1 }
 0x2c9   : > { %v3726_v18 = vrot.slane %v3718_v60, %v7058_v28  ;;  %v4620_v58 = vcombine.low %v4182_v41, %v4183_v9  ;;  %v2864_v61 = vrot.slane %v2348_v35, 7  ;;  %v3283_v63 = vadd.f32 %v7081_v15, %v2856_v8  ;;  %v7598_v35 = vpop.f32.mrf.mxu0  ;;  %v8213_v41 = vld [vmem:[#allocation22_spill] sm:$0xff] }
 0x2ca   : > { %v2859_v4 = vsel %vm7069_vm7, %v2857_v5, %v2858_v29  ;;  %v2862_v1 = vsel %vm7069_vm7, %v2860_v19, %v2861_v39  ;;  %v1905_v42 = vadd.f32 %v7321_v23, %v7540_v25  ;;  %v7590_v33 = vadd.f32 %v7332_v45, %v6952_v26  ;;  %v1720_v29 = vpop.f32.mrf.mxu1 }
 0x2cb   : > { %v4628_v59 = vrot.slane %v4620_v58, %v7058_v28  ;;  %v2865_v46 = vsel %vm7069_vm7, %v2863_v0, %v2864_v61  ;;  %v2866_v55 = vrot.slane %v2864_v61, 2  ;;  %v3284_v2 = vadd.f32 %v7063_v10, %v2859_v4  ;;  %v5386_v39 = vpop.f32.mrf.mxu0 }
 0x2cc   : > { %v3285_v53 = vadd.f32 %v7075_v50, %v2862_v1  ;;  %v3286_v23 = vadd.f32 %v7066_v43, %v2865_v46  ;;  %v3719_v25 = vcombine.low %v3282_v37, %v3283_v63  ;;  %v4185_v56 = vmul.f32 %v3283_v63, %v3283_v63 }
 0x2cd   : > { %v4186_v26 = vmul.f32 %v3284_v2, %v3284_v2  ;;  %v2349_v45 = vcombine.high %v1905_v42, %v1905_v42  ;;  %v2356_v44 = vrot.slane %v1905_v42, %v7058_v28  ;;  %v1910_v17 = vadd.f32 %v8213_v41, %v7554_v31 }
 0x2ce   : > { %v3733_v16 = vrot.slane %v3719_v25, %v7058_v28  ;;  %v3735_v60 = vcombine.low %v3284_v2, %v3285_v53  ;;  %v4187_v9 = vmul.f32 %v3285_v53, %v3285_v53  ;;  %v4188_v8 = vmul.f32 %v3286_v23, %v3286_v23 }
 0x2cf   : > { %v4621_v5 = vcombine.low %v4184_v47, %v4185_v56  ;;  %v2363_v19 = vrot.slane %v2349_v45, %v7058_v28  ;;  %v2364_v37 = vcombine.high %v2356_v44, %v2356_v44  ;;  %v2867_v0 = vrot.slane %v2356_v44, 7  ;;  %v7616_v44 = vpop.f32.mrf.mxu1 }
 0x2d0   : > { %v3734_v58 = vcombine.low %v3726_v18, %v3733_v16  ;;  %v3743_v61 = vrot.slane %v3735_v60, %v7058_v28  ;;  %v4637_v63 = vcombine.low %v4186_v26, %v4187_v9  ;;  %v2366_v4 = vcombine.high %v1910_v17, %v1910_v17 }
 0x2d1   : > { %v4635_v31 = vrot.slane %v4621_v5, %v7058_v28  ;;  %v2365_v1 = vcombine.high %v2363_v19, %v2363_v19  ;;  %v2868_v42 = vsel %vm7069_vm7, %v2866_v55, %v2867_v0  ;;  %v5173_v46 = vrot.slane %v2364_v37, 9  ;;  %v1725_v5 = vpop.f32.mrf.mxu1 }
 0x2d2   : > { %4070 = vst [vmem:[%s7129_s17 + $0x70] sm:$0xff] %v3734_v58  ;;  %v4101_v2 = vadd.f32 %v4100_v34, %v3734_v58  ;;  %v4645_v47 = vrot.slane %v4637_v63, %v7058_v28  ;;  %v2871_v53 = vrot.slane %v2363_v19, 7  ;;  %v3287_v25 = vadd.f32 %v7081_v15, %v2868_v42  ;;  %v7626_v42 = vpop.f32.mrf.mxu0 }
 0x2d3   : > { %v4636_v56 = vcombine.low %v4628_v59, %v4635_v31  ;;  %v2874_v18 = vrot.slane %v2365_v1, 7  ;;  %v2373_v45 = vrot.slane %v1910_v17, %v7058_v28  ;;  %v2380_v26 = vrot.slane %v2366_v4, %v7058_v28 }
 0x2d4   : > { %v2872_v41 = vsel %vm7069_vm7, %v5173_v46, %v2871_v53  ;;  %v2873_v55 = vrot.slane %v2871_v53, 2  ;;  %v3736_v29 = vcombine.low %v3286_v23, %v3287_v25  ;;  %v4189_v39 = vmul.f32 %v3287_v25, %v3287_v25 }
 0x2d5   : > { %v4971_v34 = vadd.f32 %v4970_v38, %v4636_v56  ;;  %v2876_v16 = vrot.slane %v2874_v18, 2  ;;  %v3288_v60 = vadd.f32 %v7063_v10, %v2872_v41  ;;  %v2381_v9 = vcombine.high %v2373_v45, %v2373_v45 }
 0x2d6   : > { %v2875_v59 = vsel %vm7069_vm7, %v2873_v55, %v2874_v18  ;;  %v3750_v17 = vrot.slane %v3736_v29, %v7058_v28  ;;  %v4638_v19 = vcombine.low %v4188_v8, %v4189_v39  ;;  %v2382_v37 = vcombine.high %v2380_v26, %v2380_v26 }
 0x2d7   : > { %v3289_v0 = vadd.f32 %v7075_v50, %v2875_v59  ;;  %v4190_v58 = vmul.f32 %v3288_v60, %v3288_v60  ;;  %v2877_v63 = vrot.slane %v2373_v45, 7  ;;  %v2880_v23 = vrot.slane %v2381_v9, 7  ;;  %v5389_v45 = vpop.f32.mrf.mxu0 }
 0x2d8   : > { %v3751_v4 = vcombine.low %v3743_v61, %v3750_v17  ;;  %v4652_v38 = vrot.slane %v4638_v19, %v7058_v28  ;;  %v2883_v31 = vrot.slane %v2380_v26, 7  ;;  %v2886_v1 = vrot.slane %v2382_v37, 7  ;;  %v7643_v19 = vpop.f32.mrf.mxu1 }
 0x2d9   : > { %v3752_v46 = vcombine.low %v3288_v60, %v3289_v0  ;;  %v4191_v53 = vmul.f32 %v3289_v0, %v3289_v0  ;;  %v2878_v25 = vsel %vm7069_vm7, %v2876_v16, %v2877_v63  ;;  %v2879_v56 = vrot.slane %v2877_v63, 2  ;;  %v7645_v37 = vpop.f32.mrf.mxu0  ;;  %v8214_v0 = vld [vmem:[#allocation24_spill] sm:$0xff] }
 0x2da   : > { %4071 = vst [vmem:[%s7129_s17 + $0x78] sm:$0xff] %v3751_v4  ;;  %v4102_v8 = vadd.f32 %v4101_v2, %v3751_v4  ;;  %v4653_v18 = vcombine.low %v4645_v47, %v4652_v38  ;;  %v2882_v41 = vrot.slane %v2880_v23, 2  ;;  %v2885_v55 = vrot.slane %v2883_v31, 2  ;;  %v8217_v38 = vld [vmem:[#allocation25_spill] sm:$0xff] }
 0x2db   : > { %v3760_v61 = vrot.slane %v3752_v46, %v7058_v28  ;;  %v4654_v29 = vcombine.low %v4190_v58, %v4191_v53  ;;  %v2881_v26 = vsel %vm7069_vm7, %v2879_v56, %v2880_v23  ;;  %v2888_v39 = vrot.slane %v2886_v1, 2  ;;  %v8215_v58 = vld [vmem:[#allocation23_spill] sm:$0xff]  ;;  %v5392_v56 = vpop.f32.mrf.mxu0 }
 0x2dc   : > { %v4972_v9 = vadd.f32 %v4971_v34, %v4653_v18  ;;  %v2884_v60 = vsel %vm7069_vm7, %v2882_v41, %v2883_v31  ;;  %v2887_v16 = vsel %vm7069_vm7, %v2885_v55, %v2886_v1  ;;  %v3290_v2 = vadd.f32 %v7066_v43, %v2878_v25  ;;  %v8216_v23 = vld [vmem:[#allocation27_spill] sm:$0xff]  ;;  %v1730_v18 = vpop.f32.mrf.mxu1 }
 0x2dd   : > { %v4662_v47 = vrot.slane %v4654_v29, %v7058_v28  ;;  %v3291_v5 = vadd.f32 %v7081_v15, %v2881_v26  ;;  %v3292_v59 = vadd.f32 %v7063_v10, %v2884_v60  ;;  %v3293_v17 = vadd.f32 %v7075_v50, %v2887_v16  ;;  %v8218_v16 = vld [vmem:[#allocation26_spill] sm:$0xff] }
 0x2de   : > { %v4192_v34 = vmul.f32 %v3290_v2, %v3290_v2  ;;  %v1654_v63 = vadd.f32 %v8215_v58, %v8214_v0  ;;  %v1915_v4 = vadd.f32 %v8216_v23, %v7590_v33  ;;  %v1659_v31 = vadd.f32 %v7360_v21, %v8217_v38  ;;  %v7662_v58 = vpop.f32.mrf.mxu0 }
 0x2df   : > { %v3753_v1 = vcombine.low %v3290_v2, %v3291_v5  ;;  %v3769_v46 = vcombine.low %v3292_v59, %v3293_v17  ;;  %v4193_v53 = vmul.f32 %v3291_v5, %v3291_v5  ;;  %v4194_v25 = vmul.f32 %v3292_v59, %v3292_v59  ;;  %v1733_v2 = vpop.f32.mrf.mxu1 }
 0x2e0   : > { %v4195_v41 = vmul.f32 %v3293_v17, %v3293_v17  ;;  %v2383_v55 = vcombine.high %v1915_v4, %v1915_v4  ;;  %v2390_v45 = vrot.slane %v1915_v4, %v7058_v28  ;;  %v1920_v29 = vadd.f32 %v7362_v22, %v1654_v63 }
 0x2e1   : > { %v3767_v26 = vrot.slane %v3753_v1, %v7058_v28  ;;  %v3777_v60 = vrot.slane %v3769_v46, %v7058_v28  ;;  %v4655_v33 = vcombine.low %v4192_v34, %v4193_v53  ;;  %v7659_v21 = vadd.f32 %v7380_v57, %v8218_v16  ;;  %v1734_v34 = vpop.f32.mrf.mxu1  ;;  %v5395_v53 = vpop.f32.mrf.mxu0 }
 0x2e2   : > { %v4671_v5 = vcombine.low %v4194_v25, %v4195_v41  ;;  %v2397_v59 = vrot.slane %v2383_v55, %v7058_v28  ;;  %v2398_v17 = vcombine.high %v2390_v45, %v2390_v45  ;;  %v2889_v0 = vrot.slane %v2390_v45, 7 }
 0x2e3   : > { %v3768_v23 = vcombine.low %v3760_v61, %v3767_v26  ;;  %v4669_v22 = vrot.slane %v4655_v33, %v7058_v28  ;;  %v2400_v63 = vcombine.high %v1920_v29, %v1920_v29  ;;  %v2407_v4 = vrot.slane %v1920_v29, %v7058_v28  ;;  %v1737_v41 = vpop.f32.mrf.mxu1  ;;  %v1999_v33 = vpop.f32.mrf.mxu0 }
 0x2e4   : > { %v7667_v38 = vrot.slane %v4671_v5, %v7058_v28  ;;  %v2399_v57 = vcombine.high %v2397_v59, %v2397_v59  ;;  %v2890_v1 = vsel %vm7069_vm7, %v2888_v39, %v2889_v0  ;;  %v2891_v46 = vrot.slane %v2889_v0, 2 }
 0x2e5   : > { %4072 = vst [vmem:[%s7129_s17 + $0x80] sm:$0xff] %v3768_v23  ;;  %v4103_v25 = vadd.f32 %v4102_v8, %v3768_v23  ;;  %v4670_v56 = vcombine.low %v4662_v47, %v4669_v22  ;;  %v2892_v18 = vrot.slane %v2398_v17, 7  ;;  %v5174_v61 = vrot.slane %v2397_v59, 9  ;;  %v1738_v0 = vpop.f32.mrf.mxu1  ;;  %v5398_v23 = vpop.f32.mrf.mxu0 }
 0x2e6   : > { %v2896_v55 = vrot.slane %v2399_v57, 7  ;;  %v3294_v45 = vadd.f32 %v7066_v43, %v2890_v1  ;;  %v2414_v29 = vrot.slane %v2400_v63, %v7058_v28  ;;  %v2415_v26 = vcombine.high %v2407_v4, %v2407_v4 }
 0x2e7   : > { %v4973_v16 = vadd.f32 %v4972_v9, %v4670_v56  ;;  %v2893_v2 = vsel %vm7069_vm7, %v2891_v46, %v2892_v18  ;;  %v2899_v39 = vrot.slane %v2407_v4, 7  ;;  %v1925_v5 = vadd.f32 %v7382_v24, %v1659_v31  ;;  %v2003_v31 = vpop.f32.mrf.mxu0 }
 0x2e8   : > { %v2897_v8 = vsel %vm7069_vm7, %v5174_v61, %v2896_v55  ;;  %v2898_v47 = vrot.slane %v2896_v55, 2  ;;  %v3295_v59 = vadd.f32 %v7081_v15, %v2893_v2  ;;  %v4196_v17 = vmul.f32 %v3294_v45, %v3294_v45 }
 0x2e9   : > { %v3296_v22 = vadd.f32 %v7063_v10, %v2897_v8  ;;  %v2416_v63 = vcombine.high %v2414_v29, %v2414_v29  ;;  %v2901_v34 = vrot.slane %v2899_v39, 2  ;;  %v2902_v9 = vrot.slane %v2415_v26, 7 }
 0x2ea   : > { %v3770_v57 = vcombine.low %v3294_v45, %v3295_v59  ;;  %v4197_v1 = vmul.f32 %v3295_v59, %v3295_v59  ;;  %v2900_v4 = vsel %vm7069_vm7, %v2898_v47, %v2899_v39  ;;  %v2905_v24 = vrot.slane %v2414_v29, 7  ;;  %v5401_v45 = vpop.f32.mrf.mxu0 }
 0x2eb   : > { %v4198_v46 = vmul.f32 %v3296_v22, %v3296_v22  ;;  %v2903_v53 = vsel %vm7069_vm7, %v2901_v34, %v2902_v9  ;;  %v2904_v56 = vrot.slane %v2902_v9, 2  ;;  %v2908_v18 = vrot.slane %v2416_v63, 7 }
 0x2ec   : > { %v3784_v61 = vrot.slane %v3770_v57, %v7058_v28  ;;  %v4672_v41 = vcombine.low %v4196_v17, %v4197_v1  ;;  %v2907_v55 = vrot.slane %v2905_v24, 2  ;;  %v3297_v26 = vadd.f32 %v7075_v50, %v2900_v4 }
 0x2ed   : > { %v2906_v33 = vsel %vm7069_vm7, %v2904_v56, %v2905_v24  ;;  %v2910_v2 = vrot.slane %v2908_v18, 2  ;;  %v3298_v29 = vadd.f32 %v7066_v43, %v2903_v53  ;;  %v2417_v39 = vcombine.high %v1925_v5, %v1925_v5 }
 0x2ee   : > { %v3785_v0 = vcombine.low %v3777_v60, %v3784_v61  ;;  %v4686_v8 = vrot.slane %v4672_v41, %v7058_v28  ;;  %v2909_v47 = vsel %vm7069_vm7, %v2907_v55, %v2908_v18  ;;  %v3299_v59 = vadd.f32 %v7081_v15, %v2906_v33 }
 0x2ef   : > { %v3300_v17 = vadd.f32 %v7063_v10, %v2909_v47  ;;  %v3786_v23 = vcombine.low %v3296_v22, %v3297_v26  ;;  %v4199_v63 = vmul.f32 %v3297_v26, %v3297_v26  ;;  %v4200_v34 = vmul.f32 %v3298_v29, %v3298_v29 }
 0x2f0   : > { %4073 = vst [vmem:[%s7129_s17 + $0x88] sm:$0xff] %v3785_v0  ;;  %v4104_v9 = vadd.f32 %v4103_v25, %v3785_v0  ;;  %v4687_v57 = vcombine.low %v7667_v38, %v4686_v8  ;;  %v3787_v1 = vcombine.low %v3298_v29, %v3299_v59  ;;  %v4201_v4 = vmul.f32 %v3299_v59, %v3299_v59  ;;  %v8219_v38 = vld [vmem:[#allocation14_spill] sm:$0xff] }
 0x2f1   : > { %v3794_v60 = vrot.slane %v3786_v23, %v7058_v28  ;;  %v4202_v24 = vmul.f32 %v3300_v17, %v3300_v17  ;;  %v4688_v31 = vcombine.low %v4198_v46, %v4199_v63  ;;  %v2424_v53 = vrot.slane %v1925_v5, %v7058_v28 }
 0x2f2   : > { %v4974_v56 = vadd.f32 %v4973_v16, %v4687_v57  ;;  %v3801_v18 = vrot.slane %v3787_v1, %v7058_v28  ;;  %v4689_v61 = vcombine.low %v4200_v34, %v4201_v4  ;;  %v2431_v22 = vrot.slane %v2417_v39, %v7058_v28 }
 0x2f3   : > { %v4696_v41 = vrot.slane %v4688_v31, %v7058_v28  ;;  %v2432_v25 = vcombine.high %v2424_v53, %v2424_v53  ;;  %v2911_v55 = vrot.slane %v2424_v53, 7  ;;  %v1669_v26 = vadd.f32 %v7394_v6, %v8219_v38 }
 0x2f4   : > { %v3802_v45 = vcombine.low %v3794_v60, %v3801_v18  ;;  %v4703_v33 = vrot.slane %v4689_v61, %v7058_v28  ;;  %v2433_v46 = vcombine.high %v2431_v22, %v2431_v22  ;;  %v2917_v29 = vrot.slane %v2431_v22, 7 }
 0x2f5   : > { %v2912_v16 = vsel %vm7069_vm7, %v2910_v2, %v2911_v55  ;;  %v2913_v5 = vrot.slane %v2911_v55, 2  ;;  %v2914_v0 = vrot.slane %v2432_v25, 7  ;;  %v1930_v39 = vadd.f32 %v7396_v12, %v7659_v21 }
 0x2f6   : > { %4074 = vst [vmem:[%s7129_s17 + $0x90] sm:$0xff] %v3802_v45  ;;  %v4105_v8 = vadd.f32 %v4104_v9, %v3802_v45  ;;  %v4704_v47 = vcombine.low %v4696_v41, %v4703_v33  ;;  %v5175_v59 = vrot.slane %v2433_v46, 9  ;;  %v3301_v23 = vadd.f32 %v7075_v50, %v2912_v16 }
 0x2f7   : > { %v2915_v6 = vsel %vm7069_vm7, %v2913_v5, %v2914_v0  ;;  %v2916_v63 = vrot.slane %v2914_v0, 2  ;;  %v2434_v34 = vcombine.high %v1930_v39, %v1930_v39  ;;  %v2441_v57 = vrot.slane %v1930_v39, %v7058_v28 }
 0x2f8   : > { %v4975_v1 = vadd.f32 %v4974_v56, %v4704_v47  ;;  %v3302_v2 = vadd.f32 %v7066_v43, %v2915_v6  ;;  %v3803_v4 = vcombine.low %v3300_v17, %v3301_v23  ;;  %v4203_v60 = vmul.f32 %v3301_v23, %v3301_v23 }
 0x2f9   : > { %v2918_v12 = vsel %vm7069_vm7, %v2916_v63, %v2917_v29  ;;  %v2448_v21 = vrot.slane %v2434_v34, %v7058_v28  ;;  %v2449_v9 = vcombine.high %v2441_v57, %v2441_v57  ;;  %v2921_v31 = vrot.slane %v2441_v57, 7  ;;  %v8220_v63 = vld [vmem:[#allocation9_spill] sm:$0xff]  ;;  %v8221_v34 = vld [vmem:[#allocation28_spill] sm:$0xff] }
 0x2fa   : > { %v3303_v53 = vadd.f32 %v7081_v15, %v2918_v12  ;;  %v3811_v18 = vrot.slane %v3803_v4, %v7058_v28  ;;  %v4204_v61 = vmul.f32 %v3302_v2, %v3302_v2  ;;  %v4705_v22 = vcombine.low %v4202_v24, %v4203_v60 }
 0x2fb   : > { %v2450_v41 = vcombine.high %v2448_v21, %v2448_v21  ;;  %v2922_v56 = vsel %vm7069_vm7, %v5175_v59, %v2921_v31  ;;  %v2923_v25 = vrot.slane %v2921_v31, 2  ;;  %v2924_v17 = vrot.slane %v2449_v9, 7 }
 0x2fc   : > { %v3804_v55 = vcombine.low %v3302_v2, %v3303_v53  ;;  %v4205_v38 = vmul.f32 %v3303_v53, %v3303_v53  ;;  %v4713_v45 = vrot.slane %v4705_v22, %v7058_v28  ;;  %v2927_v33 = vrot.slane %v2448_v21, 7  ;;  %v8222_v53 = vld [vmem:[#allocation29_spill] sm:$0xff] }
 0x2fd   : > { %v2925_v46 = vsel %vm7069_vm7, %v2923_v25, %v2924_v17  ;;  %v2926_v29 = vrot.slane %v2924_v17, 2  ;;  %v2930_v16 = vrot.slane %v2450_v41, 7  ;;  %v3304_v5 = vadd.f32 %v7063_v10, %v2922_v56  ;;  %v8223_v25 = vld [vmem:[#allocation16_spill] sm:$0xff] }
 0x2fe   : > { %v3818_v24 = vrot.slane %v3804_v55, %v7058_v28  ;;  %v4706_v0 = vcombine.low %v4204_v61, %v4205_v38  ;;  %v2929_v39 = vrot.slane %v2927_v33, 2  ;;  %v3305_v47 = vadd.f32 %v7075_v50, %v2925_v46 }
 0x2ff   : > { %v2928_v59 = vsel %vm7069_vm7, %v2926_v29, %v2927_v33  ;;  %v2932_v23 = vrot.slane %v2930_v16, 2  ;;  %v4206_v6 = vmul.f32 %v3304_v5, %v3304_v5  ;;  %v1674_v57 = vadd.f32 %v8221_v34, %v8220_v63 }
 0x300   : > { %v3819_v2 = vcombine.low %v3811_v18, %v3818_v24  ;;  %v4720_v4 = vrot.slane %v4706_v0, %v7058_v28  ;;  %v2931_v60 = vsel %vm7069_vm7, %v2929_v39, %v2930_v16  ;;  %v3306_v12 = vadd.f32 %v7066_v43, %v2928_v59  ;;  %v8224_v24 = vld [vmem:[#allocation10_spill] sm:$0xff] }
 0x301   : > { %v3307_v21 = vadd.f32 %v7081_v15, %v2931_v60  ;;  %v3820_v9 = vcombine.low %v3304_v5, %v3305_v47  ;;  %v4207_v31 = vmul.f32 %v3305_v47, %v3305_v47  ;;  %v1935_v61 = vadd.f32 %v8222_v53, %v1669_v26 }
 0x302   : > { %4075 = vst [vmem:[%s7129_s17 + $0x98] sm:$0xff] %v3819_v2  ;;  %v4106_v22 = vadd.f32 %v4105_v8, %v3819_v2  ;;  %v4721_v41 = vcombine.low %v4713_v45, %v4720_v4  ;;  %v4208_v56 = vmul.f32 %v3306_v12, %v3306_v12  ;;  %v1679_v18 = vadd.f32 %v7417_v32, %v8223_v25 }
 0x303   : > { %v3821_v17 = vcombine.low %v3306_v12, %v3307_v21  ;;  %v3828_v55 = vrot.slane %v3820_v9, %v7058_v28  ;;  %v4209_v38 = vmul.f32 %v3307_v21, %v3307_v21  ;;  %v4722_v33 = vcombine.low %v4206_v6, %v4207_v31 }
 0x304   : > { %v4976_v46 = vadd.f32 %v4975_v1, %v4721_v41  ;;  %v2451_v29 = vcombine.high %v1935_v61, %v1935_v61  ;;  %v2458_v16 = vrot.slane %v1935_v61, %v7058_v28  ;;  %v1940_v5 = vadd.f32 %v7419_v54, %v1674_v57 }
 0x305   : > { %v3835_v26 = vrot.slane %v3821_v17, %v7058_v28  ;;  %v4723_v8 = vcombine.low %v4208_v56, %v4209_v38  ;;  %v4730_v45 = vrot.slane %v4722_v33, %v7058_v28  ;;  %v7748_v32 = vadd.f32 %v7435_v11, %v8224_v24 }
 0x306   : > { %v2465_v0 = vrot.slane %v2451_v29, %v7058_v28  ;;  %v2466_v39 = vcombine.high %v2458_v16, %v2458_v16  ;;  %v2933_v47 = vrot.slane %v2458_v16, 7  ;;  %v2468_v1 = vcombine.high %v1940_v5, %v1940_v5 }
 0x307   : > { %v3836_v59 = vcombine.low %v3828_v55, %v3835_v26  ;;  %v4737_v6 = vrot.slane %v4723_v8, %v7058_v28  ;;  %v2475_v54 = vrot.slane %v1940_v5, %v7058_v28  ;;  %v1945_v63 = vadd.f32 %v7437_v62, %v1679_v18 }
 0x308   : > { %v2467_v34 = vcombine.high %v2465_v0, %v2465_v0  ;;  %v2934_v57 = vsel %vm7069_vm7, %v2932_v23, %v2933_v47  ;;  %v2935_v2 = vrot.slane %v2933_v47, 2  ;;  %v2936_v4 = vrot.slane %v2466_v39, 7 }
 0x309   : > { %4076 = vst [vmem:[%s7129_s17 + $0xa0] sm:$0xff] %v3836_v59  ;;  %v4107_v11 = vadd.f32 %v4106_v22, %v3836_v59  ;;  %v4738_v60 = vcombine.low %v4730_v45, %v4737_v6  ;;  %v2939_v12 = vrot.slane %v2465_v0, 7  ;;  %v3308_v21 = vadd.f32 %v7063_v10, %v2934_v57 }
 0x30a   : > { %v2937_v9 = vsel %vm7069_vm7, %v2935_v2, %v2936_v4  ;;  %v2938_v31 = vrot.slane %v2936_v4, 2  ;;  %v2942_v53 = vrot.slane %v2467_v34, 7  ;;  %v2482_v61 = vrot.slane %v2468_v1, %v7058_v28 }
 0x30b   : > { %v4977_v62 = vadd.f32 %v4976_v46, %v4738_v60  ;;  %v2941_v41 = vrot.slane %v2939_v12, 2  ;;  %v3309_v56 = vadd.f32 %v7075_v50, %v2937_v9  ;;  %v4210_v23 = vmul.f32 %v3308_v21, %v3308_v21 }
 0x30c   : > { %v2940_v25 = vsel %vm7069_vm7, %v2938_v31, %v2939_v12  ;;  %v2483_v22 = vcombine.high %v2475_v54, %v2475_v54  ;;  %v2484_v18 = vcombine.high %v2482_v61, %v2482_v61  ;;  %v5176_v17 = vrot.slane %v2475_v54, 9 }
 0x30d   : > { %v2943_v55 = vsel %vm7069_vm7, %v2941_v41, %v2942_v53  ;;  %v3310_v38 = vadd.f32 %v7066_v43, %v2940_v25  ;;  %v3837_v33 = vcombine.low %v3308_v21, %v3309_v56  ;;  %v4211_v29 = vmul.f32 %v3309_v56, %v3309_v56 }
 0x30e   : > { %v3311_v16 = vadd.f32 %v7081_v15, %v2943_v55  ;;  %v2946_v46 = vrot.slane %v2483_v22, 7  ;;  %v2949_v5 = vrot.slane %v2482_v61, 7  ;;  %v2952_v26 = vrot.slane %v2484_v18, 7 }
 0x30f   : > { %v3845_v8 = vrot.slane %v3837_v33, %v7058_v28  ;;  %v4212_v45 = vmul.f32 %v3310_v38, %v3310_v38  ;;  %v4739_v24 = vcombine.low %v4210_v23, %v4211_v29  ;;  %v2485_v0 = vcombine.high %v1945_v63, %v1945_v63 }
 0x310   : > { %v3838_v39 = vcombine.low %v3310_v38, %v3311_v16  ;;  %v4213_v47 = vmul.f32 %v3311_v16, %v3311_v16  ;;  %v2947_v1 = vsel %vm7069_vm7, %v5176_v17, %v2946_v46  ;;  %v2948_v59 = vrot.slane %v2946_v46, 2 }
 0x311   : > { %v4747_v6 = vrot.slane %v4739_v24, %v7058_v28  ;;  %v2951_v54 = vrot.slane %v2949_v5, 2  ;;  %v2954_v34 = vrot.slane %v2952_v26, 2  ;;  %v3312_v57 = vadd.f32 %v7063_v10, %v2947_v1 }
 0x312   : > { %v3852_v2 = vrot.slane %v3838_v39, %v7058_v28  ;;  %v4740_v4 = vcombine.low %v4212_v45, %v4213_v47  ;;  %v2950_v60 = vsel %vm7069_vm7, %v2948_v59, %v2949_v5  ;;  %v2492_v12 = vrot.slane %v1945_v63, %v7058_v28  ;;  %v8225_v47 = vld [vmem:[#allocation17_spill] sm:$0xff] }
 0x313   : > { %v2953_v21 = vsel %vm7069_vm7, %v2951_v54, %v2952_v26  ;;  %v3313_v9 = vadd.f32 %v7075_v50, %v2950_v60  ;;  %v4214_v31 = vmul.f32 %v3312_v57, %v3312_v57  ;;  %v2499_v53 = vrot.slane %v2485_v0, %v7058_v28 }
 0x314   : > { %v3853_v61 = vcombine.low %v3845_v8, %v3852_v2  ;;  %v4754_v41 = vrot.slane %v4740_v4, %v7058_v28  ;;  %v3314_v56 = vadd.f32 %v7066_v43, %v2953_v21  ;;  %v2500_v23 = vcombine.high %v2492_v12, %v2492_v12  ;;  %v8226_v21 = vld [vmem:[#allocation11_spill] sm:$0xff] }
 0x315   : > { %v3854_v25 = vcombine.low %v3312_v57, %v3313_v9  ;;  %v4215_v22 = vmul.f32 %v3313_v9, %v3313_v9  ;;  %v2501_v18 = vcombine.high %v2499_v53, %v2499_v53  ;;  %v2955_v17 = vrot.slane %v2492_v12, 7 }
 0x316   : > { %4077 = vst [vmem:[%s7129_s17 + $0xa8] sm:$0xff] %v3853_v61  ;;  %v4108_v63 = vadd.f32 %v4107_v11, %v3853_v61  ;;  %v4755_v55 = vcombine.low %v4747_v6, %v4754_v41  ;;  %v4216_v38 = vmul.f32 %v3314_v56, %v3314_v56  ;;  %v2958_v33 = vrot.slane %v2500_v23, 7 }
 0x317   : > { %v3862_v29 = vrot.slane %v3854_v25, %v7058_v28  ;;  %v4756_v16 = vcombine.low %v4214_v31, %v4215_v22  ;;  %v2956_v46 = vsel %vm7069_vm7, %v2954_v34, %v2955_v17  ;;  %v2957_v5 = vrot.slane %v2955_v17, 2 }
 0x318   : > { %v4978_v26 = vadd.f32 %v4977_v62, %v4755_v55  ;;  %v2960_v8 = vrot.slane %v2958_v33, 2  ;;  %v2961_v45 = vrot.slane %v2499_v53, 7  ;;  %v2964_v24 = vrot.slane %v2501_v18, 7 }
 0x319   : > { %v4764_v0 = vrot.slane %v4756_v16, %v7058_v28  ;;  %v2959_v39 = vsel %vm7069_vm7, %v2957_v5, %v2958_v33  ;;  %v3315_v11 = vadd.f32 %v7081_v15, %v2956_v46  ;;  %v1689_v1 = vadd.f32 %v7451_v27, %v8225_v47 }
 0x31a   : > { %v2962_v59 = vsel %vm7069_vm7, %v2960_v8, %v2961_v45  ;;  %v2963_v6 = vrot.slane %v2961_v45, 2  ;;  %v2966_v54 = vrot.slane %v2964_v24, 2  ;;  %v3316_v62 = vadd.f32 %v7063_v10, %v2959_v39 }
 0x31b   : > { %v3317_v34 = vadd.f32 %v7075_v50, %v2962_v59  ;;  %v3855_v57 = vcombine.low %v3314_v56, %v3315_v11  ;;  %v4217_v2 = vmul.f32 %v3315_v11, %v3315_v11  ;;  %v1950_v4 = vadd.f32 %v7453_v7, %v7748_v32 }
 0x31c   : > { %v2965_v60 = vsel %vm7069_vm7, %v2963_v6, %v2964_v24  ;;  %v4218_v12 = vmul.f32 %v3316_v62, %v3316_v62  ;;  %v7803_v27 = vadd.f32 %v7468_v13, %v8226_v21  ;;  %v1955_v9 = vadd.f32 %v7470_v48, %v1689_v1 }
 0x31d   : > { %v3318_v31 = vadd.f32 %v7066_v43, %v2965_v60  ;;  %v3869_v53 = vrot.slane %v3855_v57, %v7058_v28  ;;  %v3871_v61 = vcombine.low %v3316_v62, %v3317_v34  ;;  %v4219_v41 = vmul.f32 %v3317_v34, %v3317_v34 }
 0x31e   : > { %v4757_v56 = vcombine.low %v4216_v38, %v4217_v2  ;;  %v2502_v23 = vcombine.high %v1950_v4, %v1950_v4  ;;  %v2509_v7 = vrot.slane %v1950_v4, %v7058_v28  ;;  %v2519_v32 = vcombine.high %v1955_v9, %v1955_v9 }
 0x31f   : > { %v3870_v25 = vcombine.low %v3862_v29, %v3869_v53  ;;  %v3879_v22 = vrot.slane %v3871_v61, %v7058_v28  ;;  %v4220_v18 = vmul.f32 %v3318_v31, %v3318_v31  ;;  %v4773_v13 = vcombine.low %v4218_v12, %v4219_v41 }
 0x320   : > { %v4771_v17 = vrot.slane %v4757_v56, %v7058_v28  ;;  %v2516_v48 = vrot.slane %v2502_v23, %v7058_v28  ;;  %v2517_v55 = vcombine.high %v2509_v7, %v2509_v7  ;;  %v2967_v33 = vrot.slane %v2509_v7, 7 }
 0x321   : > { %4078 = vst [vmem:[%s7129_s17 + $0xb0] sm:$0xff] %v3870_v25  ;;  %v4109_v16 = vadd.f32 %v4108_v63, %v3870_v25  ;;  %v4781_v46 = vrot.slane %v4773_v13, %v7058_v28  ;;  %v2526_v38 = vrot.slane %v1955_v9, %v7058_v28  ;;  %v2533_v5 = vrot.slane %v2519_v32, %v7058_v28 }
 0x322   : > { %v4772_v8 = vcombine.low %v4764_v0, %v4771_v17  ;;  %v2518_v29 = vcombine.high %v2516_v48, %v2516_v48  ;;  %v2968_v45 = vsel %vm7069_vm7, %v2966_v54, %v2967_v33  ;;  %v5177_v24 = vrot.slane %v2517_v55, 9 }
 0x323   : > { %v2971_v39 = vrot.slane %v2516_v48, 7  ;;  %v3319_v11 = vadd.f32 %v7081_v15, %v2968_v45  ;;  %v2534_v47 = vcombine.high %v2526_v38, %v2526_v38  ;;  %v2535_v1 = vcombine.high %v2533_v5, %v2533_v5 }
 0x324   : > { %v4979_v59 = vadd.f32 %v4978_v26, %v4772_v8  ;;  %v2974_v6 = vrot.slane %v2518_v29, 7  ;;  %v2977_v63 = vrot.slane %v2526_v38, 7  ;;  %v2983_v62 = vrot.slane %v2533_v5, 7 }
 0x325   : > { %v2972_v34 = vsel %vm7069_vm7, %v5177_v24, %v2971_v39  ;;  %v2973_v57 = vrot.slane %v2971_v39, 2  ;;  %v3872_v2 = vcombine.low %v3318_v31, %v3319_v11  ;;  %v4221_v0 = vmul.f32 %v3319_v11, %v3319_v11 }
 0x326   : > { %v2976_v4 = vrot.slane %v2974_v6, 2  ;;  %v3320_v60 = vadd.f32 %v7063_v10, %v2972_v34  ;;  %v2979_v54 = vrot.slane %v2977_v63, 2  ;;  %v2980_v12 = vrot.slane %v2534_v47, 7 }
 0x327   : > { %v2975_v21 = vsel %vm7069_vm7, %v2973_v57, %v2974_v6  ;;  %v3886_v26 = vrot.slane %v3872_v2, %v7058_v28  ;;  %v4774_v9 = vcombine.low %v4220_v18, %v4221_v0  ;;  %v2985_v53 = vrot.slane %v2983_v62, 2  ;;  %v8227_v6 = vld [vmem:[#allocation19_spill] sm:$0xff] }
 0x328   : > { %v3321_v61 = vadd.f32 %v7075_v50, %v2975_v21  ;;  %v4222_v41 = vmul.f32 %v3320_v60, %v3320_v60  ;;  %v2978_v31 = vsel %vm7069_vm7, %v2976_v4, %v2977_v63  ;;  %v2981_v56 = vsel %vm7069_vm7, %v2979_v54, %v2980_v12  ;;  %v8228_v63 = vld [vmem:[#allocation30_spill] sm:$0xff]  ;;  %v8229_v4 = vld [vmem:[#allocation12_spill] sm:$0xff] }
 0x329   : > { %v3887_v23 = vcombine.low %v3879_v22, %v3886_v26  ;;  %v4788_v7 = vrot.slane %v4774_v9, %v7058_v28  ;;  %v2982_v32 = vrot.slane %v2980_v12, 2  ;;  %v2986_v25 = vrot.slane %v2535_v1, 7  ;;  %v8230_v12 = vld [vmem:[#allocation13_spill] sm:$0xff] }
 0x32a   : > { %v3888_v13 = vcombine.low %v3320_v60, %v3321_v61  ;;  %v4223_v17 = vmul.f32 %v3321_v61, %v3321_v61  ;;  %v3322_v48 = vadd.f32 %v7066_v43, %v2978_v31  ;;  %v3323_v18 = vadd.f32 %v7081_v15, %v2981_v56 }
 0x32b   : > { %4079 = vst [vmem:[%s7129_s17 + $0xb8] sm:$0xff] %v3887_v23  ;;  %v4110_v55 = vadd.f32 %v4109_v16, %v3887_v23  ;;  %v4789_v33 = vcombine.low %v4781_v46, %v4788_v7  ;;  %v2984_v38 = vsel %vm7069_vm7, %v2982_v32, %v2983_v62  ;;  %v2987_v5 = vsel %vm7069_vm7, %v2985_v53, %v2986_v25 }
 0x32c   : > { %v3896_v22 = vrot.slane %v3888_v13, %v7058_v28  ;;  %v4790_v8 = vcombine.low %v4222_v41, %v4223_v17  ;;  %v2988_v29 = vrot.slane %v2986_v25, 2  ;;  %v3324_v45 = vadd.f32 %v7063_v10, %v2984_v38 }
 0x32d   : > { %v4980_v24 = vadd.f32 %v4979_v59, %v4789_v33  ;;  %v3325_v39 = vadd.f32 %v7075_v50, %v2987_v5  ;;  %v3889_v11 = vcombine.low %v3322_v48, %v3323_v18  ;;  %v4224_v47 = vmul.f32 %v3322_v48, %v3322_v48 }
 0x32e   : > { %v4798_v16 = vrot.slane %v4790_v8, %v7058_v28  ;;  %v4225_v46 = vmul.f32 %v3323_v18, %v3323_v18  ;;  %v4226_v1 = vmul.f32 %v3324_v45, %v3324_v45  ;;  %v1699_v62 = vadd.f32 %v8228_v63, %v8227_v6 }
 0x32f   : > { %v3903_v34 = vrot.slane %v3889_v11, %v7058_v28  ;;  %v3905_v57 = vcombine.low %v3324_v45, %v3325_v39  ;;  %v4227_v2 = vmul.f32 %v3325_v39, %v3325_v39  ;;  %v1960_v0 = vadd.f32 %v7500_v36, %v7803_v27 }
 0x330   : > { %v4791_v59 = vcombine.low %v4224_v47, %v4225_v46  ;;  %v1704_v60 = vadd.f32 %v7518_v49, %v8229_v4  ;;  %v1965_v54 = vadd.f32 %v7520_v40, %v1699_v62  ;;  %v7852_v21 = vadd.f32 %v7531_v51, %v8230_v12 }
 0x331   : > { %v3904_v26 = vcombine.low %v3896_v22, %v3903_v34  ;;  %v3913_v9 = vrot.slane %v3905_v57, %v7058_v28  ;;  %v4807_v53 = vcombine.low %v4226_v1, %v4227_v2  ;;  %v2536_v61 = vcombine.high %v1960_v0, %v1960_v0 }
 0x332   : > { %v4805_v41 = vrot.slane %v4791_v59, %v7058_v28  ;;  %v2543_v31 = vrot.slane %v1960_v0, %v7058_v28  ;;  %v2553_v36 = vcombine.high %v1965_v54, %v1965_v54  ;;  %v2560_v27 = vrot.slane %v1965_v54, %v7058_v28 }
 0x333   : > { %4080 = vst [vmem:[%s7129_s17 + $0xc0] sm:$0xff] %v3904_v26  ;;  %v4111_v49 = vadd.f32 %v4110_v55, %v3904_v26  ;;  %v7860_v40 = vrot.slane %v4807_v53, %v7058_v28  ;;  %v2550_v51 = vrot.slane %v2536_v61, %v7058_v28  ;;  %v1970_v56 = vadd.f32 %v7533_v52, %v1704_v60 }
 0x334   : > { %v4806_v23 = vcombine.low %v4798_v16, %v4805_v41  ;;  %v2551_v7 = vcombine.high %v2543_v31, %v2543_v31  ;;  %v2989_v32 = vrot.slane %v2543_v31, 7  ;;  %v2567_v25 = vrot.slane %v2553_v36, %v7058_v28 }
 0x335   : > { %v2552_v13 = vcombine.high %v2550_v51, %v2550_v51  ;;  %v5178_v17 = vrot.slane %v2550_v51, 9  ;;  %v2568_v48 = vcombine.high %v2560_v27, %v2560_v27  ;;  %v2999_v18 = vrot.slane %v2560_v27, 7 }
 0x336   : > { %v4981_v33 = vadd.f32 %v4980_v24, %v4806_v23  ;;  %v2990_v55 = vsel %vm7069_vm7, %v2988_v29, %v2989_v32  ;;  %v2991_v38 = vrot.slane %v2989_v32, 2  ;;  %v2992_v5 = vrot.slane %v2551_v7, 7 }
 0x337   : > { %v2996_v22 = vrot.slane %v2552_v13, 7  ;;  %v3326_v8 = vadd.f32 %v7066_v43, %v2990_v55  ;;  %v2569_v45 = vcombine.high %v2567_v25, %v2567_v25  ;;  %v3001_v52 = vrot.slane %v2999_v18, 2 }
 0x338   : > { %v2993_v39 = vsel %vm7069_vm7, %v2991_v38, %v2992_v5  ;;  %v3002_v11 = vrot.slane %v2568_v48, 7  ;;  %v3005_v47 = vrot.slane %v2567_v25, 7  ;;  %v2570_v16 = vcombine.high %v1970_v56, %v1970_v56 }
 0x339   : > { %v2997_v46 = vsel %vm7069_vm7, %v5178_v17, %v2996_v22  ;;  %v2998_v24 = vrot.slane %v2996_v22, 2  ;;  %v3327_v1 = vadd.f32 %v7081_v15, %v2993_v39  ;;  %v4228_v29 = vmul.f32 %v3326_v8, %v3326_v8 }
 0x33a   : > { %v3328_v6 = vadd.f32 %v7063_v10, %v2997_v46  ;;  %v3003_v63 = vsel %vm7069_vm7, %v3001_v52, %v3002_v11  ;;  %v3004_v62 = vrot.slane %v3002_v11, 2  ;;  %v3007_v34 = vrot.slane %v3005_v47, 2 }
 0x33b   : > { %v3906_v57 = vcombine.low %v3326_v8, %v3327_v1  ;;  %v4229_v2 = vmul.f32 %v3327_v1, %v3327_v1  ;;  %v3000_v0 = vsel %vm7069_vm7, %v2998_v24, %v2999_v18  ;;  %v3008_v59 = vrot.slane %v2569_v45, 7 }
 0x33c   : > { %v4230_v4 = vmul.f32 %v3328_v6, %v3328_v6  ;;  %v3006_v60 = vsel %vm7069_vm7, %v3004_v62, %v3005_v47  ;;  %v3329_v54 = vadd.f32 %v7075_v50, %v3000_v0  ;;  %v3330_v12 = vadd.f32 %v7066_v43, %v3003_v63 }
 0x33d   : > { %v3920_v26 = vrot.slane %v3906_v57, %v7058_v28  ;;  %v4808_v53 = vcombine.low %v4228_v29, %v4229_v2  ;;  %v3009_v61 = vsel %vm7069_vm7, %v3007_v34, %v3008_v59  ;;  %v3010_v41 = vrot.slane %v3008_v59, 2  ;;  %v8232_v57 = vld [vmem:[#allocation18_spill] sm:$0xff] }
 0x33e   : > { %v3331_v31 = vadd.f32 %v7081_v15, %v3006_v60  ;;  %v3332_v36 = vadd.f32 %v7063_v10, %v3009_v61  ;;  %v3922_v27 = vcombine.low %v3328_v6, %v3329_v54  ;;  %v4231_v51 = vmul.f32 %v3329_v54, %v3329_v54  ;;  %v8231_v6 = vld [vmem:[#allocation15_spill] sm:$0xff] }
 0x33f   : > { %v3921_v23 = vcombine.low %v3913_v9, %v3920_v26  ;;  %v4822_v7 = vrot.slane %v4808_v53, %v7058_v28  ;;  %v4232_v32 = vmul.f32 %v3330_v12, %v3330_v12  ;;  %v2577_v25 = vrot.slane %v1970_v56, %v7058_v28 }
 0x340   : > { %v3923_v13 = vcombine.low %v3330_v12, %v3331_v31  ;;  %v3930_v17 = vrot.slane %v3922_v27, %v7058_v28  ;;  %v4233_v48 = vmul.f32 %v3331_v31, %v3331_v31  ;;  %v4234_v18 = vmul.f32 %v3332_v36, %v3332_v36 }
 0x341   : > { %4081 = vst [vmem:[%s7129_s17 + $0xc8] sm:$0xff] %v3921_v23  ;;  %v4112_v55 = vadd.f32 %v4111_v49, %v3921_v23  ;;  %v4823_v38 = vcombine.low %v7860_v40, %v4822_v7  ;;  %v4824_v5 = vcombine.low %v4230_v4, %v4231_v51  ;;  %v2584_v22 = vrot.slane %v2570_v16, %v7058_v28 }
 0x342   : > { %v3937_v8 = vrot.slane %v3923_v13, %v7058_v28  ;;  %v4825_v9 = vcombine.low %v4232_v32, %v4233_v48  ;;  %v2585_v45 = vcombine.high %v2577_v25, %v2577_v25  ;;  %v3011_v52 = vrot.slane %v2577_v25, 7 }
 0x343   : > { %v4982_v39 = vadd.f32 %v4981_v33, %v4823_v38  ;;  %v4832_v56 = vrot.slane %v4824_v5, %v7058_v28  ;;  %v2586_v11 = vcombine.high %v2584_v22, %v2584_v22  ;;  %v3017_v47 = vrot.slane %v2584_v22, 7 }
 0x344   : > { %v3938_v46 = vcombine.low %v3930_v17, %v3937_v8  ;;  %v4839_v24 = vrot.slane %v4825_v9, %v7058_v28  ;;  %v3012_v49 = vsel %vm7069_vm7, %v3010_v41, %v3011_v52  ;;  %v3013_v40 = vrot.slane %v3011_v52, 2 }
 0x345   : > { %v3014_v1 = vrot.slane %v2585_v45, 7  ;;  %v5179_v16 = vrot.slane %v2586_v11, 9  ;;  %v3333_v29 = vadd.f32 %v7075_v50, %v3012_v49  ;;  %v1714_v63 = vadd.f32 %v7565_v30, %v8231_v6 }
 0x346   : > { %4082 = vst [vmem:[%s7129_s17 + $0xd0] sm:$0xff] %v3938_v46  ;;  %v4113_v33 = vadd.f32 %v4112_v55, %v3938_v46  ;;  %v4840_v62 = vcombine.low %v4832_v56, %v4839_v24  ;;  %v1975_v34 = vadd.f32 %v7573_v20, %v7852_v21  ;;  %v7906_v2 = vadd.f32 %v7596_v14, %v8232_v57 }
 0x347   : > { %v3015_v0 = vsel %vm7069_vm7, %v3013_v40, %v3014_v1  ;;  %v3016_v59 = vrot.slane %v3014_v1, 2  ;;  %v3939_v4 = vcombine.low %v3332_v36, %v3333_v29  ;;  %v4235_v60 = vmul.f32 %v3333_v29, %v3333_v29 }
 0x348   : > { %v4983_v54 = vadd.f32 %v4982_v39, %v4840_v62  ;;  %v3334_v12 = vadd.f32 %v7066_v43, %v3015_v0  ;;  %v2587_v30 = vcombine.high %v1975_v34, %v1975_v34  ;;  %v2594_v26 = vrot.slane %v1975_v34, %v7058_v28 }
 0x349   : > { %v3018_v53 = vsel %vm7069_vm7, %v3016_v59, %v3017_v47  ;;  %v3947_v20 = vrot.slane %v3939_v4, %v7058_v28  ;;  %v4841_v21 = vcombine.low %v4234_v18, %v4235_v60  ;;  %v1980_v14 = vadd.f32 %v7598_v35, %v1714_v63 }
 0x34a   : > { %v3335_v61 = vadd.f32 %v7081_v15, %v3018_v53  ;;  %v4236_v41 = vmul.f32 %v3334_v12, %v3334_v12  ;;  %v2601_v31 = vrot.slane %v2587_v30, %v7058_v28  ;;  %v2602_v36 = vcombine.high %v2594_v26, %v2594_v26 }
 0x34b   : > { %v4849_v27 = vrot.slane %v4841_v21, %v7058_v28  ;;  %v3021_v51 = vrot.slane %v2594_v26, 7  ;;  %v2604_v23 = vcombine.high %v1980_v14, %v1980_v14  ;;  %v2611_v7 = vrot.slane %v1980_v14, %v7058_v28 }
 0x34c   : > { %v3940_v32 = vcombine.low %v3334_v12, %v3335_v61  ;;  %v4237_v25 = vmul.f32 %v3335_v61, %v3335_v61  ;;  %v2603_v13 = vcombine.high %v2601_v31, %v2601_v31  ;;  %v3024_v17 = vrot.slane %v2602_v36, 7 }
 0x34d   : > { %v3022_v48 = vsel %vm7069_vm7, %v5179_v16, %v3021_v51  ;;  %v3023_v35 = vrot.slane %v3021_v51, 2  ;;  %v3027_v18 = vrot.slane %v2601_v31, 7  ;;  %v2618_v55 = vrot.slane %v2604_v23, %v7058_v28 }
 0x34e   : > { %v3954_v38 = vrot.slane %v3940_v32, %v7058_v28  ;;  %v4842_v5 = vcombine.low %v4236_v41, %v4237_v25  ;;  %v3026_v22 = vrot.slane %v3024_v17, 2  ;;  %v3030_v8 = vrot.slane %v2603_v13, 7 }
 0x34f   : > { %v3025_v9 = vsel %vm7069_vm7, %v3023_v35, %v3024_v17  ;;  %v3029_v45 = vrot.slane %v3027_v18, 2  ;;  %v3336_v52 = vadd.f32 %v7063_v10, %v3022_v48  ;;  %v2619_v39 = vcombine.high %v2611_v7, %v2611_v7  ;;  %v8233_v35 = vld [vmem:[#allocation20_spill] sm:$0xff] }
 0x350   : > { %v3955_v56 = vcombine.low %v3947_v20, %v3954_v38  ;;  %v4856_v11 = vrot.slane %v4842_v5, %v7058_v28  ;;  %v3028_v47 = vsel %vm7069_vm7, %v3026_v22, %v3027_v18  ;;  %v3032_v46 = vrot.slane %v3030_v8, 2 }
 0x351   : > { %v3031_v24 = vsel %vm7069_vm7, %v3029_v45, %v3030_v8  ;;  %v3337_v49 = vadd.f32 %v7075_v50, %v3025_v9  ;;  %v3338_v40 = vadd.f32 %v7066_v43, %v3028_v47  ;;  %v4238_v1 = vmul.f32 %v3336_v52, %v3336_v52 }
 0x352   : > { %4083 = vst [vmem:[%s7129_s17 + $0xd8] sm:$0xff] %v3955_v56  ;;  %v7935_v16 = vadd.f32 %v4113_v33, %v3955_v56  ;;  %v4857_v29 = vcombine.low %v4849_v27, %v4856_v11  ;;  %v3339_v6 = vadd.f32 %v7081_v15, %v3031_v24  ;;  %v2620_v63 = vcombine.high %v2618_v55, %v2618_v55 }
 0x353   : > { %v3956_v62 = vcombine.low %v3336_v52, %v3337_v49  ;;  %v4239_v34 = vmul.f32 %v3337_v49, %v3337_v49  ;;  %v4240_v57 = vmul.f32 %v3338_v40, %v3338_v40  ;;  %v3033_v0 = vrot.slane %v2611_v7, 7  ;;  %v8234_v52 = vld [vmem:[#allocation21_spill] sm:$0xff] }
 0x354   : > { %v7938_v59 = vadd.f32 %v4983_v54, %v4857_v29  ;;  %v3957_v4 = vcombine.low %v3338_v40, %v3339_v6  ;;  %v4241_v60 = vmul.f32 %v3339_v6, %v3339_v6  ;;  %v3036_v12 = vrot.slane %v2619_v39, 7 }
 0x355   : > { %v3964_v30 = vrot.slane %v3956_v62, %v7058_v28  ;;  %v4858_v26 = vcombine.low %v4238_v1, %v4239_v34  ;;  %v3034_v33 = vsel %vm7069_vm7, %v3032_v46, %v3033_v0  ;;  %v3035_v53 = vrot.slane %v3033_v0, 2 }
 0x356   : > { %v3971_v20 = vrot.slane %v3957_v4, %v7058_v28  ;;  %v4859_v21 = vcombine.low %v4240_v57, %v4241_v60  ;;  %v3038_v14 = vrot.slane %v3036_v12, 2  ;;  %v3039_v61 = vrot.slane %v2618_v55, 7 }
 0x357   : > { %v7945_v41 = vrot.slane %v4858_v26, %v7058_v28  ;;  %v3037_v54 = vsel %vm7069_vm7, %v3035_v53, %v3036_v12  ;;  %v3042_v31 = vrot.slane %v2620_v63, 7  ;;  %v3340_v36 = vadd.f32 %v7063_v10, %v3034_v33 }
 0x358   : > { %v7950_v27 = vcombine.low %v3964_v30, %v3971_v20  ;;  %v7953_v51 = vrot.slane %v4859_v21, %v7058_v28  ;;  %v3040_v23 = vsel %vm7069_vm7, %v3038_v14, %v3039_v61  ;;  %v3041_v7 = vrot.slane %v3039_v61, 2 }
 0x359   : > { %v3341_v32 = vadd.f32 %v7075_v50, %v3037_v54  ;;  %v3342_v25 = vadd.f32 %v7066_v43, %v3040_v23  ;;  %v4242_v13 = vmul.f32 %v3340_v36, %v3340_v36  ;;  %v1724_v18 = vadd.f32 %v7616_v44, %v8233_v35 }
 0x35a   : > { %4084 = vst [vmem:[%s7129_s17 + $0xe0] sm:$0xff] %v7950_v27  ;;  %v4874_v17 = vcombine.low %v7945_v41, %v7953_v51  ;;  %v3043_v48 = vsel %vm7069_vm7, %v3041_v7, %v3042_v31  ;;  %v1985_v55 = vadd.f32 %v7626_v42, %v7906_v2  ;;  %v1729_v39 = vadd.f32 %v7643_v19, %v8234_v52 }
 0x35b   : > { %v3343_v38 = vadd.f32 %v7081_v15, %v3043_v48  ;;  %v3973_v5 = vcombine.low %v3340_v36, %v3341_v32  ;;  %v4243_v22 = vmul.f32 %v3341_v32, %v3341_v32  ;;  %v4244_v8 = vmul.f32 %v3342_v25, %v3342_v25 }
 0x35c   : > { %v2621_v9 = vcombine.high %v1985_v55, %v1985_v55  ;;  %v2628_v45 = vrot.slane %v1985_v55, %v7058_v28  ;;  %v1990_v56 = vadd.f32 %v7645_v37, %v1724_v18  ;;  %v1995_v48 = vadd.f32 %v7662_v58, %v1729_v39 }
 0x35d   : > { %v3974_v11 = vcombine.low %v3342_v25, %v3343_v38  ;;  %v3981_v47 = vrot.slane %v3973_v5, %v7058_v28  ;;  %v4245_v44 = vmul.f32 %v3343_v38, %v3343_v38  ;;  %v4875_v46 = vcombine.low %v4242_v13, %v4243_v22 }
 0x35e   : > { %v2635_v42 = vrot.slane %v2621_v9, %v7058_v28  ;;  %v2636_v2 = vcombine.high %v2628_v45, %v2628_v45  ;;  %v5180_v24 = vrot.slane %v2628_v45, 9  ;;  %v2638_v49 = vcombine.high %v1990_v56, %v1990_v56 }
 0x35f   : > { %v3988_v40 = vrot.slane %v3974_v11, %v7058_v28  ;;  %v4876_v1 = vcombine.low %v4244_v8, %v4245_v44  ;;  %v7978_v29 = vrot.slane %v4875_v46, %v7058_v28  ;;  %v2645_v19 = vrot.slane %v1990_v56, %v7058_v28 }
 0x360   : > { %v2637_v37 = vcombine.high %v2635_v42, %v2635_v42  ;;  %v3046_v6 = vrot.slane %v2636_v2, 7  ;;  %v3049_v63 = vrot.slane %v2635_v42, 7  ;;  %v2652_v62 = vrot.slane %v2638_v49, %v7058_v28 }
 0x361   : > { %v3989_v34 = vcombine.low %v3981_v47, %v3988_v40  ;;  %v4890_v57 = vrot.slane %v4876_v1, %v7058_v28  ;;  %v2653_v0 = vcombine.high %v2645_v19, %v2645_v19  ;;  %v3055_v4 = vrot.slane %v2645_v19, 7 }
 0x362   : > { %v3047_v60 = vsel %vm7069_vm7, %v5180_v24, %v3046_v6  ;;  %v3048_v12 = vrot.slane %v3046_v6, 2  ;;  %v3051_v30 = vrot.slane %v3049_v63, 2  ;;  %v3052_v26 = vrot.slane %v2637_v37, 7 }
 0x363   : > { %4085 = vst [vmem:[%s7129_s17 + $0xe8] sm:$0xff] %v3989_v34  ;;  %v4891_v33 = vcombine.low %v7978_v29, %v4890_v57  ;;  %v3344_v53 = vadd.f32 %v7063_v10, %v3047_v60  ;;  %v2654_v20 = vcombine.high %v2652_v62, %v2652_v62  ;;  %v3057_v21 = vrot.slane %v3055_v4, 2 }
 0x364   : > { %v3050_v14 = vsel %vm7069_vm7, %v3048_v12, %v3049_v63  ;;  %v3053_v61 = vsel %vm7069_vm7, %v3051_v30, %v3052_v26  ;;  %v3054_v54 = vrot.slane %v3052_v26, 2  ;;  %v3058_v31 = vrot.slane %v2653_v0, 7 }
 0x365   : > { %v3345_v36 = vadd.f32 %v7075_v50, %v3050_v14  ;;  %v3346_v23 = vadd.f32 %v7066_v43, %v3053_v61  ;;  %v3061_v7 = vrot.slane %v2652_v62, 7  ;;  %v3064_v13 = vrot.slane %v2654_v20, 7 }
 0x366   : > { %v3056_v32 = vsel %vm7069_vm7, %v3054_v54, %v3055_v4  ;;  %v3060_v25 = vrot.slane %v3058_v31, 2  ;;  %v4246_v18 = vmul.f32 %v3344_v53, %v3344_v53  ;;  %v3059_v5 = vsel %vm7069_vm7, %v3057_v21, %v3058_v31 }
 0x367   : > { %v3990_v35 = vcombine.low %v3344_v53, %v3345_v36  ;;  %v4247_v55 = vmul.f32 %v3345_v36, %v3345_v36  ;;  %v3063_v38 = vrot.slane %v3061_v7, 2  ;;  %v3347_v8 = vadd.f32 %v7081_v15, %v3056_v32 }
 0x368   : > { %v3062_v22 = vsel %vm7069_vm7, %v3060_v25, %v3061_v7  ;;  %v4248_v9 = vmul.f32 %v3346_v23, %v3346_v23  ;;  %v3066_v52 = vrot.slane %v3064_v13, 2  ;;  %v2661_v47 = vrot.slane %v1995_v48, %v7058_v28 }
 0x369   : > { %v4892_v45 = vcombine.low %v4246_v18, %v4247_v55  ;;  %v3349_v56 = vadd.f32 %v7075_v50, %v3062_v22  ;;  %v3065_v58 = vsel %vm7069_vm7, %v3063_v38, %v3064_v13  ;;  %v3991_v39 = vcombine.low %v3346_v23, %v3347_v8 }
 0x36a   : > { %v4249_v11 = vmul.f32 %v3347_v8, %v3347_v8  ;;  %v3998_v44 = vrot.slane %v3990_v35, %v7058_v28  ;;  %v3348_v46 = vadd.f32 %v7063_v10, %v3059_v5  ;;  %v3067_v24 = vrot.slane %v2661_v47, 7 }
 0x36b   : > { %v4005_v42 = vrot.slane %v3991_v39, %v7058_v28  ;;  %v4115_v49 = vadd.f32 %v7935_v16, %v7950_v27  ;;  %v4900_v50 = vrot.slane %v4892_v45, %v7058_v28  ;;  %v4251_v40 = vmul.f32 %v3349_v56, %v3349_v56 }
 0x36c   : > { %v4893_v2 = vcombine.low %v4248_v9, %v4249_v11  ;;  %v3350_v1 = vadd.f32 %v7066_v43, %v3065_v58  ;;  %v4985_v29 = vadd.f32 %v7938_v59, %v4874_v17  ;;  %v3068_v19 = vsel %vm7069_vm7, %v3066_v52, %v3067_v24 }
 0x36d   : > { %v4006_v37 = vcombine.low %v3998_v44, %v4005_v42  ;;  %v4116_v6 = vadd.f32 %v4115_v49, %v3989_v34  ;;  %v4007_v16 = vcombine.low %v3348_v46, %v3349_v56  ;;  %v4250_v27 = vmul.f32 %v3348_v46, %v3348_v46 }
 0x36e   : > { %v4907_v10 = vrot.slane %v4893_v2, %v7058_v28  ;;  %v3351_v63 = vadd.f32 %v7081_v15, %v3068_v19  ;;  %v4986_v62 = vadd.f32 %v4985_v29, %v4891_v33  ;;  %v4252_v51 = vmul.f32 %v3350_v1, %v3350_v1 }
 0x36f   : > { %4086 = vst [vmem:[%s7129_s17 + $0xf0] sm:$0xff] %v4006_v37  ;;  %v4117_v43 = vadd.f32 %v4116_v6, %v4006_v37  ;;  %v4909_v41 = vcombine.low %v4250_v27, %v4251_v40  ;;  %v4015_v34 = vrot.slane %v4007_v16, %v7058_v28 }
 0x370   : > { %v4908_v57 = vcombine.low %v4900_v50, %v4907_v10  ;;  %v4008_v59 = vcombine.low %v3350_v1, %v3351_v63  ;;  %v4253_v17 = vmul.f32 %v3351_v63, %v3351_v63 }
 0x371   : > { %v4917_v15 = vrot.slane %v4909_v41, %v7058_v28 }
 0x372   : > { %v4987_v3 = vadd.f32 %v4986_v62, %v4908_v57  ;;  %v4022_v0 = vrot.slane %v4008_v59, %v7058_v28  ;;  %v4910_v4 = vcombine.low %v4252_v51, %v4253_v17 }
 0x374   : > { %v4924_v60 = vrot.slane %v4910_v4, %v7058_v28  ;;  %v4023_v12 = vcombine.low %v4015_v34, %v4022_v0 }
 0x376   : > { %4087 = vst [vmem:[%s7129_s17 + $0xf8] sm:$0xff] %v4023_v12  ;;  %v4118_v30 = vadd.f32 %v4117_v43, %v4023_v12  ;;  %v4925_v26 = vcombine.low %v4917_v15, %v4924_v60 }
 0x377   : > { %5534 = shalt.err (!%p5531_p3)
}
 0x378   : > { %s5535_s11 = scalar_lea.hbm %s8029_s7, 4096  ;;  %s5539_s17 = scalar_lea.hbm %s8147_s3, 8192 }
 0x379   : > { %p5536_p4 = scmp.ne.s32.totalorder %s8029_s7, %s5535_s11  ;;  %p5540_p9 = scmp.lt.s32.totalorder %s8029_s7, %s8147_s3 }
 0x37a   : > { %p5541_p10 = scmp.lt.s32.totalorder %s5539_s17, %s5535_s11 }
 0x37b   : > { %p5537_p7 = pnand %p5536_p4, %p5717_p5 }
 0x37c   : > { %p5542_p11 = por %p5541_p10, %p5540_p9 }
 0x37d   : > { %p5538_p8 = pneg %p5537_p7 }
 0x37f   : > { %p5543_p12 = pnand %p5542_p11, %p5538_p8 }
 0x381   : > { %5546 = shalt.err (!%p5543_p12)
}
 0x382   : > { %s5643_s6 = smov 128   ;;  %s5644_s9 = smov 8   ;;  %v4119_v28 = vrot.slane %v4118_v30, 4  ;;  %v4988_v33 = vadd.f32 %v4987_v3, %v4925_v26 }
 0x383   : > { %5467 = dma.vmem_to_hbm [thread:$0]  (%p5717_p5), %s8031_s26, 4096, %s8029_s7, %s4997_s8, %s5643_s6, %s5643_s6, %s5644_s9  }
 0x384   : > { %v4120_v53 = vadd.f32 %v4119_v28, %v4118_v30  ;;  %v4989_v20 = vrot.slane %v4988_v33, 4  ;;  %s5001_s10 = sand.u32 1, %s5698_s22   ;;  %s5185_s12 = sshll.u32 %s5698_s22, 4 }
 0x385   : > { %s227_s13 = scalar_lea.vmem [#allocation4], %s7096_s15  ;;  %s233_s14 = scalar_lea.vmem [#allocation6], %s7096_s15 }
 0x386   : > { %v4121_v21 = vrot.slane %v4120_v53, 2  ;;  %v4990_v14 = vadd.f32 %v4989_v20, %v4988_v33  ;;  %s5034_s11 = sshll.u32 %s227_s13, 4  ;;  %s5047_s16 = sshll.u32 %s233_s14, 4  ;;  %s8070_s11 = int_to_ptr.vmem [resolvable:$true] %s5034_s11  ;;  %s8077_s16 = int_to_ptr.vmem [resolvable:$true] %s5047_s16 }
 0x387   : > { %s8068_s8 = scalar_lea.hbm %s8148_s4, %s5185_s12  ;;  %s8075_s25 = scalar_lea.hbm %s8149_s5, %s5185_s12 }
 0x388   : > { %v4122_v61 = vadd.f32 %v4121_v21, %v4120_v53  ;;  %v4991_v54 = vrot.slane %v4990_v14, 2  ;;  %s8079_s30 = scalar_lea.sflag [#allocation5], %s5001_s10  ;;  %s5547_s6 = scalar_lea.vmem %s8070_s11, 16 }
 0x389   : > { %p5548_p13 = scmp.ne.s32.totalorder %s8070_s11, %s5547_s6  ;;  %s5645_s9 = smov [#allocation4]  }
 0x38a   : > { %v4123_v31 = vrot.slane %v4122_v61, 1  ;;  %v4992_v36 = vadd.f32 %v4991_v54, %v4990_v14  ;;  %s5551_s26 = sshll.u32 %s5645_s9, 4  ;;  %s5552_s26 = int_to_ptr.vmem [resolvable:$false] %s5551_s26 }
 0x38b   : > { %p5549_p0 = pnand %p5548_p13, %p5717_p5  ;;  %s5553_s7 = scalar_lea.vmem %s5552_s26, 32 }
 0x38c   : > { %v4124_v23 = vadd.f32 %v4123_v31, %v4122_v61  ;;  %v4993_v7 = vrot.slane %v4992_v36, 1  ;;  %p5554_p2 = scmp.lt.s32.totalorder %s8070_s11, %s5552_s26  ;;  %p5555_p3 = scmp.lt.s32.totalorder %s5553_s7, %s5547_s6 }
 0x38d   : > { %p5550_p1 = pneg %p5549_p0 }
 0x38e   : > { %4125 = vst [vmem:[%s227_s13] sm:$0x1] %v4124_v23  ;;  %v4994_v32 = vadd.f32 %v4993_v7, %v4992_v36  ;;  %p5556_p4 = por %p5555_p3, %p5554_p2 }
 0x390   : > { %p5557_p7 = pnand %p5556_p4, %p5550_p1 }
 0x392   : > { %5560 = shalt.err (!%p5557_p7)
}
 0x393   : > { %s5561_s10 = scalar_lea.hbm %s8068_s8, 16  ;;  %s5565_s22 = scalar_lea.hbm %s8148_s4, 32 }
 0x394   : > { %p5562_p8 = scmp.ne.s32.totalorder %s8068_s8, %s5561_s10  ;;  %p5566_p11 = scmp.lt.s32.totalorder %s8068_s8, %s8148_s4 }
 0x395   : > { %p5567_p12 = scmp.lt.s32.totalorder %s5565_s22, %s5561_s10 }
 0x396   : > { %p5563_p9 = pnand %p5562_p8, %p5717_p5 }
 0x397   : > { %p5568_p13 = por %p5567_p12, %p5566_p11 }
 0x398   : > { %p5564_p10 = pneg %p5563_p9 }
 0x39a   : > { %p5569_p0 = pnand %p5568_p13, %p5564_p10 }
 0x39c   : > { %5572 = shalt.err (!%p5569_p0)
}
 0x39d   : > { %5468 = dma.vmem_to_hbm [thread:$0]  (%p5717_p5), %s8070_s11, 16, %s8068_s8, %s8079_s30   ;;  %4995 = vst [vmem:[%s233_s14] sm:$0x1] %v4994_v32 }
 0x39e   : > { %s5573_s6 = scalar_lea.vmem %s8077_s16, 16  ;;  %s5646_s26 = smov [#allocation6]  }
 0x39f   : > { %p5574_p1 = scmp.ne.s32.totalorder %s8077_s16, %s5573_s6  ;;  %s5577_s7 = sshll.u32 %s5646_s26, 4  ;;  %s5578_s7 = int_to_ptr.vmem [resolvable:$false] %s5577_s7 }
 0x3a0   : > { %s5579_s10 = scalar_lea.vmem %s5578_s7, 32  ;;  %p5580_p4 = scmp.lt.s32.totalorder %s8077_s16, %s5578_s7 }
 0x3a1   : > { %p5575_p2 = pnand %p5574_p1, %p5717_p5  ;;  %p5581_p7 = scmp.lt.s32.totalorder %s5579_s10, %s5573_s6 }
 0x3a3   : > { %p5576_p3 = pneg %p5575_p2  ;;  %p5582_p8 = por %p5581_p7, %p5580_p4 }
 0x3a5   : > { %p5583_p9 = pnand %p5582_p8, %p5576_p3 }
 0x3a7   : > { %5586 = shalt.err (!%p5583_p9)
}
 0x3a8   : > { %s5587_s15 = scalar_lea.hbm %s8075_s25, 16  ;;  %s5591_s8 = scalar_lea.hbm %s8149_s5, 32 }
 0x3a9   : > { %p5588_p10 = scmp.ne.s32.totalorder %s8075_s25, %s5587_s15  ;;  %p5592_p13 = scmp.lt.s32.totalorder %s8075_s25, %s8149_s5 }
 0x3aa   : > { %p5593_p0 = scmp.lt.s32.totalorder %s5591_s8, %s5587_s15 }
 0x3ab   : > { %p5589_p11 = pnand %p5588_p10, %p5717_p5 }
 0x3ac   : > { %p5594_p1 = por %p5593_p0, %p5592_p13 }
 0x3ad   : > { %p5590_p12 = pneg %p5589_p11 }
 0x3af   : > { %p5595_p2 = pnand %p5594_p1, %p5590_p12 }
 0x3b1   : > { %5598 = shalt.err (!%p5595_p2)
}
 0x3b2   : > { %5469 = dma.vmem_to_hbm [thread:$0]  (%p5717_p5), %s8077_s16, 16, %s8075_s25, %s8079_s30  }
 0x3b3 PF: > { %p5483_p3 = scmp.ge.s32.totalorder %s5637_s21, 2  ;;  %s5059_s22 = sand.u32 1, %s5625_s18  }
 0x3b4   : > { %s5060_s17 = scalar_lea.sflag [#allocation3], %s5059_s22 }
 0x3b5   : > { %p5474_p4 = pnand %p5483_p3, %p5721_p6 }
 0x3b7   : > { %p5475_p7 = pneg %p5474_p4 }
 0x3b9   : > { %5616 = dma.done.wait (%p5475_p7), %s5060_s17, 4096  }
 0x3ba   : > { %5618 = vsyncadd (%p5475_p7), %s5060_s17, 4294963200  ;;  %s5068_s9 = sand.u32 1, %s5159_s23  }
 0x3bb   : > { %s5069_s28 = scalar_lea.sflag [#allocation5], %s5068_s9 }
 0x3bc   : > { %5620 = dma.done.wait (%p5475_p7), %s5069_s28, 32  }
 0x3bd   : > { %5622 = vsyncadd (%p5475_p7), %s5069_s28, 4294967264  ;;  %p19_p5 = scmp.ge.s32.totalorder %s5702_s24, 4   ;;  %s8235_s18 = smov %s5629_s19 }
 0x3be   : > { %s8236_s19 = smov %s5633_s20  ;;  %s8237_s20 = smov %s5715_s27 }
 0x3bf   : > { %s8238_s21 = smov %s5702_s24  ;;  %21 = sbr.rel (!%p19_p5) target bundleno = 5 (0x5), region = 99 }
 0x3c4   :  { %5081 = vsyncpa [#allocation3], 1 }
 0x3c5   :  { %5083 = vsyncpa [#allocation3 + $0x1], 1 }
 0x3c6   :  { %5084 = vsyncpa [#allocation5], 1 }
 0x3c7   :  { %5086 = vsyncpa [#allocation5 + $0x1], 1 }

</bundles_post_ra>
